<compile_context>
chip_gen: v5e
topology: v5e:2x2
jax: 0.10.0
libtpu: 0.0.40
codegen_flags: <defaults>
</compile_context>

<pallas_src>
import math
from functools import partial

import jax
import jax.numpy as jnp
from jax.experimental import pallas as pl
from jax.experimental.pallas import tpu as pltpu


def _round_up(a, b):
    return (a + b - 1) // b * b


# -----------------------------------------------------------------------------
# Fused (bf16 matmul -> +bias -> optional ReLU) Pallas kernel
# -----------------------------------------------------------------------------
def _mm_bias_act_kernel(x_ref, w_ref, b_ref, o_ref, acc_ref, *, act):
    k = pl.program_id(2)

    @pl.when(k == 0)
    def _():
        acc_ref[...] = jnp.zeros_like(acc_ref)

    acc_ref[...] += jnp.dot(x_ref[...], w_ref[...],
                            preferred_element_type=jnp.float32)

    @pl.when(k == pl.num_programs(2) - 1)
    def _():
        y = acc_ref[...] + b_ref[...]
        if act == "relu":
            y = jnp.maximum(y, 0.0)
        o_ref[...] = y.astype(o_ref.dtype)


def linear_bias_act(lhs, w, b, *, act="none", out_dtype=jnp.float32):
    """out = act(lhs @ w + b).  lhs: (M, K), w: (K, N), b: (N,)."""
    M, K = lhs.shape
    K2, N = w.shape
    assert K == K2 and b.shape == (N,)

    # Tile selection: lane-dense N (multiple of 128), MXU-friendly K, >=2
    # parallel M tiles when possible (megacore).  Pad with zeros, slice at end.
    if M <= 256:
        tm = _round_up(M, 8); Mp = tm
    else:
        tm = 256; Mp = _round_up(M, tm)
    if N <= 256:
        tn = _round_up(N, 128); Np = tn
    else:
        tn = 256; Np = _round_up(N, tn)
    if K <= 512:
        tk = _round_up(K, 128); Kp = tk
    else:
        tk = 512; Kp = _round_up(K, tk)

    def _pad2(x, rows, cols, dtype):
        x = x.astype(dtype)
        if x.shape == (rows, cols):
            return x
        return jnp.pad(x, ((0, rows - x.shape[0]), (0, cols - x.shape[1])))

    lhs_p = _pad2(lhs, Mp, Kp, jnp.bfloat16)
    w_p = _pad2(w, Kp, Np, jnp.bfloat16)
    b_p = _pad2(b.reshape(1, N), 1, Np, jnp.float32)

    grid = (Mp // tm, Np // tn, Kp // tk)
    out = pl.pallas_call(
        partial(_mm_bias_act_kernel, act=act),
        out_shape=jax.ShapeDtypeStruct((Mp, Np), out_dtype),
        grid_spec=pltpu.PrefetchScalarGridSpec(
            num_scalar_prefetch=0,
            grid=grid,
            in_specs=[
                pl.BlockSpec((tm, tk), lambda i, j, k: (i, k)),
                pl.BlockSpec((tk, tn), lambda i, j, k: (k, j)),
                pl.BlockSpec((1, tn), lambda i, j, k: (0, j)),
            ],
            out_specs=pl.BlockSpec((tm, tn), lambda i, j, k: (i, j)),
            scratch_shapes=[pltpu.VMEM((tm, tn), jnp.float32)],
        ),
        compiler_params=pltpu.CompilerParams(
            dimension_semantics=("parallel", "parallel", "arbitrary")),
    )(lhs_p, w_p, b_p)
    return out[:M, :N]


# -----------------------------------------------------------------------------
# Fused depthwise 3x3 conv (+bias) + GELU Pallas kernel (NHWC, channels on lanes)
# -----------------------------------------------------------------------------
def _dwconv_gelu_kernel(x_ref, w_ref, b_ref, o_ref):
    # x_ref: (1, H+2, W+2, tc) bf16 ; w_ref: (9, tc) f32 ; b_ref: (1, tc) f32
    H = o_ref.shape[1]
    W = o_ref.shape[2]
    x = x_ref[...]                                           # bf16 tile in VMEM
    acc = jnp.zeros(o_ref.shape, jnp.float32)
    for kh in range(3):
        for kw in range(3):
            # overlapping windows read from the VMEM-resident tile (no im2col)
            acc = acc + x[:, kh:kh + H, kw:kw + W, :] * w_ref[kh * 3 + kw, :]
    acc = acc + b_ref[0, :]
    # tanh-approx GELU (EUP tanh), fused into the epilogue.
    c = 0.7978845608028654  # sqrt(2/pi)
    y = 0.5 * acc * (1.0 + jnp.tanh(c * (acc + 0.044715 * acc * acc * acc)))
    o_ref[...] = y.astype(o_ref.dtype)


def dwconv_gelu(x_nhwc, w_dw, b_dw, *, out_dtype=jnp.bfloat16):
    """Depthwise 3x3 conv (stride 1, pad 1, bias) + GELU.  x: (B, H, W, C)."""
    B, H, W, C = x_nhwc.shape
    assert w_dw.shape == (3, 3, C) and b_dw.shape == (C,)

    Cp = _round_up(C, 128)
    if Cp % 512 == 0:
        tc = 512
    elif Cp % 256 == 0:
        tc = 256
    else:
        tc = 128

    xp = jnp.pad(x_nhwc.astype(jnp.bfloat16),
                 ((0, 0), (1, 1), (1, 1), (0, Cp - C)))
    w9 = jnp.pad(w_dw.reshape(9, C).astype(jnp.float32), ((0, 0), (0, Cp - C)))
    bp = jnp.pad(b_dw.reshape(1, C).astype(jnp.float32), ((0, 0), (0, Cp - C)))

    out = pl.pallas_call(
        _dwconv_gelu_kernel,
        out_shape=jax.ShapeDtypeStruct((B, H, W, Cp), out_dtype),
        grid_spec=pltpu.PrefetchScalarGridSpec(
            num_scalar_prefetch=0,
            grid=(B, Cp // tc),
            in_specs=[
                pl.BlockSpec((1, H + 2, W + 2, tc), lambda b, c: (b, 0, 0, c)),
                pl.BlockSpec((9, tc), lambda b, c: (0, c)),
                pl.BlockSpec((1, tc), lambda b, c: (0, c)),
            ],
            out_specs=pl.BlockSpec((1, H, W, tc), lambda b, c: (b, 0, 0, c)),
        ),
        compiler_params=pltpu.CompilerParams(
            dimension_semantics=("parallel", "parallel")),
    )(xp, w9, bp)
    return out[..., :C]


# -----------------------------------------------------------------------------
# Mlp forward: fc1 (+optional ReLU) -> DWConv + GELU -> fc2
# -----------------------------------------------------------------------------
@partial(jax.jit, static_argnames=("H", "W", "linear"))
def mlp_forward(x, params, H, W, linear=False):
    B, N, Cin = x.shape
    assert N == H * W
    Chid = params["w1"].shape[1]
    Cout = params["w2"].shape[1]

    # fc1 (+ ReLU when linear=True); intermediate kept in bf16.
    h = linear_bias_act(x.reshape(B * N, Cin), params["w1"], params["b1"],
                        act="relu" if linear else "none",
                        out_dtype=jnp.bfloat16)
    # (B, N, C) with n = h*W + w  <->  transpose(1,2).view(B, C, H, W) in torch.
    h = h.reshape(B, H, W, Chid)
    h = dwconv_gelu(h, params["wdw"], params["bdw"], out_dtype=jnp.bfloat16)
    # fc2 back to (B, N, Cout) in f32.
    out = linear_bias_act(h.reshape(B * N, Chid), params["w2"], params["b2"],
                          act="none", out_dtype=jnp.float32)
    return out.reshape(B, N, Cout)


# -----------------------------------------------------------------------------
# Pure-JAX reference (f32) for correctness checking
# -----------------------------------------------------------------------------
def mlp_reference(x, params, H, W, linear=False):
    B, N, Cin = x.shape
    h = x.reshape(B * N, Cin) @ params["w1"] + params["b1"]
    if linear:
        h = jnp.maximum(h, 0.0)
    Chid = h.shape[-1]
    hc = h.reshape(B, H, W, Chid)
    hp = jnp.pad(hc, ((0, 0), (1, 1), (1, 1), (0, 0)))
    acc = jnp.zeros_like(hc)
    for kh in range(3):
        for kw in range(3):
            acc = acc + hp[:, kh:kh + H, kw:kw + W, :] * params["wdw"][kh, kw]
    acc = acc + params["bdw"]
    c = 0.7978845608028654
    g = 0.5 * acc * (1.0 + jnp.tanh(c * (acc + 0.044715 * acc ** 3)))
    out = g.reshape(B * N, Chid) @ params["w2"] + params["b2"]
    return out.reshape(B, N, -1)


if __name__ == "__main__":
    key = jax.random.PRNGKey(0)
    B, H, W = 2, 16, 16
    in_features, hidden_features, out_features = 64, 128, 64
    N = H * W

    k1, k2, k3, k4, k5, k6, kx = jax.random.split(key, 7)
    # Forward-pass semantics don't depend on init values; small random biases
    # are used (instead of the module's zeros) so the bias path is exercised.
    params = {
        "w1": 0.02 * jax.random.normal(k1, (in_features, hidden_features), jnp.float32),
        "b1": 0.02 * jax.random.normal(k2, (hidden_features,), jnp.float32),
        "wdw": math.sqrt(2.0 / 9.0) * jax.random.normal(k3, (3, 3, hidden_features), jnp.float32),
        "bdw": 0.02 * jax.random.normal(k4, (hidden_features,), jnp.float32),
        "w2": 0.02 * jax.random.normal(k5, (hidden_features, out_features), jnp.float32),
        "b2": 0.02 * jax.random.normal(k6, (out_features,), jnp.float32),
    }
    x = jax.random.normal(kx, (B, N, in_features), jnp.float32)

    out = mlp_forward(x, params, H, W)
    out = jax.block_until_ready(out)
    assert out.shape == (B, N, out_features), out.shape
    assert bool(jnp.all(jnp.isfinite(out)))

    ref = mlp_reference(x, params, H, W)
    err = float(jnp.max(jnp.abs(out - ref)))
    assert err < 2e-2, f"max abs error vs reference: {err}"
    print("KERNEL_OK")
</pallas_src>

<mosaic_0001>
module attributes {stable_mosaic.version = 11 : i64} {
  func.func @_mm_bias_act_kernel(%arg0: i32, %arg1: i32, %arg2: i32, %arg3: memref<256x128xbf16, #tpu.memory_space<vmem>>, %arg4: memref<128x128xbf16, #tpu.memory_space<vmem>>, %arg5: memref<1x128xf32, #tpu.memory_space<vmem>>, %arg6: memref<256x128xbf16, #tpu.memory_space<vmem>>, %arg7: memref<256x128xf32, #tpu.memory_space<vmem>>) attributes {dimension_semantics = [#tpu.dimension_semantics<parallel>, #tpu.dimension_semantics<parallel>, #tpu.dimension_semantics<arbitrary>], iteration_bounds = array<i64: 2, 1, 1>, scalar_prefetch = 0 : i64, scratch_operands = 1 : i64, tpu.core_type = #tpu.core_type<tc>, window_params = [{transform_indices = @transform_0, window_bounds = array<i64: 256, 128>}, {transform_indices = @transform_1, window_bounds = array<i64: 128, 128>}, {transform_indices = @transform_2, window_bounds = array<i64: 1, 128>}, {transform_indices = @transform_3, window_bounds = array<i64: 256, 128>}]} {
    %c0_i32 = arith.constant 0 : i32
    %0 = arith.cmpi eq, %arg2, %c0_i32 : i32
    %1 = arith.extui %0 : i1 to i32
    %c0_i32_0 = arith.constant 0 : i32
    %2 = arith.cmpi ne, %1, %c0_i32_0 : i32
    scf.if %2 {
      %cst_10 = arith.constant 0.000000e+00 : f32
      %12 = vector.broadcast %cst_10 : f32 to vector<256x128xf32>
      %c0_11 = arith.constant 0 : index
      %c0_12 = arith.constant 0 : index
      %13 = vector.load %arg7[%c0_11, %c0_12] : memref<256x128xf32, #tpu.memory_space<vmem>>, vector<256x128xf32>
      tpu.vector_store %arg7[%c0_11, %c0_12], %12 {strides = array<i32>} : memref<256x128xf32, #tpu.memory_space<vmem>>, vector<256x128xf32>,
    } else {
    }
    %c0 = arith.constant 0 : index
    %c0_1 = arith.constant 0 : index
    %3 = vector.load %arg7[%c0, %c0_1] : memref<256x128xf32, #tpu.memory_space<vmem>>, vector<256x128xf32>
    %c0_2 = arith.constant 0 : index
    %c0_3 = arith.constant 0 : index
    %4 = vector.load %arg3[%c0_2, %c0_3] : memref<256x128xbf16, #tpu.memory_space<vmem>>, vector<256x128xbf16>
    %c0_4 = arith.constant 0 : index
    %c0_5 = arith.constant 0 : index
    %5 = vector.load %arg4[%c0_4, %c0_5] : memref<128x128xbf16, #tpu.memory_space<vmem>>, vector<128x128xbf16>
    %cst = arith.constant dense<0.000000e+00> : vector<256x128xf32>
    %6 = tpu.matmul %4, %5, %cst {dimension_numbers = #tpu.dot_dimension_numbers<[1], [0], [0], [1], [0, 0, 1, 1], [], []>} : vector<256x128xbf16>, vector<128x128xbf16>, vector<256x128xf32> -> vector<256x128xf32>
    %7 = arith.addf %3, %6 : vector<256x128xf32>
    %c0_6 = arith.constant 0 : index
    %c0_7 = arith.constant 0 : index
    %8 = vector.load %arg7[%c0_6, %c0_7] : memref<256x128xf32, #tpu.memory_space<vmem>>, vector<256x128xf32>
    tpu.vector_store %arg7[%c0_6, %c0_7], %7 {strides = array<i32>} : memref<256x128xf32, #tpu.memory_space<vmem>>, vector<256x128xf32>,
    %c0_i32_8 = arith.constant 0 : i32
    %9 = arith.cmpi eq, %arg2, %c0_i32_8 : i32
    %10 = arith.extui %9 : i1 to i32
    %c0_i32_9 = arith.constant 0 : i32
    %11 = arith.cmpi ne, %10, %c0_i32_9 : i32
    scf.if %11 {
      %c0_10 = arith.constant 0 : index
      %c0_11 = arith.constant 0 : index
      %12 = vector.load %arg7[%c0_10, %c0_11] : memref<256x128xf32, #tpu.memory_space<vmem>>, vector<256x128xf32>
      %c0_12 = arith.constant 0 : index
      %c0_13 = arith.constant 0 : index
      %13 = vector.load %arg5[%c0_12, %c0_13] : memref<1x128xf32, #tpu.memory_space<vmem>>, vector<1x128xf32>
      %14 = vector.broadcast %13 : vector<1x128xf32> to vector<256x128xf32>
      %15 = arith.addf %12, %14 : vector<256x128xf32>
      %16 = arith.truncf %15 : vector<256x128xf32> to vector<256x128xbf16>
      %c0_14 = arith.constant 0 : index
      %c0_15 = arith.constant 0 : index
      %17 = vector.load %arg6[%c0_14, %c0_15] : memref<256x128xbf16, #tpu.memory_space<vmem>>, vector<256x128xbf16>
      tpu.vector_store %arg6[%c0_14, %c0_15], %16 {strides = array<i32>} : memref<256x128xbf16, #tpu.memory_space<vmem>>, vector<256x128xbf16>,
    } else {
    }
    return
  }
  func.func @transform_0(%arg0: i32, %arg1: i32, %arg2: i32) -> (i32, i32) {
    %c0_i32 = arith.constant 0 : i32
    return %arg0, %arg2 : i32, i32
  }
  func.func @transform_1(%arg0: i32, %arg1: i32, %arg2: i32) -> (i32, i32) {
    %c0_i32 = arith.constant 0 : i32
    return %arg2, %arg1 : i32, i32
  }
  func.func @transform_2(%arg0: i32, %arg1: i32, %arg2: i32) -> (i32, i32) {
    %c0_i32 = arith.constant 0 : i32
    %c0_i32_0 = arith.constant 0 : i32
    return %c0_i32, %arg1 : i32, i32
  }
  func.func @transform_3(%arg0: i32, %arg1: i32, %arg2: i32) -> (i32, i32) {
    %c0_i32 = arith.constant 0 : i32
    return %arg0, %arg1 : i32, i32
  }
}

module attributes {stable_mosaic.version = 11 : i64} {
  func.func @_dwconv_gelu_kernel(%arg0: i32, %arg1: i32, %arg2: memref<1x18x18x128xbf16, #tpu.memory_space<vmem>>, %arg3: memref<9x128xf32, #tpu.memory_space<vmem>>, %arg4: memref<1x128xf32, #tpu.memory_space<vmem>>, %arg5: memref<1x16x16x128xbf16, #tpu.memory_space<vmem>>) attributes {dimension_semantics = [#tpu.dimension_semantics<parallel>, #tpu.dimension_semantics<parallel>], iteration_bounds = array<i64: 2, 1>, scalar_prefetch = 0 : i64, scratch_operands = 0 : i64, tpu.core_type = #tpu.core_type<tc>, window_params = [{transform_indices = @transform_0, window_bounds = array<i64: 1, 18, 18, 128>}, {transform_indices = @transform_1, window_bounds = array<i64: 9, 128>}, {transform_indices = @transform_2, window_bounds = array<i64: 1, 128>}, {transform_indices = @transform_3, window_bounds = array<i64: 1, 16, 16, 128>}]} {
    %c0 = arith.constant 0 : index
    %c0_0 = arith.constant 0 : index
    %c0_1 = arith.constant 0 : index
    %c0_2 = arith.constant 0 : index
    %0 = vector.load %arg2[%c0, %c0_0, %c0_1, %c0_2] : memref<1x18x18x128xbf16, #tpu.memory_space<vmem>>, vector<1x18x18x128xbf16>
    %cst = arith.constant 0.000000e+00 : f32
    %1 = vector.broadcast %cst : f32 to vector<1x16x16x128xf32>
    %2 = vector.extract_strided_slice %0 {offsets = [0, 0, 0, 0], sizes = [1, 16, 16, 128], strides = [1, 1, 1, 1]} : vector<1x18x18x128xbf16> to vector<1x16x16x128xbf16>
    %c0_3 = arith.constant 0 : index
    %c0_4 = arith.constant 0 : index
    %3 = vector.load %arg3[%c0_3, %c0_4] : memref<9x128xf32, #tpu.memory_space<vmem>>, vector<1x128xf32>
    %4 = vector.shape_cast %3 : vector<1x128xf32> to vector<128xf32>
    %5 = arith.extf %2 : vector<1x16x16x128xbf16> to vector<1x16x16x128xf32>
    %6 = vector.shape_cast %4 : vector<128xf32> to vector<1x1x1x128xf32>
    %7 = vector.broadcast %6 : vector<1x1x1x128xf32> to vector<1x16x16x128xf32>
    %8 = arith.mulf %5, %7 : vector<1x16x16x128xf32>
    %9 = arith.addf %1, %8 : vector<1x16x16x128xf32>
    %10 = vector.extract_strided_slice %0 {offsets = [0, 0, 1, 0], sizes = [1, 16, 16, 128], strides = [1, 1, 1, 1]} : vector<1x18x18x128xbf16> to vector<1x16x16x128xbf16>
    %c1 = arith.constant 1 : index
    %c0_5 = arith.constant 0 : index
    %11 = vector.load %arg3[%c1, %c0_5] : memref<9x128xf32, #tpu.memory_space<vmem>>, vector<1x128xf32>
    %12 = vector.shape_cast %11 : vector<1x128xf32> to vector<128xf32>
    %13 = arith.extf %10 : vector<1x16x16x128xbf16> to vector<1x16x16x128xf32>
    %14 = vector.shape_cast %12 : vector<128xf32> to vector<1x1x1x128xf32>
    %15 = vector.broadcast %14 : vector<1x1x1x128xf32> to vector<1x16x16x128xf32>
    %16 = arith.mulf %13, %15 : vector<1x16x16x128xf32>
    %17 = arith.addf %9, %16 : vector<1x16x16x128xf32>
    %18 = vector.extract_strided_slice %0 {offsets = [0, 0, 2, 0], sizes = [1, 16, 16, 128], strides = [1, 1, 1, 1]} : vector<1x18x18x128xbf16> to vector<1x16x16x128xbf16>
    %c2 = arith.constant 2 : index
    %c0_6 = arith.constant 0 : index
    %19 = vector.load %arg3[%c2, %c0_6] : memref<9x128xf32, #tpu.memory_space<vmem>>, vector<1x128xf32>
    %20 = vector.shape_cast %19 : vector<1x128xf32> to vector<128xf32>
    %21 = arith.extf %18 : vector<1x16x16x128xbf16> to vector<1x16x16x128xf32>
    %22 = vector.shape_cast %20 : vector<128xf32> to vector<1x1x1x128xf32>
    %23 = vector.broadcast %22 : vector<1x1x1x128xf32> to vector<1x16x16x128xf32>
    %24 = arith.mulf %21, %23 : vector<1x16x16x128xf32>
    %25 = arith.addf %17, %24 : vector<1x16x16x128xf32>
    %26 = vector.extract_strided_slice %0 {offsets = [0, 1, 0, 0], sizes = [1, 16, 16, 128], strides = [1, 1, 1, 1]} : vector<1x18x18x128xbf16> to vector<1x16x16x128xbf16>
    %c3 = arith.constant 3 : index
    %c0_7 = arith.constant 0 : index
    %27 = vector.load %arg3[%c3, %c0_7] : memref<9x128xf32, #tpu.memory_space<vmem>>, vector<1x128xf32>
    %28 = vector.shape_cast %27 : vector<1x128xf32> to vector<128xf32>
    %29 = arith.extf %26 : vector<1x16x16x128xbf16> to vector<1x16x16x128xf32>
    %30 = vector.shape_cast %28 : vector<128xf32> to vector<1x1x1x128xf32>
    %31 = vector.broadcast %30 : vector<1x1x1x128xf32> to vector<1x16x16x128xf32>
    %32 = arith.mulf %29, %31 : vector<1x16x16x128xf32>
    %33 = arith.addf %25, %32 : vector<1x16x16x128xf32>
    %34 = vector.extract_strided_slice %0 {offsets = [0, 1, 1, 0], sizes = [1, 16, 16, 128], strides = [1, 1, 1, 1]} : vector<1x18x18x128xbf16> to vector<1x16x16x128xbf16>
    %c4 = arith.constant 4 : index
    %c0_8 = arith.constant 0 : index
    %35 = vector.load %arg3[%c4, %c0_8] : memref<9x128xf32, #tpu.memory_space<vmem>>, vector<1x128xf32>
    %36 = vector.shape_cast %35 : vector<1x128xf32> to vector<128xf32>
    %37 = arith.extf %34 : vector<1x16x16x128xbf16> to vector<1x16x16x128xf32>
    %38 = vector.shape_cast %36 : vector<128xf32> to vector<1x1x1x128xf32>
    %39 = vector.broadcast %38 : vector<1x1x1x128xf32> to vector<1x16x16x128xf32>
    %40 = arith.mulf %37, %39 : vector<1x16x16x128xf32>
    %41 = arith.addf %33, %40 : vector<1x16x16x128xf32>
    %42 = vector.extract_strided_slice %0 {offsets = [0, 1, 2, 0], sizes = [1, 16, 16, 128], strides = [1, 1, 1, 1]} : vector<1x18x18x128xbf16> to vector<1x16x16x128xbf16>
    %c5 = arith.constant 5 : index
    %c0_9 = arith.constant 0 : index
    %43 = vector.load %arg3[%c5, %c0_9] : memref<9x128xf32, #tpu.memory_space<vmem>>, vector<1x128xf32>
    %44 = vector.shape_cast %43 : vector<1x128xf32> to vector<128xf32>
    %45 = arith.extf %42 : vector<1x16x16x128xbf16> to vector<1x16x16x128xf32>
    %46 = vector.shape_cast %44 : vector<128xf32> to vector<1x1x1x128xf32>
    %47 = vector.broadcast %46 : vector<1x1x1x128xf32> to vector<1x16x16x128xf32>
    %48 = arith.mulf %45, %47 : vector<1x16x16x128xf32>
    %49 = arith.addf %41, %48 : vector<1x16x16x128xf32>
    %50 = vector.extract_strided_slice %0 {offsets = [0, 2, 0, 0], sizes = [1, 16, 16, 128], strides = [1, 1, 1, 1]} : vector<1x18x18x128xbf16> to vector<1x16x16x128xbf16>
    %c6 = arith.constant 6 : index
    %c0_10 = arith.constant 0 : index
    %51 = vector.load %arg3[%c6, %c0_10] : memref<9x128xf32, #tpu.memory_space<vmem>>, vector<1x128xf32>
    %52 = vector.shape_cast %51 : vector<1x128xf32> to vector<128xf32>
    %53 = arith.extf %50 : vector<1x16x16x128xbf16> to vector<1x16x16x128xf32>
    %54 = vector.shape_cast %52 : vector<128xf32> to vector<1x1x1x128xf32>
    %55 = vector.broadcast %54 : vector<1x1x1x128xf32> to vector<1x16x16x128xf32>
    %56 = arith.mulf %53, %55 : vector<1x16x16x128xf32>
    %57 = arith.addf %49, %56 : vector<1x16x16x128xf32>
    %58 = vector.extract_strided_slice %0 {offsets = [0, 2, 1, 0], sizes = [1, 16, 16, 128], strides = [1, 1, 1, 1]} : vector<1x18x18x128xbf16> to vector<1x16x16x128xbf16>
    %c7 = arith.constant 7 : index
    %c0_11 = arith.constant 0 : index
    %59 = vector.load %arg3[%c7, %c0_11] : memref<9x128xf32, #tpu.memory_space<vmem>>, vector<1x128xf32>
    %60 = vector.shape_cast %59 : vector<1x128xf32> to vector<128xf32>
    %61 = arith.extf %58 : vector<1x16x16x128xbf16> to vector<1x16x16x128xf32>
    %62 = vector.shape_cast %60 : vector<128xf32> to vector<1x1x1x128xf32>
    %63 = vector.broadcast %62 : vector<1x1x1x128xf32> to vector<1x16x16x128xf32>
    %64 = arith.mulf %61, %63 : vector<1x16x16x128xf32>
    %65 = arith.addf %57, %64 : vector<1x16x16x128xf32>
    %66 = vector.extract_strided_slice %0 {offsets = [0, 2, 2, 0], sizes = [1, 16, 16, 128], strides = [1, 1, 1, 1]} : vector<1x18x18x128xbf16> to vector<1x16x16x128xbf16>
    %c8 = arith.constant 8 : index
    %c0_12 = arith.constant 0 : index
    %67 = vector.load %arg3[%c8, %c0_12] : memref<9x128xf32, #tpu.memory_space<vmem>>, vector<1x128xf32>
    %68 = vector.shape_cast %67 : vector<1x128xf32> to vector<128xf32>
    %69 = arith.extf %66 : vector<1x16x16x128xbf16> to vector<1x16x16x128xf32>
    %70 = vector.shape_cast %68 : vector<128xf32> to vector<1x1x1x128xf32>
    %71 = vector.broadcast %70 : vector<1x1x1x128xf32> to vector<1x16x16x128xf32>
    %72 = arith.mulf %69, %71 : vector<1x16x16x128xf32>
    %73 = arith.addf %65, %72 : vector<1x16x16x128xf32>
    %c0_13 = arith.constant 0 : index
    %c0_14 = arith.constant 0 : index
    %74 = vector.load %arg4[%c0_13, %c0_14] : memref<1x128xf32, #tpu.memory_space<vmem>>, vector<1x128xf32>
    %75 = vector.shape_cast %74 : vector<1x128xf32> to vector<128xf32>
    %76 = vector.shape_cast %75 : vector<128xf32> to vector<1x1x1x128xf32>
    %77 = vector.broadcast %76 : vector<1x1x1x128xf32> to vector<1x16x16x128xf32>
    %78 = arith.addf %73, %77 : vector<1x16x16x128xf32>
    %cst_15 = arith.constant 5.000000e-01 : f32
    %79 = vector.broadcast %cst_15 : f32 to vector<1x16x16x128xf32>
    %80 = arith.mulf %79, %78 : vector<1x16x16x128xf32>
    %cst_16 = arith.constant 4.471500e-02 : f32
    %81 = vector.broadcast %cst_16 : f32 to vector<1x16x16x128xf32>
    %82 = arith.mulf %81, %78 : vector<1x16x16x128xf32>
    %83 = arith.mulf %82, %78 : vector<1x16x16x128xf32>
    %84 = arith.mulf %83, %78 : vector<1x16x16x128xf32>
    %85 = arith.addf %78, %84 : vector<1x16x16x128xf32>
    %cst_17 = arith.constant 0.797884583 : f32
    %86 = vector.broadcast %cst_17 : f32 to vector<1x16x16x128xf32>
    %87 = arith.mulf %86, %85 : vector<1x16x16x128xf32>
    %88 = math.tanh %87 : vector<1x16x16x128xf32>
    %cst_18 = arith.constant 1.000000e+00 : f32
    %89 = vector.broadcast %cst_18 : f32 to vector<1x16x16x128xf32>
    %90 = arith.addf %89, %88 : vector<1x16x16x128xf32>
    %91 = arith.mulf %80, %90 : vector<1x16x16x128xf32>
    %92 = arith.truncf %91 : vector<1x16x16x128xf32> to vector<1x16x16x128xbf16>
    %c0_19 = arith.constant 0 : index
    %c0_20 = arith.constant 0 : index
    %c0_21 = arith.constant 0 : index
    %c0_22 = arith.constant 0 : index
    %93 = vector.load %arg5[%c0_19, %c0_20, %c0_21, %c0_22] : memref<1x16x16x128xbf16, #tpu.memory_space<vmem>>, vector<1x16x16x128xbf16>
    tpu.vector_store %arg5[%c0_19, %c0_20, %c0_21, %c0_22], %92 {strides = array<i32>} : memref<1x16x16x128xbf16, #tpu.memory_space<vmem>>, vector<1x16x16x128xbf16>,
    return
  }
  func.func @transform_0(%arg0: i32, %arg1: i32) -> (i32, i32, i32, i32) {
    %c0_i32 = arith.constant 0 : i32
    %c0_i32_0 = arith.constant 0 : i32
    %c0_i32_1 = arith.constant 0 : i32
    return %arg0, %c0_i32, %c0_i32_0, %arg1 : i32, i32, i32, i32
  }
  func.func @transform_1(%arg0: i32, %arg1: i32) -> (i32, i32) {
    %c0_i32 = arith.constant 0 : i32
    %c0_i32_0 = arith.constant 0 : i32
    return %c0_i32, %arg1 : i32, i32
  }
  func.func @transform_2(%arg0: i32, %arg1: i32) -> (i32, i32) {
    %c0_i32 = arith.constant 0 : i32
    %c0_i32_0 = arith.constant 0 : i32
    return %c0_i32, %arg1 : i32, i32
  }
  func.func @transform_3(%arg0: i32, %arg1: i32) -> (i32, i32, i32, i32) {
    %c0_i32 = arith.constant 0 : i32
    %c0_i32_0 = arith.constant 0 : i32
    %c0_i32_1 = arith.constant 0 : i32
    return %arg0, %c0_i32, %c0_i32_0, %arg1 : i32, i32, i32, i32
  }
}

module attributes {stable_mosaic.version = 11 : i64} {
  func.func @_mm_bias_act_kernel(%arg0: i32, %arg1: i32, %arg2: i32, %arg3: memref<256x128xbf16, #tpu.memory_space<vmem>>, %arg4: memref<128x128xbf16, #tpu.memory_space<vmem>>, %arg5: memref<1x128xf32, #tpu.memory_space<vmem>>, %arg6: memref<256x128xf32, #tpu.memory_space<vmem>>, %arg7: memref<256x128xf32, #tpu.memory_space<vmem>>) attributes {dimension_semantics = [#tpu.dimension_semantics<parallel>, #tpu.dimension_semantics<parallel>, #tpu.dimension_semantics<arbitrary>], iteration_bounds = array<i64: 2, 1, 1>, scalar_prefetch = 0 : i64, scratch_operands = 1 : i64, tpu.core_type = #tpu.core_type<tc>, window_params = [{transform_indices = @transform_0, window_bounds = array<i64: 256, 128>}, {transform_indices = @transform_1, window_bounds = array<i64: 128, 128>}, {transform_indices = @transform_2, window_bounds = array<i64: 1, 128>}, {transform_indices = @transform_3, window_bounds = array<i64: 256, 128>}]} {
    %c0_i32 = arith.constant 0 : i32
    %0 = arith.cmpi eq, %arg2, %c0_i32 : i32
    %1 = arith.extui %0 : i1 to i32
    %c0_i32_0 = arith.constant 0 : i32
    %2 = arith.cmpi ne, %1, %c0_i32_0 : i32
    scf.if %2 {
      %cst_10 = arith.constant 0.000000e+00 : f32
      %12 = vector.broadcast %cst_10 : f32 to vector<256x128xf32>
      %c0_11 = arith.constant 0 : index
      %c0_12 = arith.constant 0 : index
      %13 = vector.load %arg7[%c0_11, %c0_12] : memref<256x128xf32, #tpu.memory_space<vmem>>, vector<256x128xf32>
      tpu.vector_store %arg7[%c0_11, %c0_12], %12 {strides = array<i32>} : memref<256x128xf32, #tpu.memory_space<vmem>>, vector<256x128xf32>,
    } else {
    }
    %c0 = arith.constant 0 : index
    %c0_1 = arith.constant 0 : index
    %3 = vector.load %arg7[%c0, %c0_1] : memref<256x128xf32, #tpu.memory_space<vmem>>, vector<256x128xf32>
    %c0_2 = arith.constant 0 : index
    %c0_3 = arith.constant 0 : index
    %4 = vector.load %arg3[%c0_2, %c0_3] : memref<256x128xbf16, #tpu.memory_space<vmem>>, vector<256x128xbf16>
    %c0_4 = arith.constant 0 : index
    %c0_5 = arith.constant 0 : index
    %5 = vector.load %arg4[%c0_4, %c0_5] : memref<128x128xbf16, #tpu.memory_space<vmem>>, vector<128x128xbf16>
    %cst = arith.constant dense<0.000000e+00> : vector<256x128xf32>
    %6 = tpu.matmul %4, %5, %cst {dimension_numbers = #tpu.dot_dimension_numbers<[1], [0], [0], [1], [0, 0, 1, 1], [], []>} : vector<256x128xbf16>, vector<128x128xbf16>, vector<256x128xf32> -> vector<256x128xf32>
    %7 = arith.addf %3, %6 : vector<256x128xf32>
    %c0_6 = arith.constant 0 : index
    %c0_7 = arith.constant 0 : index
    %8 = vector.load %arg7[%c0_6, %c0_7] : memref<256x128xf32, #tpu.memory_space<vmem>>, vector<256x128xf32>
    tpu.vector_store %arg7[%c0_6, %c0_7], %7 {strides = array<i32>} : memref<256x128xf32, #tpu.memory_space<vmem>>, vector<256x128xf32>,
    %c0_i32_8 = arith.constant 0 : i32
    %9 = arith.cmpi eq, %arg2, %c0_i32_8 : i32
    %10 = arith.extui %9 : i1 to i32
    %c0_i32_9 = arith.constant 0 : i32
    %11 = arith.cmpi ne, %10, %c0_i32_9 : i32
    scf.if %11 {
      %c0_10 = arith.constant 0 : index
      %c0_11 = arith.constant 0 : index
      %12 = vector.load %arg7[%c0_10, %c0_11] : memref<256x128xf32, #tpu.memory_space<vmem>>, vector<256x128xf32>
      %c0_12 = arith.constant 0 : index
      %c0_13 = arith.constant 0 : index
      %13 = vector.load %arg5[%c0_12, %c0_13] : memref<1x128xf32, #tpu.memory_space<vmem>>, vector<1x128xf32>
      %14 = vector.broadcast %13 : vector<1x128xf32> to vector<256x128xf32>
      %15 = arith.addf %12, %14 : vector<256x128xf32>
      %c0_14 = arith.constant 0 : index
      %c0_15 = arith.constant 0 : index
      %16 = vector.load %arg6[%c0_14, %c0_15] : memref<256x128xf32, #tpu.memory_space<vmem>>, vector<256x128xf32>
      tpu.vector_store %arg6[%c0_14, %c0_15], %15 {strides = array<i32>} : memref<256x128xf32, #tpu.memory_space<vmem>>, vector<256x128xf32>,
    } else {
    }
    return
  }
  func.func @transform_0(%arg0: i32, %arg1: i32, %arg2: i32) -> (i32, i32) {
    %c0_i32 = arith.constant 0 : i32
    return %arg0, %arg2 : i32, i32
  }
  func.func @transform_1(%arg0: i32, %arg1: i32, %arg2: i32) -> (i32, i32) {
    %c0_i32 = arith.constant 0 : i32
    return %arg2, %arg1 : i32, i32
  }
  func.func @transform_2(%arg0: i32, %arg1: i32, %arg2: i32) -> (i32, i32) {
    %c0_i32 = arith.constant 0 : i32
    %c0_i32_0 = arith.constant 0 : i32
    return %c0_i32, %arg1 : i32, i32
  }
  func.func @transform_3(%arg0: i32, %arg1: i32, %arg2: i32) -> (i32, i32) {
    %c0_i32 = arith.constant 0 : i32
    return %arg0, %arg1 : i32, i32
  }
}

</mosaic_0001>

<bundles_post_ra>
// kernel: mlp_forward.5
= control target key start
LH: loop header
LB: loop body
LE: loop exit
PB: predicated region body
PF: predicated region fallthrough
CT: control target
= control target key end

     0   :  { %s1112_s12 = smov 0   ;;  %s1114_s13 = smov 0   ;;  %s1265_s0 = inlined_call_operand.vmem [shape: bf16[512,128], index: 0, kind: input, shape index: {}]   ;;  %s1266_s1 = inlined_call_operand.vmem [shape: bf16[128,128], index: 1, kind: input, shape index: {}]   ;;  %s1267_s2 = inlined_call_operand.vmem [shape: f32[1,128], index: 2, kind: input, shape index: {}]   ;;  %s1268_s3 = inlined_call_operand.vmem [shape: f32[512,128], index: 3, kind: output, shape index: {}]  }
   0x1   :  { %s1116_s14 = smov 0  }
   0x2 LB: > { %s32_s15 = sadd.s32 1, %s1086_s13  ;;  %p892_p0 = scmp.ge.s32.totalorder %s1090_s14, 1  ;;  %s1090_s14 = sphi %s1116_s14, %s13_s14   ;;  %s1086_s13 = sphi %s1114_s13, %s1270_s13   ;;  %s1082_s12 = sphi %s1112_s12, %s1269_s12  }
   0x3   : > { %p34_p1 = scmp.ge.s32.totalorder %s32_s15, 2  ;;  %p188_p2 = scmp.lt.s32.totalorder %s1090_s14, 3 }
   0x5   : > { %s1272_s15 = smov (%p34_p1, %s32_s15), 0  ;;  %p189_p3 = pnand %p892_p0, %p188_p2 }
   0x6   : > { %s893_s24 = sshll.u32 (!%p189_p3), %s1082_s12, 5 }
   0x7   : > { %192 = sbr.rel (%p189_p3) target bundleno = 237 (0xed), region = 32  ;;  %p230_p4 = scmp.lt.s32.totalorder (!%p189_p3), %s893_s24, 63 }
   0xc   : > { %v1018_v0 = vld [vmem:[%s1266_s1 + $0x38] sm:$0xff]  ;;  %v1017_v1 = vld [vmem:[%s1266_s1 + $0x30] sm:$0xff]  ;;  %v1016_v2 = vld [vmem:[%s1266_s1 + $0x28] sm:$0xff]  ;;  %s1274_s24 = smov (!%p230_p4, %s893_s24), 63 }
   0xd   : > { %519 = vmatpush.bf16.msra.mxu0 %v1018_v0  ;;  %1019 = vmatpush.bf16.msra.mxu1 %v1018_v0  ;;  %v1015_v3 = vld [vmem:[%s1266_s1 + $0x20] sm:$0xff]  ;;  %v1014_v4 = vld [vmem:[%s1266_s1 + $0x18] sm:$0xff]  ;;  %v1013_v5 = vld [vmem:[%s1266_s1 + $0x10] sm:$0xff]  ;;  %s894_s4 = sshll.u32 %s1274_s24, 2  ;;  %s896_s10 = sshll.u32 %s1274_s24, 3 }
   0xe   : > { %1020 = vmatpush.bf16.msra.mxu2 %v1018_v0  ;;  %1021 = vmatpush.bf16.msra.mxu3 %v1018_v0  ;;  %v1012_v6 = vld [vmem:[%s1266_s1 + $0x8] sm:$0xff]  ;;  %v1011_v7 = vld [vmem:[%s1266_s1] sm:$0xff]  ;;  %s1163_s9 = scalar_lea.vmem %s1265_s0, %s894_s4  ;;  %s1190_s18 = scalar_lea.vmem %s1268_s3, %s896_s10 }
   0xf   : > { %v995_v8 = vld [vmem:[%s1163_s9] sm:$0xff]  ;;  %v996_v12 = vld [vmem:[%s1163_s9 + $0x8] sm:$0xff]  ;;  %v997_v16 = vld [vmem:[%s1163_s9 + $0x10] sm:$0xff] }
  0x10   : > { %v999_v9 = vld [vmem:[%s1163_s9 + $0x20] sm:$0xff]  ;;  %v1000_v13 = vld [vmem:[%s1163_s9 + $0x28] sm:$0xff]  ;;  %v1001_v17 = vld [vmem:[%s1163_s9 + $0x30] sm:$0xff] }
  0x11   : > { %520 = vmatpush.bf16.msra.mxu0 %v1017_v1  ;;  %1022 = vmatpush.bf16.msra.mxu1 %v1017_v1  ;;  %v1003_v10 = vld [vmem:[%s1163_s9 + $0x40] sm:$0xff]  ;;  %v1004_v14 = vld [vmem:[%s1163_s9 + $0x48] sm:$0xff]  ;;  %v1005_v18 = vld [vmem:[%s1163_s9 + $0x50] sm:$0xff] }
  0x12   : > { %1023 = vmatpush.bf16.msra.mxu2 %v1017_v1  ;;  %1024 = vmatpush.bf16.msra.mxu3 %v1017_v1  ;;  %v1007_v11 = vld [vmem:[%s1163_s9 + $0x60] sm:$0xff]  ;;  %v1008_v15 = vld [vmem:[%s1163_s9 + $0x68] sm:$0xff]  ;;  %v1009_v19 = vld [vmem:[%s1163_s9 + $0x70] sm:$0xff] }
  0x13   : > { %v998_v20 = vld [vmem:[%s1163_s9 + $0x18] sm:$0xff]  ;;  %v1185_v24 = vld [vmem:[%s1267_s2] ss:$0 sm:$0xff] }
  0x14   : > { %v1002_v21 = vld [vmem:[%s1163_s9 + $0x38] sm:$0xff] }
  0x15   : > { %521 = vmatpush.bf16.msra.mxu0 %v1016_v2  ;;  %1025 = vmatpush.bf16.msra.mxu1 %v1016_v2  ;;  %v1006_v22 = vld [vmem:[%s1163_s9 + $0x58] sm:$0xff] }
  0x16   : > { %1026 = vmatpush.bf16.msra.mxu2 %v1016_v2  ;;  %1027 = vmatpush.bf16.msra.mxu3 %v1016_v2  ;;  %v1010_v23 = vld [vmem:[%s1163_s9 + $0x78] sm:$0xff] }
  0x19   : > { %522 = vmatpush.bf16.msra.mxu0 %v1015_v3  ;;  %1028 = vmatpush.bf16.msra.mxu1 %v1015_v3 }
  0x1a   : > { %1029 = vmatpush.bf16.msra.mxu2 %v1015_v3  ;;  %1030 = vmatpush.bf16.msra.mxu3 %v1015_v3 }
  0x1d   : > { %523 = vmatpush.bf16.msra.mxu0 %v1014_v4  ;;  %1031 = vmatpush.bf16.msra.mxu1 %v1014_v4 }
  0x1e   : > { %1032 = vmatpush.bf16.msra.mxu2 %v1014_v4  ;;  %1033 = vmatpush.bf16.msra.mxu3 %v1014_v4 }
  0x21   : > { %524 = vmatpush.bf16.msra.mxu0 %v1013_v5  ;;  %1034 = vmatpush.bf16.msra.mxu1 %v1013_v5 }
  0x22   : > { %1035 = vmatpush.bf16.msra.mxu2 %v1013_v5  ;;  %1036 = vmatpush.bf16.msra.mxu3 %v1013_v5 }
  0x25   : > { %525 = vmatpush.bf16.msra.mxu0 %v1012_v6  ;;  %1037 = vmatpush.bf16.msra.mxu1 %v1012_v6 }
  0x26   : > { %1038 = vmatpush.bf16.msra.mxu2 %v1012_v6  ;;  %1039 = vmatpush.bf16.msra.mxu3 %v1012_v6 }
  0x29   : > { %526 = vmatpush.bf16.msra.mxu0 %v1011_v7  ;;  %1040 = vmatpush.bf16.msra.mxu1 %v1011_v7 }
  0x2a   : > { %1041 = vmatpush.bf16.msra.mxu2 %v1011_v7  ;;  %1042 = vmatpush.bf16.msra.mxu3 %v1011_v7 }
  0x2c   : > { %527 = vmatmul.bf16.vlgmr.msra.gmra.mxu0 %v995_v8  ;;  %547 = vmatmul.bf16.vlgmr.msra.gmra.mxu1 %v999_v9 }
  0x2d   : > { %567 = vmatmul.bf16.vlgmr.msra.gmra.mxu2 %v1003_v10  ;;  %587 = vmatmul.bf16.vlgmr.msra.gmra.mxu3 %v1007_v11 }
  0x3c   : > { %532 = vmatmul.bf16.gmra.mxu0 %v996_v12  ;;  %552 = vmatmul.bf16.gmra.mxu1 %v1000_v13 }
  0x3d   : > { %572 = vmatmul.bf16.gmra.mxu2 %v1004_v14  ;;  %592 = vmatmul.bf16.gmra.mxu3 %v1008_v15 }
  0x4c   : > { %537 = vmatmul.bf16.gmra.mxu0 %v997_v16  ;;  %557 = vmatmul.bf16.gmra.mxu1 %v1001_v17 }
  0x4d   : > { %577 = vmatmul.bf16.gmra.mxu2 %v1005_v18  ;;  %597 = vmatmul.bf16.gmra.mxu3 %v1009_v19 }
  0x5c   : > { %542 = vmatmul.bf16.gmra.mxu0 %v998_v20  ;;  %562 = vmatmul.bf16.gmra.mxu1 %v1002_v21 }
  0x5d   : > { %582 = vmatmul.bf16.gmra.mxu2 %v1006_v22  ;;  %602 = vmatmul.bf16.gmra.mxu3 %v1010_v23 }
  0xa9   : > { %v528_v25 = vpop.f32.mrf.mxu0  ;;  %v548_v26 = vpop.f32.mrf.mxu1 }
  0xaa   : > { %v711_v27 = vadd.f32 %v1185_v24, %v528_v25  ;;  %v719_v28 = vadd.f32 %v1185_v24, %v548_v26 }
  0xac   : > { %743 = vst [vmem:[%s1190_s18] sm:$0xff] %v711_v27 }
  0xad   : > { %751 = vst [vmem:[%s1190_s18 + $0x40] sm:$0xff] %v719_v28 }
  0xb0   : > { %v568_v29 = vpop.f32.mrf.mxu2  ;;  %v588_v30 = vpop.f32.mrf.mxu3 }
  0xb1   : > { %v727_v31 = vadd.f32 %v1185_v24, %v568_v29  ;;  %v735_v32 = vadd.f32 %v1185_v24, %v588_v30  ;;  %v530_v33 = vpop.f32.mrf.mxu0  ;;  %v550_v34 = vpop.f32.mrf.mxu1 }
  0xb2   : > { %v712_v35 = vadd.f32 %v1185_v24, %v530_v33  ;;  %v720_v36 = vadd.f32 %v1185_v24, %v550_v34 }
  0xb3   : > { %759 = vst [vmem:[%s1190_s18 + $0x80] sm:$0xff] %v727_v31 }
  0xb4   : > { %767 = vst [vmem:[%s1190_s18 + $0xc0] sm:$0xff] %v735_v32 }
  0xb5   : > { %744 = vst [vmem:[%s1190_s18 + $0x8] sm:$0xff] %v712_v35 }
  0xb6   : > { %752 = vst [vmem:[%s1190_s18 + $0x48] sm:$0xff] %v720_v36 }
  0xb8   : > { %v570_v37 = vpop.f32.mrf.mxu2  ;;  %v590_v38 = vpop.f32.mrf.mxu3 }
  0xb9   : > { %v728_v39 = vadd.f32 %v1185_v24, %v570_v37  ;;  %v736_v40 = vadd.f32 %v1185_v24, %v590_v38  ;;  %v533_v41 = vpop.f32.mrf.mxu0  ;;  %v553_v42 = vpop.f32.mrf.mxu1 }
  0xba   : > { %v713_v43 = vadd.f32 %v1185_v24, %v533_v41  ;;  %v721_v44 = vadd.f32 %v1185_v24, %v553_v42 }
  0xbb   : > { %760 = vst [vmem:[%s1190_s18 + $0x88] sm:$0xff] %v728_v39 }
  0xbc   : > { %768 = vst [vmem:[%s1190_s18 + $0xc8] sm:$0xff] %v736_v40 }
  0xbd   : > { %745 = vst [vmem:[%s1190_s18 + $0x10] sm:$0xff] %v713_v43 }
  0xbe   : > { %753 = vst [vmem:[%s1190_s18 + $0x50] sm:$0xff] %v721_v44 }
  0xc0   : > { %v573_v45 = vpop.f32.mrf.mxu2  ;;  %v593_v46 = vpop.f32.mrf.mxu3 }
  0xc1   : > { %v729_v47 = vadd.f32 %v1185_v24, %v573_v45  ;;  %v737_v48 = vadd.f32 %v1185_v24, %v593_v46  ;;  %v535_v49 = vpop.f32.mrf.mxu0  ;;  %v555_v50 = vpop.f32.mrf.mxu1 }
  0xc2   : > { %v714_v51 = vadd.f32 %v1185_v24, %v535_v49  ;;  %v722_v52 = vadd.f32 %v1185_v24, %v555_v50 }
  0xc3   : > { %761 = vst [vmem:[%s1190_s18 + $0x90] sm:$0xff] %v729_v47 }
  0xc4   : > { %769 = vst [vmem:[%s1190_s18 + $0xd0] sm:$0xff] %v737_v48 }
  0xc5   : > { %746 = vst [vmem:[%s1190_s18 + $0x18] sm:$0xff] %v714_v51 }
  0xc6   : > { %754 = vst [vmem:[%s1190_s18 + $0x58] sm:$0xff] %v722_v52 }
  0xc8   : > { %v575_v53 = vpop.f32.mrf.mxu2  ;;  %v595_v54 = vpop.f32.mrf.mxu3 }
  0xc9   : > { %v730_v55 = vadd.f32 %v1185_v24, %v575_v53  ;;  %v738_v56 = vadd.f32 %v1185_v24, %v595_v54  ;;  %v538_v57 = vpop.f32.mrf.mxu0  ;;  %v558_v58 = vpop.f32.mrf.mxu1 }
  0xca   : > { %v715_v59 = vadd.f32 %v1185_v24, %v538_v57  ;;  %v723_v60 = vadd.f32 %v1185_v24, %v558_v58 }
  0xcb   : > { %762 = vst [vmem:[%s1190_s18 + $0x98] sm:$0xff] %v730_v55 }
  0xcc   : > { %770 = vst [vmem:[%s1190_s18 + $0xd8] sm:$0xff] %v738_v56 }
  0xcd   : > { %747 = vst [vmem:[%s1190_s18 + $0x20] sm:$0xff] %v715_v59 }
  0xce   : > { %755 = vst [vmem:[%s1190_s18 + $0x60] sm:$0xff] %v723_v60 }
  0xd0   : > { %v578_v61 = vpop.f32.mrf.mxu2  ;;  %v598_v62 = vpop.f32.mrf.mxu3 }
  0xd1   : > { %v731_v63 = vadd.f32 %v1185_v24, %v578_v61  ;;  %v739_v0 = vadd.f32 %v1185_v24, %v598_v62  ;;  %v540_v1 = vpop.f32.mrf.mxu0  ;;  %v560_v2 = vpop.f32.mrf.mxu1 }
  0xd2   : > { %v716_v3 = vadd.f32 %v1185_v24, %v540_v1  ;;  %v724_v4 = vadd.f32 %v1185_v24, %v560_v2 }
  0xd3   : > { %763 = vst [vmem:[%s1190_s18 + $0xa0] sm:$0xff] %v731_v63 }
  0xd4   : > { %771 = vst [vmem:[%s1190_s18 + $0xe0] sm:$0xff] %v739_v0 }
  0xd5   : > { %748 = vst [vmem:[%s1190_s18 + $0x28] sm:$0xff] %v716_v3 }
  0xd6   : > { %756 = vst [vmem:[%s1190_s18 + $0x68] sm:$0xff] %v724_v4 }
  0xd8   : > { %v580_v5 = vpop.f32.mrf.mxu2  ;;  %v600_v6 = vpop.f32.mrf.mxu3 }
  0xd9   : > { %v732_v7 = vadd.f32 %v1185_v24, %v580_v5  ;;  %v740_v8 = vadd.f32 %v1185_v24, %v600_v6  ;;  %v543_v9 = vpop.f32.mrf.mxu0  ;;  %v563_v10 = vpop.f32.mrf.mxu1 }
  0xda   : > { %v717_v11 = vadd.f32 %v1185_v24, %v543_v9  ;;  %v725_v12 = vadd.f32 %v1185_v24, %v563_v10 }
  0xdb   : > { %764 = vst [vmem:[%s1190_s18 + $0xa8] sm:$0xff] %v732_v7 }
  0xdc   : > { %772 = vst [vmem:[%s1190_s18 + $0xe8] sm:$0xff] %v740_v8 }
  0xdd   : > { %749 = vst [vmem:[%s1190_s18 + $0x30] sm:$0xff] %v717_v11 }
  0xde   : > { %757 = vst [vmem:[%s1190_s18 + $0x70] sm:$0xff] %v725_v12 }
  0xe0   : > { %v583_v13 = vpop.f32.mrf.mxu2  ;;  %v603_v14 = vpop.f32.mrf.mxu3 }
  0xe1   : > { %v733_v15 = vadd.f32 %v1185_v24, %v583_v13  ;;  %v741_v16 = vadd.f32 %v1185_v24, %v603_v14  ;;  %v545_v17 = vpop.f32.mrf.mxu0  ;;  %v565_v18 = vpop.f32.mrf.mxu1 }
  0xe2   : > { %v718_v19 = vadd.f32 %v1185_v24, %v545_v17  ;;  %v726_v20 = vadd.f32 %v1185_v24, %v565_v18 }
  0xe3   : > { %765 = vst [vmem:[%s1190_s18 + $0xb0] sm:$0xff] %v733_v15 }
  0xe4   : > { %773 = vst [vmem:[%s1190_s18 + $0xf0] sm:$0xff] %v741_v16 }
  0xe5   : > { %750 = vst [vmem:[%s1190_s18 + $0x38] sm:$0xff] %v718_v19 }
  0xe6   : > { %758 = vst [vmem:[%s1190_s18 + $0x78] sm:$0xff] %v726_v20 }
  0xe8   : > { %v585_v21 = vpop.f32.mrf.mxu2  ;;  %v605_v22 = vpop.f32.mrf.mxu3 }
  0xe9   : > { %v734_v23 = vadd.f32 %v1185_v24, %v585_v21  ;;  %v742_v25 = vadd.f32 %v1185_v24, %v605_v22 }
  0xeb   : > { %766 = vst [vmem:[%s1190_s18 + $0xb8] sm:$0xff] %v734_v23 }
  0xec   : > { %774 = vst [vmem:[%s1190_s18 + $0xf8] sm:$0xff] %v742_v25 }
  0xed PF: > { %s13_s14 = sadd.s32 1, %s1090_s14   ;;  %s1269_s12 = smov %s1086_s13 }
  0xee   : > { %p10_p5 = scmp.ge.s32.totalorder %s13_s14, 4   ;;  %s1270_s13 = smov %s1272_s15 }
  0xf0   :  { %12 = sbr.rel (!%p10_p5) target bundleno = 2 (0x2), region = 76 }

// kernel: mlp_forward.3
= control target key start
LH: loop header
LB: loop body
LE: loop exit
PB: predicated region body
PF: predicated region fallthrough
CT: control target
= control target key end

     0   :  { %s1239_s12 = smov 0   ;;  %s1241_s13 = smov 0   ;;  %s1379_s0 = inlined_call_operand.vmem [shape: bf16[512,128], index: 0, kind: input, shape index: {}]   ;;  %s1380_s1 = inlined_call_operand.vmem [shape: bf16[128,128], index: 1, kind: input, shape index: {}]   ;;  %s1381_s2 = inlined_call_operand.vmem [shape: f32[1,128], index: 2, kind: input, shape index: {}]   ;;  %s1382_s3 = inlined_call_operand.vmem [shape: bf16[512,128], index: 3, kind: output, shape index: {}]  }
   0x1   :  { %s1243_s14 = smov 0  }
   0x2 LB: > { %s32_s15 = sadd.s32 1, %s1213_s13  ;;  %p924_p0 = scmp.ge.s32.totalorder %s1217_s14, 1  ;;  %s1217_s14 = sphi %s1243_s14, %s13_s14   ;;  %s1213_s13 = sphi %s1241_s13, %s1384_s13   ;;  %s1209_s12 = sphi %s1239_s12, %s1383_s12  }
   0x3   : > { %p34_p1 = scmp.ge.s32.totalorder %s32_s15, 2  ;;  %p188_p2 = scmp.lt.s32.totalorder %s1217_s14, 3 }
   0x5   : > { %s1386_s15 = smov (%p34_p1, %s32_s15), 0  ;;  %p189_p3 = pnand %p924_p0, %p188_p2 }
   0x6   : > { %s925_s24 = sshll.u32 (!%p189_p3), %s1209_s12, 5 }
   0x7   : > { %192 = sbr.rel (%p189_p3) target bundleno = 239 (0xef), region = 32  ;;  %p230_p4 = scmp.lt.s32.totalorder (!%p189_p3), %s925_s24, 63 }
   0xc   : > { %v1050_v0 = vld [vmem:[%s1380_s1 + $0x38] sm:$0xff]  ;;  %v1049_v1 = vld [vmem:[%s1380_s1 + $0x30] sm:$0xff]  ;;  %v1048_v2 = vld [vmem:[%s1380_s1 + $0x28] sm:$0xff]  ;;  %s1388_s24 = smov (!%p230_p4, %s925_s24), 63 }
   0xd   : > { %519 = vmatpush.bf16.msra.mxu0 %v1050_v0  ;;  %1146 = vmatpush.bf16.msra.mxu1 %v1050_v0  ;;  %v1047_v3 = vld [vmem:[%s1380_s1 + $0x20] sm:$0xff]  ;;  %v1046_v4 = vld [vmem:[%s1380_s1 + $0x18] sm:$0xff]  ;;  %v1045_v5 = vld [vmem:[%s1380_s1 + $0x10] sm:$0xff]  ;;  %s926_s4 = sshll.u32 %s1388_s24, 2 }
   0xe   : > { %1147 = vmatpush.bf16.msra.mxu2 %v1050_v0  ;;  %1148 = vmatpush.bf16.msra.mxu3 %v1050_v0  ;;  %v1044_v6 = vld [vmem:[%s1380_s1 + $0x8] sm:$0xff]  ;;  %v1043_v7 = vld [vmem:[%s1380_s1] sm:$0xff]  ;;  %s1292_s9 = scalar_lea.vmem %s1379_s0, %s926_s4  ;;  %s1324_s17 = scalar_lea.vmem %s1382_s3, %s926_s4 }
   0xf   : > { %v1027_v8 = vld [vmem:[%s1292_s9] sm:$0xff]  ;;  %v1028_v12 = vld [vmem:[%s1292_s9 + $0x8] sm:$0xff]  ;;  %v1029_v16 = vld [vmem:[%s1292_s9 + $0x10] sm:$0xff] }
  0x10   : > { %v1031_v9 = vld [vmem:[%s1292_s9 + $0x20] sm:$0xff]  ;;  %v1032_v13 = vld [vmem:[%s1292_s9 + $0x28] sm:$0xff]  ;;  %v1033_v17 = vld [vmem:[%s1292_s9 + $0x30] sm:$0xff] }
  0x11   : > { %520 = vmatpush.bf16.msra.mxu0 %v1049_v1  ;;  %1149 = vmatpush.bf16.msra.mxu1 %v1049_v1  ;;  %v1035_v10 = vld [vmem:[%s1292_s9 + $0x40] sm:$0xff]  ;;  %v1036_v14 = vld [vmem:[%s1292_s9 + $0x48] sm:$0xff]  ;;  %v1037_v18 = vld [vmem:[%s1292_s9 + $0x50] sm:$0xff] }
  0x12   : > { %1150 = vmatpush.bf16.msra.mxu2 %v1049_v1  ;;  %1151 = vmatpush.bf16.msra.mxu3 %v1049_v1  ;;  %v1039_v11 = vld [vmem:[%s1292_s9 + $0x60] sm:$0xff]  ;;  %v1040_v15 = vld [vmem:[%s1292_s9 + $0x68] sm:$0xff]  ;;  %v1041_v19 = vld [vmem:[%s1292_s9 + $0x70] sm:$0xff] }
  0x13   : > { %v1030_v20 = vld [vmem:[%s1292_s9 + $0x18] sm:$0xff]  ;;  %v1313_v26 = vld [vmem:[%s1381_s2] ss:$0 sm:$0xff] }
  0x14   : > { %v1034_v21 = vld [vmem:[%s1292_s9 + $0x38] sm:$0xff] }
  0x15   : > { %521 = vmatpush.bf16.msra.mxu0 %v1048_v2  ;;  %1152 = vmatpush.bf16.msra.mxu1 %v1048_v2  ;;  %v1038_v22 = vld [vmem:[%s1292_s9 + $0x58] sm:$0xff] }
  0x16   : > { %1153 = vmatpush.bf16.msra.mxu2 %v1048_v2  ;;  %1154 = vmatpush.bf16.msra.mxu3 %v1048_v2  ;;  %v1042_v23 = vld [vmem:[%s1292_s9 + $0x78] sm:$0xff] }
  0x19   : > { %522 = vmatpush.bf16.msra.mxu0 %v1047_v3  ;;  %1155 = vmatpush.bf16.msra.mxu1 %v1047_v3 }
  0x1a   : > { %1156 = vmatpush.bf16.msra.mxu2 %v1047_v3  ;;  %1157 = vmatpush.bf16.msra.mxu3 %v1047_v3 }
  0x1d   : > { %523 = vmatpush.bf16.msra.mxu0 %v1046_v4  ;;  %1158 = vmatpush.bf16.msra.mxu1 %v1046_v4 }
  0x1e   : > { %1159 = vmatpush.bf16.msra.mxu2 %v1046_v4  ;;  %1160 = vmatpush.bf16.msra.mxu3 %v1046_v4 }
  0x21   : > { %524 = vmatpush.bf16.msra.mxu0 %v1045_v5  ;;  %1161 = vmatpush.bf16.msra.mxu1 %v1045_v5 }
  0x22   : > { %1162 = vmatpush.bf16.msra.mxu2 %v1045_v5  ;;  %1163 = vmatpush.bf16.msra.mxu3 %v1045_v5 }
  0x25   : > { %525 = vmatpush.bf16.msra.mxu0 %v1044_v6  ;;  %1164 = vmatpush.bf16.msra.mxu1 %v1044_v6 }
  0x26   : > { %1165 = vmatpush.bf16.msra.mxu2 %v1044_v6  ;;  %1166 = vmatpush.bf16.msra.mxu3 %v1044_v6 }
  0x29   : > { %526 = vmatpush.bf16.msra.mxu0 %v1043_v7  ;;  %1167 = vmatpush.bf16.msra.mxu1 %v1043_v7 }
  0x2a   : > { %1168 = vmatpush.bf16.msra.mxu2 %v1043_v7  ;;  %1169 = vmatpush.bf16.msra.mxu3 %v1043_v7 }
  0x2c   : > { %527 = vmatmul.bf16.vlgmr.msra.gmra.mxu0 %v1027_v8  ;;  %547 = vmatmul.bf16.vlgmr.msra.gmra.mxu1 %v1031_v9 }
  0x2d   : > { %567 = vmatmul.bf16.vlgmr.msra.gmra.mxu2 %v1035_v10  ;;  %587 = vmatmul.bf16.vlgmr.msra.gmra.mxu3 %v1039_v11 }
  0x3c   : > { %532 = vmatmul.bf16.gmra.mxu0 %v1028_v12  ;;  %552 = vmatmul.bf16.gmra.mxu1 %v1032_v13 }
  0x3d   : > { %572 = vmatmul.bf16.gmra.mxu2 %v1036_v14  ;;  %592 = vmatmul.bf16.gmra.mxu3 %v1040_v15 }
  0x4c   : > { %537 = vmatmul.bf16.gmra.mxu0 %v1029_v16  ;;  %557 = vmatmul.bf16.gmra.mxu1 %v1033_v17 }
  0x4d   : > { %577 = vmatmul.bf16.gmra.mxu2 %v1037_v18  ;;  %597 = vmatmul.bf16.gmra.mxu3 %v1041_v19 }
  0x5c   : > { %542 = vmatmul.bf16.gmra.mxu0 %v1030_v20  ;;  %562 = vmatmul.bf16.gmra.mxu1 %v1034_v21 }
  0x5d   : > { %582 = vmatmul.bf16.gmra.mxu2 %v1038_v22  ;;  %602 = vmatmul.bf16.gmra.mxu3 %v1042_v23 }
  0xa9   : > { %v528_v24 = vpop.f32.mrf.mxu0  ;;  %v548_v25 = vpop.f32.mrf.mxu1 }
  0xaa   : > { %v711_v31 = vadd.f32 %v1313_v26, %v528_v24  ;;  %v719_v32 = vadd.f32 %v1313_v26, %v548_v25 }
  0xb0   : > { %v568_v27 = vpop.f32.mrf.mxu2  ;;  %v588_v28 = vpop.f32.mrf.mxu3 }
  0xb1   : > { %v530_v29 = vpop.f32.mrf.mxu0  ;;  %v550_v30 = vpop.f32.mrf.mxu1  ;;  %v727_v39 = vadd.f32 %v1313_v26, %v568_v27  ;;  %v735_v40 = vadd.f32 %v1313_v26, %v588_v28 }
  0xb2   : > { %v712_v33 = vadd.f32 %v1313_v26, %v530_v29  ;;  %v720_v34 = vadd.f32 %v1313_v26, %v550_v30 }
  0xb4   : > { %v1054_v35 = vpack.c.bf16 %v712_v33, %v711_v31  ;;  %v1074_v36 = vpack.c.bf16 %v720_v34, %v719_v32 }
  0xb6   : > { %1055 = vst [vmem:[%s1324_s17] sm:$0xff] %v1054_v35  }
  0xb7   : > { %1134 = vst [vmem:[%s1324_s17 + $0x20] sm:$0xff] %v1074_v36  }
  0xb8   : > { %v570_v37 = vpop.f32.mrf.mxu2  ;;  %v590_v38 = vpop.f32.mrf.mxu3 }
  0xb9   : > { %v728_v41 = vadd.f32 %v1313_v26, %v570_v37  ;;  %v736_v42 = vadd.f32 %v1313_v26, %v590_v38  ;;  %v533_v43 = vpop.f32.mrf.mxu0  ;;  %v553_v44 = vpop.f32.mrf.mxu1 }
  0xba   : > { %v713_v51 = vadd.f32 %v1313_v26, %v533_v43  ;;  %v721_v52 = vadd.f32 %v1313_v26, %v553_v44 }
  0xbb   : > { %v1094_v45 = vpack.c.bf16 %v728_v41, %v727_v39  ;;  %v1114_v46 = vpack.c.bf16 %v736_v42, %v735_v40 }
  0xbd   : > { %1138 = vst [vmem:[%s1324_s17 + $0x40] sm:$0xff] %v1094_v45  }
  0xbe   : > { %1142 = vst [vmem:[%s1324_s17 + $0x60] sm:$0xff] %v1114_v46  }
  0xc0   : > { %v573_v47 = vpop.f32.mrf.mxu2  ;;  %v593_v48 = vpop.f32.mrf.mxu3 }
  0xc1   : > { %v535_v49 = vpop.f32.mrf.mxu0  ;;  %v555_v50 = vpop.f32.mrf.mxu1  ;;  %v729_v59 = vadd.f32 %v1313_v26, %v573_v47  ;;  %v737_v60 = vadd.f32 %v1313_v26, %v593_v48 }
  0xc2   : > { %v714_v53 = vadd.f32 %v1313_v26, %v535_v49  ;;  %v722_v54 = vadd.f32 %v1313_v26, %v555_v50 }
  0xc4   : > { %v1059_v55 = vpack.c.bf16 %v714_v53, %v713_v51  ;;  %v1079_v56 = vpack.c.bf16 %v722_v54, %v721_v52 }
  0xc6   : > { %1131 = vst [vmem:[%s1324_s17 + $0x8] sm:$0xff] %v1059_v55  }
  0xc7   : > { %1135 = vst [vmem:[%s1324_s17 + $0x28] sm:$0xff] %v1079_v56  }
  0xc8   : > { %v575_v57 = vpop.f32.mrf.mxu2  ;;  %v595_v58 = vpop.f32.mrf.mxu3 }
  0xc9   : > { %v730_v61 = vadd.f32 %v1313_v26, %v575_v57  ;;  %v738_v62 = vadd.f32 %v1313_v26, %v595_v58  ;;  %v538_v63 = vpop.f32.mrf.mxu0  ;;  %v558_v0 = vpop.f32.mrf.mxu1 }
  0xca   : > { %v715_v7 = vadd.f32 %v1313_v26, %v538_v63  ;;  %v723_v8 = vadd.f32 %v1313_v26, %v558_v0 }
  0xcb   : > { %v1099_v1 = vpack.c.bf16 %v730_v61, %v729_v59  ;;  %v1119_v2 = vpack.c.bf16 %v738_v62, %v737_v60 }
  0xcd   : > { %1139 = vst [vmem:[%s1324_s17 + $0x48] sm:$0xff] %v1099_v1  }
  0xce   : > { %1143 = vst [vmem:[%s1324_s17 + $0x68] sm:$0xff] %v1119_v2  }
  0xd0   : > { %v578_v3 = vpop.f32.mrf.mxu2  ;;  %v598_v4 = vpop.f32.mrf.mxu3 }
  0xd1   : > { %v540_v5 = vpop.f32.mrf.mxu0  ;;  %v560_v6 = vpop.f32.mrf.mxu1  ;;  %v731_v15 = vadd.f32 %v1313_v26, %v578_v3  ;;  %v739_v16 = vadd.f32 %v1313_v26, %v598_v4 }
  0xd2   : > { %v716_v9 = vadd.f32 %v1313_v26, %v540_v5  ;;  %v724_v10 = vadd.f32 %v1313_v26, %v560_v6 }
  0xd4   : > { %v1064_v11 = vpack.c.bf16 %v716_v9, %v715_v7  ;;  %v1084_v12 = vpack.c.bf16 %v724_v10, %v723_v8 }
  0xd6   : > { %1132 = vst [vmem:[%s1324_s17 + $0x10] sm:$0xff] %v1064_v11  }
  0xd7   : > { %1136 = vst [vmem:[%s1324_s17 + $0x30] sm:$0xff] %v1084_v12  }
  0xd8   : > { %v580_v13 = vpop.f32.mrf.mxu2  ;;  %v600_v14 = vpop.f32.mrf.mxu3 }
  0xd9   : > { %v732_v17 = vadd.f32 %v1313_v26, %v580_v13  ;;  %v740_v18 = vadd.f32 %v1313_v26, %v600_v14  ;;  %v543_v19 = vpop.f32.mrf.mxu0  ;;  %v563_v20 = vpop.f32.mrf.mxu1 }
  0xda   : > { %v717_v28 = vadd.f32 %v1313_v26, %v543_v19  ;;  %v725_v29 = vadd.f32 %v1313_v26, %v563_v20 }
  0xdb   : > { %v1104_v21 = vpack.c.bf16 %v732_v17, %v731_v15  ;;  %v1124_v22 = vpack.c.bf16 %v740_v18, %v739_v16 }
  0xdd   : > { %1140 = vst [vmem:[%s1324_s17 + $0x50] sm:$0xff] %v1104_v21  }
  0xde   : > { %1144 = vst [vmem:[%s1324_s17 + $0x70] sm:$0xff] %v1124_v22  }
  0xe0   : > { %v583_v23 = vpop.f32.mrf.mxu2  ;;  %v603_v24 = vpop.f32.mrf.mxu3 }
  0xe1   : > { %v545_v25 = vpop.f32.mrf.mxu0  ;;  %v565_v27 = vpop.f32.mrf.mxu1  ;;  %v733_v36 = vadd.f32 %v1313_v26, %v583_v23  ;;  %v741_v37 = vadd.f32 %v1313_v26, %v603_v24 }
  0xe2   : > { %v718_v30 = vadd.f32 %v1313_v26, %v545_v25  ;;  %v726_v31 = vadd.f32 %v1313_v26, %v565_v27 }
  0xe4   : > { %v1069_v32 = vpack.c.bf16 %v718_v30, %v717_v28  ;;  %v1089_v33 = vpack.c.bf16 %v726_v31, %v725_v29 }
  0xe6   : > { %1133 = vst [vmem:[%s1324_s17 + $0x18] sm:$0xff] %v1069_v32  }
  0xe7   : > { %1137 = vst [vmem:[%s1324_s17 + $0x38] sm:$0xff] %v1089_v33  }
  0xe8   : > { %v585_v34 = vpop.f32.mrf.mxu2  ;;  %v605_v35 = vpop.f32.mrf.mxu3 }
  0xe9   : > { %v734_v38 = vadd.f32 %v1313_v26, %v585_v34  ;;  %v742_v39 = vadd.f32 %v1313_v26, %v605_v35 }
  0xeb   : > { %v1109_v40 = vpack.c.bf16 %v734_v38, %v733_v36  ;;  %v1129_v41 = vpack.c.bf16 %v742_v39, %v741_v37 }
  0xed   : > { %1141 = vst [vmem:[%s1324_s17 + $0x58] sm:$0xff] %v1109_v40  }
  0xee   : > { %1145 = vst [vmem:[%s1324_s17 + $0x78] sm:$0xff] %v1129_v41  }
  0xef PF: > { %s13_s14 = sadd.s32 1, %s1217_s14   ;;  %s1383_s12 = smov %s1213_s13 }
  0xf0   : > { %p10_p5 = scmp.ge.s32.totalorder %s13_s14, 4   ;;  %s1384_s13 = smov %s1386_s15 }
  0xf2   :  { %12 = sbr.rel (!%p10_p5) target bundleno = 2 (0x2), region = 76 }

// kernel: mlp_forward.4
= control target key start
LH: loop header
LB: loop body
LE: loop exit
PB: predicated region body
PF: predicated region fallthrough
CT: control target
= control target key end

     0   :  { %s2787_s12 = smov 0   ;;  %s2789_s13 = smov 0   ;;  %s5920_s0 = inlined_call_operand.vmem [shape: bf16[2,18,18,128], index: 0, kind: input, shape index: {}]   ;;  %s5921_s1 = inlined_call_operand.vmem [shape: f32[9,128], index: 1, kind: input, shape index: {}]   ;;  %s5922_s2 = inlined_call_operand.vmem [shape: f32[1,128], index: 2, kind: input, shape index: {}]   ;;  %s5923_s3 = inlined_call_operand.vmem [shape: bf16[2,16,16,128], index: 3, kind: output, shape index: {}]  }
   0x1   :  { %s2791_s14 = smov 0  }
   0x2 LB: > { %s25_s15 = sadd.s32 1, %s2761_s13  ;;  %p2498_p0 = scmp.ge.s32.totalorder %s2765_s14, 1  ;;  %s2765_s14 = sphi %s2791_s14, %s13_s14   ;;  %s2761_s13 = sphi %s2789_s13, %s6900_s13   ;;  %s2757_s12 = sphi %s2787_s12, %s6899_s12  }
   0x3   : > { %p27_p1 = scmp.ge.s32.totalorder %s25_s15, 2  ;;  %p173_p2 = scmp.lt.s32.totalorder %s2765_s14, 3 }
   0x5   : > { %s6902_s15 = smov (%p27_p1, %s25_s15), 0  ;;  %p174_p3 = pnand %p2498_p0, %p173_p2 }
   0x7   : > { %177 = sbr.rel (%p174_p3) target bundleno = 514 (0x202), region = 32 }
   0xc   : > { %p210_p4 = scmp.lt.s32.totalorder %s2757_s12, 1  ;;  %v2828_v9 = vld [vmem:[%s5921_s1] ss:$0 sm:$0xff]  ;;  %vm499_vm0 = vcmask 1046528   ;;  %vm742_vm1 = vcmask 1045504  }
   0xe   : > { %s6904_s12 = smov (!%p210_p4, %s2757_s12), 1 }
   0xf   : > { %s2644_s16 = smul.u32 216, %s6904_s12  ;;  %s2504_s17 = sshll.u32 %s6904_s12, 7 }
  0x11   : > { %s2811_s19 = scalar_lea.vmem %s5920_s0, %s2644_s16 }
  0x12   : > { %v2506_v0 = vld [vmem:[%s2811_s19] sm:$0xff]   ;;  %v236_v1 = vld [vmem:[%s2811_s19 + $0xc] sm:$0xff]   ;;  %v2621_v2 = vld [vmem:[%s2811_s19 + $0x18] sm:$0xff]  }
  0x13   : > { %v2817_v3 = vld [vmem:[%s2811_s19 + $0x8] sm:$0x1]  ;;  %v238_v4 = vld [vmem:[%s2811_s19 + $0x14] sm:$0x1]  ;;  %v2821_v6 = vunpack.c.l.bf16 %v2506_v0  ;;  %v248_v8 = vld [vmem:[%s2811_s19 + $0x3c] sm:$0xff]   ;;  %v2830_v10 = vunpack.c.h.bf16 %v2506_v0  ;;  %v2832_v11 = vunpack.c.l.bf16 %v2621_v2  ;;  %v2835_v13 = vunpack.c.l.bf16 %v236_v1 }
  0x14   : > { %6084 = vst [vmem:[#allocation2_spill] sm:$0xff] %v2817_v3  ;;  %v2622_v5 = vld [vmem:[%s2811_s19 + $0x30] sm:$0xff]   ;;  %v242_v7 = vld [vmem:[%s2811_s19 + $0x24] sm:$0xff]   ;;  %v2837_v14 = vunpack.c.h.bf16 %v236_v1  ;;  %v2839_v15 = vunpack.c.h.bf16 %v2621_v2  ;;  %v2846_v20 = vunpack.c.l.bf16 %v238_v4  ;;  %v2625_v22 = vld [vmem:[%s2811_s19 + $0x78] sm:$0xff]   ;;  %v2855_v25 = vunpack.c.l.bf16 %v248_v8 }
  0x15   : > { %6085 = vst [vmem:[#allocation3_spill] sm:$0xff] %v2830_v10  ;;  %v2623_v12 = vld [vmem:[%s2811_s19 + $0x48] sm:$0xff]   ;;  %v2841_v16 = vunpack.c.l.bf16 %v2622_v5  ;;  %v254_v17 = vld [vmem:[%s2811_s19 + $0x54] sm:$0xff]   ;;  %v2624_v18 = vld [vmem:[%s2811_s19 + $0x60] sm:$0xff]   ;;  %v2848_v21 = vunpack.c.h.bf16 %v2622_v5  ;;  %v2851_v23 = vunpack.c.l.bf16 %v242_v7  ;;  %v2853_v24 = vunpack.c.h.bf16 %v242_v7 }
  0x16   : > { %6086 = vst [vmem:[#allocation4_spill] sm:$0xff] %v2832_v11  ;;  %v2857_v26 = vunpack.c.l.bf16 %v2623_v12  ;;  %v260_v27 = vld [vmem:[%s2811_s19 + $0x6c] sm:$0xff]   ;;  %v266_v28 = vld [vmem:[%s2811_s19 + $0x84] sm:$0xff]   ;;  %v2861_v29 = vunpack.c.h.bf16 %v248_v8  ;;  %v2865_v30 = vmul.f32 %v2828_v9, %v2821_v6  ;;  %v2869_v31 = vmul.f32 %v2828_v9, %v2830_v10  ;;  %v272_v39 = vld [vmem:[%s2811_s19 + $0x9c] sm:$0xff]  }
  0x17   : > { %6087 = vst [vmem:[#allocation5_spill] sm:$0xff] %v2835_v13  ;;  %v2871_v32 = vunpack.c.h.bf16 %v2623_v12  ;;  %v2873_v33 = vunpack.c.l.bf16 %v2624_v18  ;;  %v2626_v34 = vld [vmem:[%s2811_s19 + $0x90] sm:$0xff]   ;;  %v2876_v35 = vunpack.c.l.bf16 %v254_v17  ;;  %v2878_v36 = vunpack.c.h.bf16 %v254_v17  ;;  %v2627_v40 = vld [vmem:[%s2811_s19 + $0xa8] sm:$0xff]   ;;  %v2628_v44 = vld [vmem:[%s2811_s19 + $0xc0] sm:$0xff]  }
  0x18   : > { %6088 = vst [vmem:[#allocation6_spill] sm:$0xff] %v2837_v14  ;;  %v2880_v37 = vunpack.c.h.bf16 %v2624_v18  ;;  %v2882_v38 = vunpack.c.l.bf16 %v2625_v22  ;;  %v2888_v41 = vmul.f32 %v2828_v9, %v2835_v13  ;;  %v2892_v42 = vmul.f32 %v2828_v9, %v2837_v14  ;;  %v278_v49 = vld [vmem:[%s2811_s19 + $0xb4] sm:$0xff]   ;;  %v241_v7 = vld [vmem:[%s2811_s19 + $0x20] sm:$0x1]  ;;  %v256_v19 = vld [vmem:[%s2811_s19 + $0x5c] sm:$0x1] }
  0x19   : > { %6089 = vst [vmem:[#allocation7_spill] sm:$0xff] %v2839_v15  ;;  %v2894_v43 = vunpack.c.h.bf16 %v2625_v22  ;;  %v2897_v45 = vunpack.c.l.bf16 %v260_v27  ;;  %v2899_v46 = vunpack.c.h.bf16 %v260_v27  ;;  %v2901_v47 = vunpack.c.l.bf16 %v266_v28  ;;  %v244_v22 = vld [vmem:[%s2811_s19 + $0x2c] sm:$0x1]  ;;  %v247_v27 = vld [vmem:[%s2811_s19 + $0x38] sm:$0x1] }
  0x1a   : > { %6090 = vst [vmem:[#allocation8_spill] sm:$0xff] %v2841_v16  ;;  %v2903_v48 = vunpack.c.l.bf16 %v2626_v34  ;;  %v2906_v50 = vunpack.c.h.bf16 %v266_v28  ;;  %v2910_v51 = vmul.f32 %v2828_v9, %v2832_v11  ;;  %v2914_v52 = vmul.f32 %v2828_v9, %v2839_v15  ;;  %v250_v28 = vld [vmem:[%s2811_s19 + $0x44] sm:$0x1] }
  0x1b   : > { %6091 = vst [vmem:[#allocation9_spill] sm:$0xff] %v2846_v20  ;;  %v2916_v53 = vunpack.c.h.bf16 %v2626_v34  ;;  %v2918_v54 = vunpack.c.l.bf16 %v2627_v40  ;;  %v2920_v55 = vunpack.c.l.bf16 %v272_v39  ;;  %v2922_v56 = vunpack.c.h.bf16 %v272_v39 }
  0x1c   : > { %6092 = vst [vmem:[#allocation10_spill] sm:$0xff] %v2848_v21  ;;  %v2924_v57 = vunpack.c.h.bf16 %v2627_v40  ;;  %v2926_v58 = vunpack.c.l.bf16 %v2628_v44  ;;  %v2930_v59 = vmul.f32 %v2828_v9, %v2851_v23  ;;  %v2934_v60 = vmul.f32 %v2828_v9, %v2853_v24 }
  0x1d   : > { %6093 = vst [vmem:[#allocation11_spill] sm:$0xff] %v2851_v23  ;;  %v2936_v61 = vunpack.c.h.bf16 %v2628_v44  ;;  %v2938_v62 = vunpack.c.l.bf16 %v278_v49  ;;  %v2940_v63 = vunpack.c.h.bf16 %v278_v49  ;;  %v2944_v0 = vmul.f32 %v2828_v9, %v2841_v16  ;;  %v253_v49 = vld [vmem:[%s2811_s19 + $0x50] sm:$0x1] }
  0x1e   : > { %6094 = vst [vmem:[#allocation12_spill] sm:$0xff] %v2853_v24  ;;  %v2948_v1 = vmul.f32 %v2828_v9, %v2848_v21  ;;  %v2952_v2 = vmul.f32 %v2828_v9, %v2855_v25  ;;  %v2956_v4 = vmul.f32 %v2828_v9, %v2861_v29  ;;  %v2960_v5 = vmul.f32 %v2828_v9, %v2857_v26 }
  0x1f   : > { %6095 = vst [vmem:[#allocation13_spill] sm:$0xff] %v2855_v25  ;;  %v2965_v8 = vmul.f32 %v2828_v9, %v2871_v32  ;;  %v2969_v12 = vmul.f32 %v2828_v9, %v2876_v35  ;;  %v2973_v17 = vmul.f32 %v2828_v9, %v2878_v36  ;;  %v2977_v18 = vmul.f32 %v2828_v9, %v2873_v33 }
  0x20   : > { %6096 = vst [vmem:[#allocation14_spill] sm:$0xff] %v2857_v26  ;;  %v2984_v34 = vmul.f32 %v2828_v9, %v2880_v37  ;;  %v2988_v39 = vmul.f32 %v2828_v9, %v2897_v45  ;;  %v2992_v40 = vmul.f32 %v2828_v9, %v2899_v46  ;;  %v2996_v44 = vmul.f32 %v2828_v9, %v2882_v38 }
  0x21   : > { %6097 = vst [vmem:[#allocation15_spill] sm:$0xff] %v2861_v29 }
  0x22   : > { %6098 = vst [vmem:[#allocation16_spill] sm:$0xff] %v2871_v32 }
  0x23   : > { %6099 = vst [vmem:[#allocation17_spill] sm:$0xff] %v2873_v33 }
  0x24   : > { %6100 = vst [vmem:[#allocation18_spill] sm:$0xff] %v2876_v35 }
  0x25   : > { %6101 = vst [vmem:[#allocation19_spill] sm:$0xff] %v2878_v36 }
  0x26   : > { %6102 = vst [vmem:[#allocation20_spill] sm:$0xff] %v2880_v37 }
  0x27   : > { %6103 = vst [vmem:[#allocation21_spill] sm:$0xff] %v2882_v38 }
  0x28   : > { %6104 = vst [vmem:[#allocation22_spill] sm:$0xff] %v2894_v43 }
  0x29   : > { %6105 = vst [vmem:[#allocation23_spill] sm:$0xff] %v2897_v45 }
  0x2a   : > { %6106 = vst [vmem:[#allocation24_spill] sm:$0xff] %v2899_v46 }
  0x2b   : > { %6107 = vst [vmem:[#allocation25_spill] sm:$0xff] %v2901_v47 }
  0x2c   : > { %6108 = vst [vmem:[#allocation26_spill] sm:$0xff] %v2903_v48 }
  0x2d   : > { %6109 = vst [vmem:[#allocation27_spill] sm:$0xff] %v2906_v50 }
  0x2e   : > { %6110 = vst [vmem:[#allocation28_spill] sm:$0xff] %v2910_v51 }
  0x2f   : > { %6111 = vst [vmem:[#allocation29_spill] sm:$0xff] %v2914_v52 }
  0x30   : > { %6112 = vst [vmem:[#allocation30_spill] sm:$0xff] %v2916_v53 }
  0x31   : > { %6113 = vst [vmem:[#allocation31_spill] sm:$0xff] %v2918_v54 }
  0x32   : > { %6114 = vst [vmem:[#allocation32_spill] sm:$0xff] %v2920_v55 }
  0x33   : > { %6115 = vst [vmem:[#allocation33_spill] sm:$0xff] %v2922_v56 }
  0x34   : > { %6116 = vst [vmem:[#allocation34_spill] sm:$0xff] %v2924_v57 }
  0x35   : > { %6117 = vst [vmem:[#allocation35_spill] sm:$0xff] %v2926_v58  ;;  %v3003_v58 = vmul.f32 %v2828_v9, %v2894_v43 }
  0x36   : > { %6118 = vst [vmem:[#allocation36_spill] sm:$0xff] %v2930_v59  ;;  %v3065_v59 = vunpack.c.l.bf16 %v253_v49 }
  0x37   : > { %6119 = vst [vmem:[#allocation37_spill] sm:$0xff] %v2934_v60  ;;  %v3063_v60 = vunpack.c.l.bf16 %v250_v28 }
  0x38   : > { %6120 = vst [vmem:[#allocation38_spill] sm:$0xff] %v2936_v61  ;;  %v259_v61 = vld [vmem:[%s2811_s19 + $0x68] sm:$0x1] }
  0x39   : > { %6121 = vst [vmem:[#allocation39_spill] sm:$0xff] %v2938_v62  ;;  %v3069_v52 = vunpack.c.l.bf16 %v259_v61 }
  0x3a   : > { %6122 = vst [vmem:[#allocation40_spill] sm:$0xff] %v2940_v63 }
  0x3b   : > { %6123 = vst [vmem:[#allocation41_spill] sm:$0xff] %v2944_v0  ;;  %v3059_v0 = vunpack.c.l.bf16 %v244_v22 }
  0x3c   : > { %6124 = vst [vmem:[#allocation42_spill] sm:$0xff] %v2948_v1  ;;  %v280_v1 = vld [vmem:[%s2811_s19 + $0xbc] sm:$0x1] }
  0x3d   : > { %6125 = vst [vmem:[#allocation43_spill] sm:$0xff] %v2952_v2  ;;  %v3046_v2 = vmul.f32 %v2828_v9, %v2924_v57  ;;  %v3083_v28 = vunpack.c.l.bf16 %v280_v1 }
  0x3e   : > { %6126 = vst [vmem:[#allocation44_spill] sm:$0xff] %v2956_v4  ;;  %v277_v4 = vld [vmem:[%s2811_s19 + $0xb0] sm:$0x1] }
  0x3f   : > { %6127 = vst [vmem:[#allocation45_spill] sm:$0xff] %v2960_v5  ;;  %v274_v5 = vld [vmem:[%s2811_s19 + $0xa4] sm:$0x1] }
  0x40   : > { %6128 = vst [vmem:[#allocation46_spill] sm:$0xff] %v2965_v8  ;;  %v271_v8 = vld [vmem:[%s2811_s19 + $0x98] sm:$0x1]  ;;  %v3079_v22 = vunpack.c.l.bf16 %v274_v5 }
  0x41   : > { %6129 = vst [vmem:[#allocation47_spill] sm:$0xff] %v2969_v12  ;;  %v3039_v12 = vmul.f32 %v2828_v9, %v2918_v54 }
  0x42   : > { %6130 = vst [vmem:[#allocation48_spill] sm:$0xff] %v2973_v17  ;;  %v268_v17 = vld [vmem:[%s2811_s19 + $0x8c] sm:$0x1] }
  0x43   : > { %6131 = vst [vmem:[#allocation49_spill] sm:$0xff] %v2977_v18  ;;  %v262_v18 = vld [vmem:[%s2811_s19 + $0x74] sm:$0x1] }
  0x44   : > { %6132 = vst [vmem:[#allocation50_spill] sm:$0xff] %v2984_v34  ;;  %v3020_v34 = vld [vmem:[%s5921_s1 + $0x1] ss:$0 sm:$0xff] }
  0x45   : > { %6133 = vst [vmem:[#allocation51_spill] sm:$0xff] %v2988_v39  ;;  %v3007_v39 = vmul.f32 %v2828_v9, %v2901_v47  ;;  %v404_v61 = vmul.f32 %v3020_v34, %v2830_v10  ;;  %v3096_v5 = vmul.f32 %v3020_v34, %v2837_v14  ;;  %v3100_v1 = vmul.f32 %v3020_v34, %v2846_v20 }
  0x46   : > { %6134 = vst [vmem:[#allocation52_spill] sm:$0xff] %v2992_v40  ;;  %v3011_v40 = vmul.f32 %v2828_v9, %v2906_v50  ;;  %v3120_v20 = vmul.f32 %v3020_v34, %v2853_v24  ;;  %v3140_v24 = vmul.f32 %v3020_v34, %v2855_v25  ;;  %v3160_v25 = vmul.f32 %v3020_v34, %v3065_v59 }
  0x47   : > { %6135 = vst [vmem:[#allocation53_spill] sm:$0xff] %v2996_v44  ;;  %v3015_v44 = vmul.f32 %v2828_v9, %v2903_v48  ;;  %v3245_v10 = vmul.f32 %v3020_v34, %v3079_v22 }
  0x48   : > { %6136 = vst [vmem:[#allocation54_spill] sm:$0xff] %v3003_v58  ;;  %v265_v58 = vld [vmem:[%s2811_s19 + $0x80] sm:$0x1] }
  0x49   : > { %6137 = vst [vmem:[#allocation55_spill] sm:$0xff] %v3007_v39  ;;  %v3027_v39 = vmul.f32 %v2828_v9, %v2916_v53  ;;  %v3073_v51 = vunpack.c.l.bf16 %v265_v58 }
  0x4a   : > { %6138 = vst [vmem:[#allocation56_spill] sm:$0xff] %v3011_v40  ;;  %v3031_v40 = vmul.f32 %v2828_v9, %v2920_v55 }
  0x4b   : > { %6139 = vst [vmem:[#allocation57_spill] sm:$0xff] %v3015_v44  ;;  %v3035_v44 = vmul.f32 %v2828_v9, %v2922_v56 }
  0x4c   : > { %6140 = vst [vmem:[#allocation58_spill] sm:$0xff] %v3027_v39  ;;  %v3050_v39 = vmul.f32 %v2828_v9, %v2938_v62 }
  0x4d   : > { %6141 = vst [vmem:[#allocation59_spill] sm:$0xff] %v3031_v40  ;;  %v3054_v40 = vmul.f32 %v2828_v9, %v2940_v63  ;;  %v3075_v9 = vunpack.c.l.bf16 %v268_v17  ;;  %v3108_v17 = vmul.f32 %v3020_v34, %v2839_v15  ;;  %v3128_v15 = vmul.f32 %v3020_v34, %v2841_v16 }
  0x4e   : > { %6142 = vst [vmem:[#allocation60_spill] sm:$0xff] %v3035_v44  ;;  %v3056_v44 = vunpack.c.l.bf16 %v241_v7  ;;  %v3077_v7 = vunpack.c.l.bf16 %v271_v8  ;;  %v406_v8 = vmul.f32 %v3020_v34, %v2835_v13  ;;  %v3148_v16 = vmul.f32 %v3020_v34, %v3063_v60 }
  0x4f   : > { %6143 = vst [vmem:[#allocation61_spill] sm:$0xff] %v3039_v12  ;;  %v3061_v12 = vunpack.c.l.bf16 %v247_v27  ;;  %v3081_v27 = vunpack.c.l.bf16 %v277_v4  ;;  %v3104_v4 = vmul.f32 %v3020_v34, %v2832_v11  ;;  %v3124_v11 = vmul.f32 %v3020_v34, %v3059_v0 }
  0x50   : > { %6144 = vst [vmem:[#allocation62_spill] sm:$0xff] %v3046_v2  ;;  %v3067_v2 = vunpack.c.l.bf16 %v256_v19  ;;  %v403_v19 = vmul.f32 %v3020_v34, %v2821_v6  ;;  %v3112_v49 = vmul.f32 %v3020_v34, %v3056_v44  ;;  %v501_v13 = vrot.slane %v404_v61, 1 }
  0x51   : > { %6145 = vst [vmem:[#allocation63_spill] sm:$0xff] %v3050_v39  ;;  %v3071_v39 = vunpack.c.l.bf16 %v262_v18  ;;  %v6160_v18 = vunpack.c.l.bf16 %v2817_v3  ;;  %v505_v3 = vrot.slane %v406_v8, 1  ;;  %v3261_v61 = vmul.f32 %v3020_v34, %v2938_v62 }
  0x52   : > { %6146 = vst [vmem:[#allocation64_spill] sm:$0xff] %v3056_v44  ;;  %v3132_v44 = vmul.f32 %v3020_v34, %v2848_v21  ;;  %v3152_v21 = vmul.f32 %v3020_v34, %v2857_v26  ;;  %v3172_v26 = vmul.f32 %v3020_v34, %v3067_v2  ;;  %v500_v14 = vrot.slane %v403_v19, 1 }
  0x53   : > { %6147 = vst [vmem:[#allocation65_spill] sm:$0xff] %v3059_v0  ;;  %v405_v58 = vmul.f32 %v3020_v34, %v6160_v18  ;;  %v3116_v18 = vmul.f32 %v3020_v34, %v2851_v23  ;;  %v3136_v23 = vmul.f32 %v3020_v34, %v3061_v12  ;;  %v3144_v0 = vmul.f32 %v3020_v34, %v2861_v29 }
  0x54   : > { %6148 = vst [vmem:[#allocation66_spill] sm:$0xff] %v3061_v12  ;;  %v3156_v12 = vmul.f32 %v3020_v34, %v2871_v32  ;;  %v3164_v29 = vmul.f32 %v3020_v34, %v2876_v35  ;;  %v3176_v32 = vmul.f32 %v3020_v34, %v2873_v33  ;;  %v3184_v35 = vmul.f32 %v3020_v34, %v3069_v52 }
  0x55   : > { %6149 = vst [vmem:[#allocation67_spill] sm:$0xff] %v3063_v60  ;;  %v3168_v60 = vmul.f32 %v3020_v34, %v2878_v36  ;;  %v3188_v36 = vmul.f32 %v3020_v34, %v2897_v45  ;;  %v3196_v33 = vmul.f32 %v3020_v34, %v3071_v39  ;;  %v3208_v45 = vmul.f32 %v3020_v34, %v3073_v51 }
  0x56   : > { %6150 = vst [vmem:[#allocation68_spill] sm:$0xff] %v3065_v59  ;;  %v3180_v59 = vmul.f32 %v3020_v34, %v2880_v37  ;;  %v3200_v37 = vmul.f32 %v3020_v34, %v2882_v38  ;;  %v3220_v38 = vmul.f32 %v3020_v34, %v3075_v9  ;;  %v3257_v19 = vmul.f32 %v3020_v34, %v3081_v27 }
  0x57   : > { %6151 = vst [vmem:[#allocation69_spill] sm:$0xff] %v3067_v2  ;;  %v3192_v2 = vmul.f32 %v3020_v34, %v2899_v46  ;;  %v3212_v46 = vmul.f32 %v3020_v34, %v2901_v47  ;;  %v3232_v47 = vmul.f32 %v3020_v34, %v3077_v7  ;;  %v3269_v8 = vmul.f32 %v3020_v34, %v3083_v28 }
  0x58   : > { %6152 = vst [vmem:[#allocation70_spill] sm:$0xff] %v3069_v52  ;;  %v3204_v52 = vmul.f32 %v3020_v34, %v2894_v43  ;;  %v3224_v43 = vmul.f32 %v3020_v34, %v2903_v48  ;;  %v503_v48 = vrot.slane %v405_v58, 1  ;;  %v3265_v58 = vmul.f32 %v3020_v34, %v2940_v63 }
  0x59   : > { %6153 = vst [vmem:[#allocation71_spill] sm:$0xff] %v3071_v39  ;;  %v3216_v39 = vmul.f32 %v3020_v34, %v2906_v50  ;;  %v3236_v50 = vmul.f32 %v3020_v34, %v2920_v55  ;;  %v3253_v55 = vmul.f32 %v3020_v34, %v2924_v57  ;;  %v3273_v57 = vsel %vm499_vm0, %v500_v14, %v501_v13 }
  0x5a   : > { %6154 = vst [vmem:[#allocation72_spill] sm:$0xff] %v3073_v51  ;;  %v3228_v51 = vmul.f32 %v3020_v34, %v2916_v53  ;;  %v506_v53 = vrot.slane %v3096_v5, 1  ;;  %v508_v5 = vrot.slane %v3100_v1, 1  ;;  %v513_v62 = vrot.slane %v3112_v49, 1 }
  0x5b   : > { %6155 = vst [vmem:[#allocation73_spill] sm:$0xff] %v3075_v9  ;;  %v3240_v9 = vmul.f32 %v3020_v34, %v2922_v56  ;;  %v518_v1 = vrot.slane %v3124_v11, 1  ;;  %v520_v14 = vrot.slane %v3128_v15, 1  ;;  %v525_v49 = vrot.slane %v3140_v24, 1 }
  0x5c   : > { %6156 = vst [vmem:[#allocation74_spill] sm:$0xff] %v3077_v7  ;;  %v3249_v7 = vmul.f32 %v3020_v34, %v2918_v54  ;;  %v511_v54 = vrot.slane %v3108_v17, 1  ;;  %v3282_v63 = vsel %vm499_vm0, %v505_v3, %v506_v53  ;;  %v515_v34 = vrot.slane %v3116_v18, 1 }
  0x5d   : > { %6157 = vst [vmem:[#allocation75_spill] sm:$0xff] %v3079_v22  ;;  %v3279_v22 = vsel %vm499_vm0, %v501_v13, %v503_v48  ;;  %v523_v17 = vrot.slane %v3136_v23, 1  ;;  %v526_v13 = vrot.slane %v3144_v0, 1  ;;  %v528_v48 = vrot.slane %v3148_v16, 1 }
  0x5e   : > { %6158 = vst [vmem:[#allocation76_spill] sm:$0xff] %v3081_v27  ;;  %v510_v27 = vrot.slane %v3104_v4, 1  ;;  %v521_v4 = vrot.slane %v3132_v44, 1  ;;  %v530_v3 = vrot.slane %v3152_v21, 1  ;;  %v531_v18 = vrot.slane %v3156_v12, 1 }
  0x5f   : > { %6159 = vst [vmem:[#allocation77_spill] sm:$0xff] %v3083_v28  ;;  %v516_v28 = vrot.slane %v3120_v20, 1  ;;  %v533_v20 = vrot.slane %v3160_v25, 1  ;;  %v535_v11 = vrot.slane %v3164_v29, 1  ;;  %v536_v15 = vrot.slane %v3168_v60, 1 }
  0x60   : > { %v509_v44 = vsel %vm499_vm0, %v506_v53, %v508_v5  ;;  %v538_v23 = vrot.slane %v3172_v26, 1  ;;  %v540_v24 = vrot.slane %v3176_v32, 1  ;;  %v541_v0 = vrot.slane %v3180_v59, 1 }
  0x61   : > { %v512_v16 = vsel %vm499_vm0, %v510_v27, %v511_v54  ;;  %v514_v21 = vsel %vm499_vm0, %v511_v54, %v513_v62  ;;  %v517_v12 = vsel %vm499_vm0, %v515_v34, %v516_v28  ;;  %v543_v25 = vrot.slane %v3184_v35, 1 }
  0x62   : > { %v519_v29 = vsel %vm499_vm0, %v516_v28, %v518_v1  ;;  %v522_v60 = vsel %vm499_vm0, %v520_v14, %v521_v4  ;;  %v524_v53 = vsel %vm499_vm0, %v521_v4, %v523_v17  ;;  %v527_v26 = vsel %vm499_vm0, %v525_v49, %v526_v13 }
  0x63   : > { %v529_v32 = vsel %vm499_vm0, %v526_v13, %v528_v48  ;;  %v532_v59 = vsel %vm499_vm0, %v530_v3, %v531_v18  ;;  %v534_v27 = vsel %vm499_vm0, %v531_v18, %v533_v20  ;;  %v537_v54 = vsel %vm499_vm0, %v535_v11, %v536_v15 }
  0x64   : > { %v539_v62 = vsel %vm499_vm0, %v536_v15, %v538_v23  ;;  %v542_v35 = vsel %vm499_vm0, %v540_v24, %v541_v0  ;;  %v545_v28 = vrot.slane %v3188_v36, 1  ;;  %v546_v5 = vrot.slane %v3192_v2, 1 }
  0x65   : > { %v544_v34 = vsel %vm499_vm0, %v541_v0, %v543_v25  ;;  %v548_v1 = vrot.slane %v3196_v33, 1  ;;  %v550_v14 = vrot.slane %v3200_v37, 1  ;;  %v551_v4 = vrot.slane %v3204_v52, 1 }
  0x66   : > { %v553_v17 = vrot.slane %v3208_v45, 1  ;;  %v555_v49 = vrot.slane %v3212_v46, 1  ;;  %v556_v13 = vrot.slane %v3216_v39, 1  ;;  %v558_v48 = vrot.slane %v3220_v38, 1 }
  0x67   : > { %v560_v36 = vrot.slane %v3224_v43, 1  ;;  %v561_v2 = vrot.slane %v3228_v51, 1  ;;  %v563_v3 = vrot.slane %v3232_v47, 1  ;;  %v565_v33 = vrot.slane %v3236_v50, 1 }
  0x68   : > { %v566_v37 = vrot.slane %v3240_v9, 1  ;;  %v568_v52 = vrot.slane %v3245_v10, 1  ;;  %v570_v45 = vrot.slane %v3249_v7, 1  ;;  %v571_v46 = vrot.slane %v3253_v55, 1 }
  0x69   : > { %v547_v39 = vsel %vm499_vm0, %v545_v28, %v546_v5  ;;  %v573_v38 = vrot.slane %v3257_v19, 1  ;;  %v575_v43 = vrot.slane %v3261_v61, 1  ;;  %v576_v51 = vrot.slane %v3265_v58, 1  ;;  %v6161_v28 = vld [vmem:[#allocation28_spill] sm:$0xff] }
  0x6a   : > { %v549_v47 = vsel %vm499_vm0, %v546_v5, %v548_v1  ;;  %v552_v50 = vsel %vm499_vm0, %v550_v14, %v551_v4  ;;  %v554_v9 = vsel %vm499_vm0, %v551_v4, %v553_v17  ;;  %v578_v10 = vrot.slane %v3269_v8, 1  ;;  %v6163_v1 = vld [vmem:[#allocation36_spill] sm:$0xff]  ;;  %v6167_v4 = vld [vmem:[#allocation41_spill] sm:$0xff] }
  0x6b   : > { %v557_v7 = vsel %vm499_vm0, %v555_v49, %v556_v13  ;;  %v559_v55 = vsel %vm499_vm0, %v556_v13, %v558_v48  ;;  %v562_v18 = vsel %vm499_vm0, %v560_v36, %v561_v2  ;;  %v564_v19 = vsel %vm499_vm0, %v561_v2, %v563_v3 }
  0x6c   : > { %v567_v61 = vsel %vm499_vm0, %v565_v33, %v566_v37  ;;  %v569_v58 = vsel %vm499_vm0, %v566_v37, %v568_v52  ;;  %v572_v20 = vsel %vm499_vm0, %v570_v45, %v571_v46  ;;  %v3351_v11 = vadd.f32 %v3273_v57, %v2865_v30  ;;  %v6162_v57 = vld [vmem:[#allocation29_spill] sm:$0xff]  ;;  %v6189_v37 = vld [vmem:[#allocation52_spill] sm:$0xff]  ;;  %v6193_v45 = vld [vmem:[#allocation54_spill] sm:$0xff] }
  0x6d   : > { %v574_v8 = vsel %vm499_vm0, %v571_v46, %v573_v38  ;;  %v577_v15 = vsel %vm499_vm0, %v575_v43, %v576_v51  ;;  %v3357_v23 = vadd.f32 %v3279_v22, %v2869_v31  ;;  %v3361_v24 = vadd.f32 %v3282_v63, %v2888_v41  ;;  %v6165_v31 = vld [vmem:[#allocation37_spill] sm:$0xff]  ;;  %v6169_v63 = vld [vmem:[#allocation42_spill] sm:$0xff]  ;;  %v6195_v46 = vld [vmem:[#allocation55_spill] sm:$0xff] }
  0x6e   : > { %v579_v0 = vsel %vm499_vm0, %v576_v51, %v578_v10  ;;  %v3365_v25 = vadd.f32 %v509_v44, %v2892_v42  ;;  %v3368_v30 = vadd.f32 %v512_v16, %v6161_v28  ;;  %v3371_v5 = vadd.f32 %v514_v21, %v6162_v57  ;;  %v6171_v42 = vld [vmem:[#allocation43_spill] sm:$0xff]  ;;  %v6173_v16 = vld [vmem:[#allocation44_spill] sm:$0xff]  ;;  %v6175_v21 = vld [vmem:[#allocation45_spill] sm:$0xff] }
  0x6f   : > { %v3374_v14 = vadd.f32 %v517_v12, %v6163_v1  ;;  %v3377_v22 = vadd.f32 %v519_v29, %v6165_v31  ;;  %v3380_v41 = vadd.f32 %v522_v60, %v6167_v4  ;;  %v3383_v17 = vadd.f32 %v524_v53, %v6169_v63  ;;  %v6177_v12 = vld [vmem:[#allocation46_spill] sm:$0xff]  ;;  %v6179_v29 = vld [vmem:[#allocation47_spill] sm:$0xff]  ;;  %v6181_v60 = vld [vmem:[#allocation48_spill] sm:$0xff] }
  0x70   : > { %v3386_v44 = vadd.f32 %v527_v26, %v6171_v42  ;;  %v3389_v49 = vadd.f32 %v529_v32, %v6173_v16  ;;  %v3392_v13 = vadd.f32 %v532_v59, %v6175_v21  ;;  %v3395_v48 = vadd.f32 %v534_v27, %v6177_v12  ;;  %v6183_v53 = vld [vmem:[#allocation49_spill] sm:$0xff]  ;;  %v6185_v26 = vld [vmem:[#allocation50_spill] sm:$0xff]  ;;  %v6187_v59 = vld [vmem:[#allocation51_spill] sm:$0xff] }
  0x71   : > { %6164 = vst [vmem:[#allocation28_spill] sm:$0xff] %v3374_v14  ;;  %v3398_v36 = vadd.f32 %v537_v54, %v6179_v29  ;;  %v3401_v2 = vadd.f32 %v539_v62, %v6181_v60  ;;  %v3404_v3 = vadd.f32 %v542_v35, %v6183_v53  ;;  %v3407_v33 = vadd.f32 %v544_v34, %v6185_v26  ;;  %v3412_v32 = vld [vmem:[%s5921_s1 + $0x2] ss:$0 sm:$0xff]  ;;  %v6191_v52 = vld [vmem:[#allocation53_spill] sm:$0xff]  ;;  %v6197_v38 = vld [vmem:[#allocation56_spill] sm:$0xff] }
  0x72   : > { %6166 = vst [vmem:[#allocation29_spill] sm:$0xff] %v3377_v22  ;;  %v3415_v27 = vadd.f32 %v547_v39, %v6187_v59  ;;  %v3418_v54 = vadd.f32 %v549_v47, %v6189_v37  ;;  %v3421_v62 = vadd.f32 %v552_v50, %v6191_v52  ;;  %v3424_v35 = vadd.f32 %v554_v9, %v6193_v45  ;;  %v6199_v51 = vld [vmem:[#allocation57_spill] sm:$0xff]  ;;  %v6201_v39 = vld [vmem:[#allocation58_spill] sm:$0xff]  ;;  %v6203_v47 = vld [vmem:[#allocation59_spill] sm:$0xff] }
  0x73   : > { %6168 = vst [vmem:[#allocation36_spill] sm:$0xff] %v3380_v41  ;;  %v3427_v34 = vadd.f32 %v557_v7, %v6195_v46  ;;  %v3430_v43 = vadd.f32 %v559_v55, %v6197_v38  ;;  %v3433_v10 = vadd.f32 %v562_v18, %v6199_v51  ;;  %v3436_v28 = vadd.f32 %v564_v19, %v6201_v39  ;;  %v6205_v50 = vld [vmem:[#allocation60_spill] sm:$0xff]  ;;  %v6207_v9 = vld [vmem:[#allocation61_spill] sm:$0xff]  ;;  %v6209_v7 = vld [vmem:[#allocation62_spill] sm:$0xff] }
  0x74   : > { %6170 = vst [vmem:[#allocation37_spill] sm:$0xff] %v3383_v17  ;;  %v3439_v57 = vadd.f32 %v567_v61, %v6203_v47  ;;  %v3442_v1 = vadd.f32 %v569_v58, %v6205_v50  ;;  %v3445_v31 = vadd.f32 %v572_v20, %v6207_v9  ;;  %v3448_v4 = vadd.f32 %v574_v8, %v6209_v7  ;;  %v6211_v55 = vld [vmem:[#allocation63_spill] sm:$0xff]  ;;  %v6215_v58 = vld [vmem:[#allocation2_spill] sm:$0xff]  ;;  %v6217_v21 = vld [vmem:[#allocation5_spill] sm:$0xff] }
  0x75   : > { %6172 = vst [vmem:[#allocation41_spill] sm:$0xff] %v3386_v44  ;;  %v3451_v63 = vadd.f32 %v577_v15, %v6211_v55  ;;  %v3454_v18 = vadd.f32 %v579_v0, %v3054_v40  ;;  %v646_v19 = vmul.f32 %v3412_v32, %v2821_v6  ;;  %v6214_v61 = vld [vmem:[#allocation3_spill] sm:$0xff]  ;;  %v6216_v16 = vunpack.c.l.bf16 %v6215_v58  ;;  %v6218_v12 = vld [vmem:[#allocation6_spill] sm:$0xff]  ;;  %v6219_v40 = vld [vmem:[#allocation9_spill] sm:$0xff] }
  0x76   : > { %6174 = vst [vmem:[#allocation42_spill] sm:$0xff] %v3389_v49  ;;  %v647_v42 = vmul.f32 %v3412_v32, %v6214_v61  ;;  %v3465_v8 = vmul.f32 %v3412_v32, %v6217_v21  ;;  %v3469_v15 = vmul.f32 %v3412_v32, %v6218_v12  ;;  %v3473_v0 = vmul.f32 %v3412_v32, %v6219_v40  ;;  %v6220_v6 = vld [vmem:[#allocation4_spill] sm:$0xff]  ;;  %v6221_v60 = vld [vmem:[#allocation7_spill] sm:$0xff]  ;;  %v6225_v38 = vld [vmem:[#allocation65_spill] sm:$0xff] }
  0x77   : > { %6176 = vst [vmem:[#allocation43_spill] sm:$0xff] %v3392_v13  ;;  %v648_v20 = vmul.f32 %v3412_v32, %v6216_v16  ;;  %v3477_v29 = vmul.f32 %v3412_v32, %v6220_v6  ;;  %v3481_v53 = vmul.f32 %v3412_v32, %v6221_v60  ;;  %v6222_v26 = vld [vmem:[#allocation64_spill] sm:$0xff]  ;;  %v6223_v37 = vld [vmem:[#allocation11_spill] sm:$0xff]  ;;  %v3497_v51 = vmul.f32 %v3412_v32, %v6225_v38  ;;  %v6227_v50 = vld [vmem:[#allocation10_spill] sm:$0xff] }
  0x78   : > { %6178 = vst [vmem:[#allocation44_spill] sm:$0xff] %v3395_v48  ;;  %v3485_v59 = vmul.f32 %v3412_v32, %v6222_v26  ;;  %v3489_v52 = vmul.f32 %v3412_v32, %v6223_v37  ;;  %v6224_v45 = vld [vmem:[#allocation12_spill] sm:$0xff]  ;;  %v3505_v9 = vmul.f32 %v3412_v32, %v6227_v50  ;;  %v6228_v7 = vld [vmem:[#allocation66_spill] sm:$0xff]  ;;  %v6229_v61 = vld [vmem:[#allocation13_spill] sm:$0xff]  ;;  %v748_v17 = vrot.slane %v3465_v8, 2 }
  0x79   : > { %6180 = vst [vmem:[#allocation45_spill] sm:$0xff] %v3398_v36  ;;  %v3493_v46 = vmul.f32 %v3412_v32, %v6224_v45  ;;  %v6226_v39 = vld [vmem:[#allocation8_spill] sm:$0xff]  ;;  %v3509_v55 = vmul.f32 %v3412_v32, %v6228_v7  ;;  %v3513_v58 = vmul.f32 %v3412_v32, %v6229_v61  ;;  %v6230_v16 = vld [vmem:[#allocation15_spill] sm:$0xff]  ;;  %v6235_v60 = vld [vmem:[#allocation18_spill] sm:$0xff]  ;;  %v754_v22 = vrot.slane %v3481_v53, 2 }
  0x7a   : > { %6182 = vst [vmem:[#allocation46_spill] sm:$0xff] %v3401_v2  ;;  %v3501_v47 = vmul.f32 %v3412_v32, %v6226_v39  ;;  %v3517_v38 = vmul.f32 %v3412_v32, %v6230_v16  ;;  %v6231_v26 = vld [vmem:[#allocation67_spill] sm:$0xff]  ;;  %v6232_v39 = vld [vmem:[#allocation14_spill] sm:$0xff]  ;;  %v6233_v45 = vld [vmem:[#allocation16_spill] sm:$0xff]  ;;  %v3537_v16 = vmul.f32 %v3412_v32, %v6235_v60  ;;  %v744_v2 = vrot.slane %v647_v42, 2 }
  0x7b   : > { %6184 = vst [vmem:[#allocation47_spill] sm:$0xff] %v3404_v3  ;;  %v3521_v40 = vmul.f32 %v3412_v32, %v6231_v26  ;;  %v3525_v50 = vmul.f32 %v3412_v32, %v6232_v39  ;;  %v3529_v7 = vmul.f32 %v3412_v32, %v6233_v45  ;;  %v6234_v37 = vld [vmem:[#allocation68_spill] sm:$0xff]  ;;  %v6236_v6 = vld [vmem:[#allocation19_spill] sm:$0xff]  ;;  %v6237_v12 = vld [vmem:[#allocation69_spill] sm:$0xff]  ;;  %v743_v3 = vrot.slane %v646_v19, 2 }
  0x7c   : > { %6186 = vst [vmem:[#allocation48_spill] sm:$0xff] %v3407_v33  ;;  %v3533_v61 = vmul.f32 %v3412_v32, %v6234_v37  ;;  %v3541_v26 = vmul.f32 %v3412_v32, %v6236_v6  ;;  %v3545_v39 = vmul.f32 %v3412_v32, %v6237_v12  ;;  %v6238_v21 = vld [vmem:[#allocation17_spill] sm:$0xff]  ;;  %v6253_v33 = vld [vmem:[#allocation32_spill] sm:$0xff]  ;;  %v6255_v48 = vld [vmem:[#allocation31_spill] sm:$0xff]  ;;  %v756_v14 = vrot.slane %v3485_v59, 2 }
  0x7d   : > { %6188 = vst [vmem:[#allocation49_spill] sm:$0xff] %v3415_v27  ;;  %v3549_v45 = vmul.f32 %v3412_v32, %v6238_v21  ;;  %v6252_v27 = vld [vmem:[#allocation74_spill] sm:$0xff]  ;;  %v6257_v19 = vld [vmem:[#allocation76_spill] sm:$0xff]  ;;  %v3646_v41 = vsel %vm742_vm1, %v743_v3, %v744_v2  ;;  %v759_v8 = vrot.slane %v3493_v46, 2  ;;  %v763_v3 = vrot.slane %v3501_v47, 2 }
  0x7e   : > { %6190 = vst [vmem:[#allocation50_spill] sm:$0xff] %v3418_v54  ;;  %v6251_v54 = vld [vmem:[#allocation30_spill] sm:$0xff]  ;;  %v3629_v42 = vmul.f32 %v3412_v32, %v6257_v19  ;;  %v751_v19 = vrot.slane %v3473_v0, 2  ;;  %v766_v0 = vrot.slane %v3509_v55, 2  ;;  %v769_v53 = vrot.slane %v3517_v38, 2 }
  0x7f   : > { %6192 = vst [vmem:[#allocation51_spill] sm:$0xff] %v3421_v62  ;;  %v6250_v62 = vld [vmem:[#allocation26_spill] sm:$0xff]  ;;  %v774_v59 = vrot.slane %v3529_v7, 2  ;;  %v778_v46 = vrot.slane %v3537_v16, 2  ;;  %v783_v55 = vrot.slane %v3549_v45, 2  ;;  %v757_v7 = vsel %vm742_vm1, %v754_v22, %v756_v14 }
  0x80   : > { %6194 = vst [vmem:[#allocation52_spill] sm:$0xff] %v3424_v35  ;;  %v6249_v35 = vld [vmem:[#allocation73_spill] sm:$0xff]  ;;  %v6256_v13 = vld [vmem:[#allocation34_spill] sm:$0xff] }
  0x81   : > { %6196 = vst [vmem:[#allocation53_spill] sm:$0xff] %v3427_v34  ;;  %v6248_v34 = vld [vmem:[#allocation27_spill] sm:$0xff] }
  0x82   : > { %6198 = vst [vmem:[#allocation54_spill] sm:$0xff] %v3430_v43  ;;  %v6247_v43 = vld [vmem:[#allocation25_spill] sm:$0xff] }
  0x83   : > { %6200 = vst [vmem:[#allocation55_spill] sm:$0xff] %v3433_v10  ;;  %v6246_v10 = vld [vmem:[#allocation72_spill] sm:$0xff] }
  0x84   : > { %6202 = vst [vmem:[#allocation56_spill] sm:$0xff] %v3436_v28  ;;  %v6245_v28 = vld [vmem:[#allocation22_spill] sm:$0xff] }
  0x85   : > { %6204 = vst [vmem:[#allocation57_spill] sm:$0xff] %v3439_v57  ;;  %v6244_v57 = vld [vmem:[#allocation21_spill] sm:$0xff] }
  0x86   : > { %6206 = vst [vmem:[#allocation58_spill] sm:$0xff] %v3442_v1  ;;  %v6243_v1 = vld [vmem:[#allocation71_spill] sm:$0xff] }
  0x87   : > { %6208 = vst [vmem:[#allocation59_spill] sm:$0xff] %v3445_v31  ;;  %v6242_v31 = vld [vmem:[#allocation24_spill] sm:$0xff]  ;;  %v3569_v21 = vmul.f32 %v3412_v32, %v6243_v1  ;;  %v3589_v1 = vmul.f32 %v3412_v32, %v6248_v34  ;;  %v3609_v34 = vmul.f32 %v3412_v32, %v6253_v33  ;;  %v3625_v33 = vmul.f32 %v3412_v32, %v6256_v13 }
  0x88   : > { %6210 = vst [vmem:[#allocation60_spill] sm:$0xff] %v3448_v4  ;;  %v6241_v4 = vld [vmem:[#allocation23_spill] sm:$0xff]  ;;  %v3565_v12 = vmul.f32 %v3412_v32, %v6242_v31  ;;  %v3585_v31 = vmul.f32 %v3412_v32, %v6247_v43  ;;  %v3605_v43 = vmul.f32 %v3412_v32, %v6252_v27  ;;  %v3621_v27 = vmul.f32 %v3412_v32, %v6255_v48 }
  0x89   : > { %6212 = vst [vmem:[#allocation61_spill] sm:$0xff] %v3451_v63  ;;  %v6240_v63 = vld [vmem:[#allocation70_spill] sm:$0xff]  ;;  %v3561_v6 = vmul.f32 %v3412_v32, %v6241_v4  ;;  %v3581_v4 = vmul.f32 %v3412_v32, %v6246_v10  ;;  %v3601_v10 = vmul.f32 %v3412_v32, %v6251_v54  ;;  %v746_v54 = vrot.slane %v648_v20, 2  ;;  %v6260_v20 = vld [vmem:[#allocation77_spill] sm:$0xff] }
  0x8a   : > { %6213 = vst [vmem:[#allocation62_spill] sm:$0xff] %v3454_v18  ;;  %v6239_v18 = vld [vmem:[#allocation20_spill] sm:$0xff]  ;;  %v3557_v60 = vmul.f32 %v3412_v32, %v6240_v63  ;;  %v3577_v63 = vmul.f32 %v3412_v32, %v6245_v28  ;;  %v3597_v28 = vmul.f32 %v3412_v32, %v6250_v62  ;;  %v6254_v62 = vld [vmem:[#allocation75_spill] sm:$0xff]  ;;  %v3641_v48 = vmul.f32 %v3412_v32, %v6260_v20 }
  0x8b   : > { %v3553_v37 = vmul.f32 %v3412_v32, %v6239_v18  ;;  %v3573_v18 = vmul.f32 %v3412_v32, %v6244_v57  ;;  %v3593_v57 = vmul.f32 %v3412_v32, %v6249_v35  ;;  %v3613_v35 = vmul.f32 %v3412_v32, %v2922_v56  ;;  %v6258_v56 = vld [vmem:[#allocation39_spill] sm:$0xff] }
  0x8c   : > { %v3617_v36 = vmul.f32 %v3412_v32, %v6254_v62  ;;  %v3633_v49 = vmul.f32 %v3412_v32, %v6258_v56  ;;  %v6259_v62 = vld [vmem:[#allocation40_spill] sm:$0xff]  ;;  %v749_v13 = vrot.slane %v3469_v15, 2  ;;  %v753_v56 = vrot.slane %v3477_v29, 2 }
  0x8d   : > { %v3637_v44 = vmul.f32 %v3412_v32, %v6259_v62  ;;  %v3652_v62 = vsel %vm742_vm1, %v744_v2, %v746_v54  ;;  %v758_v32 = vrot.slane %v3489_v52, 2  ;;  %v761_v15 = vrot.slane %v3497_v51, 2 }
  0x8e   : > { %v764_v20 = vrot.slane %v3505_v9, 2  ;;  %v768_v29 = vrot.slane %v3513_v58, 2  ;;  %v771_v2 = vrot.slane %v3521_v40, 2  ;;  %v773_v54 = vrot.slane %v3525_v50, 2 }
  0x8f   : > { %v776_v52 = vrot.slane %v3533_v61, 2  ;;  %v779_v51 = vrot.slane %v3541_v26, 2  ;;  %v750_v47 = vsel %vm742_vm1, %v748_v17, %v749_v13  ;;  %v781_v9 = vrot.slane %v3545_v39, 2 }
  0x90   : > { %v784_v38 = vrot.slane %v3553_v37, 2  ;;  %v752_v40 = vsel %vm742_vm1, %v749_v13, %v751_v19  ;;  %v755_v50 = vsel %vm742_vm1, %v753_v56, %v754_v22  ;;  %v760_v61 = vsel %vm742_vm1, %v758_v32, %v759_v8 }
  0x91   : > { %v762_v58 = vsel %vm742_vm1, %v759_v8, %v761_v15  ;;  %v765_v26 = vsel %vm742_vm1, %v763_v3, %v764_v20  ;;  %v767_v17 = vsel %vm742_vm1, %v764_v20, %v766_v0  ;;  %v770_v39 = vsel %vm742_vm1, %v768_v29, %v769_v53 }
  0x92   : > { %v772_v45 = vsel %vm742_vm1, %v769_v53, %v771_v2  ;;  %v775_v37 = vsel %vm742_vm1, %v773_v54, %v774_v59  ;;  %v777_v13 = vsel %vm742_vm1, %v774_v59, %v776_v52  ;;  %v780_v56 = vsel %vm742_vm1, %v778_v46, %v779_v51 }
  0x93   : > { %v782_v14 = vsel %vm742_vm1, %v779_v51, %v781_v9  ;;  %v785_v22 = vsel %vm742_vm1, %v783_v55, %v784_v38  ;;  %v786_v16 = vrot.slane %v3557_v60, 2  ;;  %v788_v19 = vrot.slane %v3561_v6, 2 }
  0x94   : > { %v789_v20 = vrot.slane %v3565_v12, 2  ;;  %v791_v32 = vrot.slane %v3569_v21, 2  ;;  %v793_v8 = vrot.slane %v3573_v18, 2  ;;  %v794_v15 = vrot.slane %v3577_v63, 2 }
  0x95   : > { %v796_v3 = vrot.slane %v3581_v4, 2  ;;  %v798_v0 = vrot.slane %v3585_v31, 2  ;;  %v799_v29 = vrot.slane %v3589_v1, 2  ;;  %v801_v53 = vrot.slane %v3593_v57, 2 }
  0x96   : > { %v803_v60 = vrot.slane %v3597_v28, 2  ;;  %v804_v6 = vrot.slane %v3601_v10, 2  ;;  %v806_v12 = vrot.slane %v3605_v43, 2  ;;  %v808_v21 = vrot.slane %v3609_v34, 2 }
  0x97   : > { %v809_v18 = vrot.slane %v3613_v35, 2  ;;  %v811_v63 = vrot.slane %v3617_v36, 2  ;;  %v813_v4 = vrot.slane %v3621_v27, 2  ;;  %v814_v31 = vrot.slane %v3625_v33, 2 }
  0x98   : > { %v787_v1 = vsel %vm742_vm1, %v784_v38, %v786_v16  ;;  %v816_v57 = vrot.slane %v3629_v42, 2  ;;  %v818_v28 = vrot.slane %v3633_v49, 2  ;;  %v819_v10 = vrot.slane %v3637_v44, 2 }
  0x99   : > { %v790_v43 = vsel %vm742_vm1, %v788_v19, %v789_v20  ;;  %v792_v34 = vsel %vm742_vm1, %v789_v20, %v791_v32  ;;  %v795_v35 = vsel %vm742_vm1, %v793_v8, %v794_v15  ;;  %v821_v36 = vrot.slane %v3641_v48, 2  ;;  %v6262_v20 = vld [vmem:[#allocation29_spill] sm:$0xff] }
  0x9a   : > { %v797_v27 = vsel %vm742_vm1, %v794_v15, %v796_v3  ;;  %v800_v33 = vsel %vm742_vm1, %v798_v0, %v799_v29  ;;  %v802_v2 = vsel %vm742_vm1, %v799_v29, %v801_v53  ;;  %v805_v42 = vsel %vm742_vm1, %v803_v60, %v804_v6 }
  0x9b   : > { %v807_v49 = vsel %vm742_vm1, %v804_v6, %v806_v12  ;;  %v810_v44 = vsel %vm742_vm1, %v808_v21, %v809_v18  ;;  %v812_v54 = vsel %vm742_vm1, %v809_v18, %v811_v63  ;;  %v815_v59 = vsel %vm742_vm1, %v813_v4, %v814_v31  ;;  %v6280_v18 = vld [vmem:[#allocation54_spill] sm:$0xff]  ;;  %v6282_v4 = vld [vmem:[#allocation55_spill] sm:$0xff] }
  0x9c   : > { %v817_v52 = vsel %vm742_vm1, %v814_v31, %v816_v57  ;;  %v820_v48 = vsel %vm742_vm1, %v818_v28, %v819_v10  ;;  %v3725_v46 = vadd.f32 %v3646_v41, %v3351_v11  ;;  %v3729_v51 = vadd.f32 %v3652_v62, %v3357_v23  ;;  %v6261_v11 = vld [vmem:[#allocation28_spill] sm:$0xff]  ;;  %v6286_v28 = vld [vmem:[#allocation57_spill] sm:$0xff] }
  0x9d   : > { %v822_v9 = vsel %vm742_vm1, %v819_v10, %v821_v36  ;;  %v3733_v55 = vadd.f32 %v750_v47, %v3361_v24  ;;  %v3736_v38 = vadd.f32 %v752_v40, %v3365_v25  ;;  %v3739_v16 = vadd.f32 %v755_v50, %v3368_v30  ;;  %v6263_v62 = vld [vmem:[#allocation36_spill] sm:$0xff]  ;;  %v6264_v24 = vld [vmem:[#allocation37_spill] sm:$0xff]  ;;  %v6266_v30 = vld [vmem:[#allocation42_spill] sm:$0xff] }
  0x9e   : > { %v3742_v19 = vadd.f32 %v757_v7, %v3371_v5  ;;  %v3745_v41 = vadd.f32 %v760_v61, %v6261_v11  ;;  %v3748_v23 = vadd.f32 %v762_v58, %v6262_v20  ;;  %v3751_v32 = vadd.f32 %v765_v26, %v6263_v62  ;;  %v6265_v25 = vld [vmem:[#allocation41_spill] sm:$0xff]  ;;  %v6267_v5 = vld [vmem:[#allocation43_spill] sm:$0xff]  ;;  %v6268_v61 = vld [vmem:[#allocation44_spill] sm:$0xff] }
  0x9f   : > { %v3754_v47 = vadd.f32 %v767_v17, %v6264_v24  ;;  %v3757_v40 = vadd.f32 %v770_v39, %v6265_v25  ;;  %v3760_v50 = vadd.f32 %v772_v45, %v6266_v30  ;;  %v3763_v7 = vadd.f32 %v775_v37, %v6267_v5  ;;  %v6269_v58 = vld [vmem:[#allocation45_spill] sm:$0xff]  ;;  %v6270_v26 = vld [vmem:[#allocation46_spill] sm:$0xff]  ;;  %v6271_v17 = vld [vmem:[#allocation47_spill] sm:$0xff] }
  0xa0   : > { %v3766_v8 = vadd.f32 %v777_v13, %v6268_v61  ;;  %v3769_v15 = vadd.f32 %v780_v56, %v6269_v58  ;;  %v3772_v3 = vadd.f32 %v782_v14, %v6270_v26  ;;  %v3775_v0 = vadd.f32 %v785_v22, %v6271_v17  ;;  %v2672_v39 = vld [vmem:[%s5921_s1 + $0x3] ss:$0 sm:$0xff]  ;;  %v6272_v45 = vld [vmem:[#allocation48_spill] sm:$0xff]  ;;  %v6273_v37 = vld [vmem:[#allocation49_spill] sm:$0xff] }
  0xa1   : > { %v3781_v29 = vadd.f32 %v787_v1, %v6272_v45  ;;  %v3784_v53 = vadd.f32 %v790_v43, %v6273_v37  ;;  %v6274_v13 = vld [vmem:[#allocation50_spill] sm:$0xff]  ;;  %v6275_v56 = vld [vmem:[#allocation51_spill] sm:$0xff]  ;;  %v6276_v14 = vld [vmem:[#allocation52_spill] sm:$0xff]  ;;  %v3799_v63 = vadd.f32 %v802_v2, %v6280_v18  ;;  %v3802_v31 = vadd.f32 %v805_v42, %v6282_v4 }
  0xa2   : > { %v3787_v60 = vadd.f32 %v792_v34, %v6274_v13  ;;  %v3790_v6 = vadd.f32 %v795_v35, %v6275_v56  ;;  %v3793_v12 = vadd.f32 %v797_v27, %v6276_v14  ;;  %v6278_v22 = vld [vmem:[#allocation53_spill] sm:$0xff]  ;;  %v6284_v1 = vld [vmem:[#allocation56_spill] sm:$0xff]  ;;  %v3808_v10 = vadd.f32 %v810_v44, %v6286_v28  ;;  %v6288_v43 = vld [vmem:[#allocation58_spill] sm:$0xff] }
  0xa3   : > { %v3796_v21 = vadd.f32 %v800_v33, %v6278_v22  ;;  %6281 = vst [vmem:[#allocation2_spill] sm:$0xff] %v3799_v63  ;;  %v3805_v57 = vadd.f32 %v807_v49, %v6284_v1  ;;  %v3811_v34 = vadd.f32 %v812_v54, %v6288_v43  ;;  %v6290_v35 = vld [vmem:[#allocation59_spill] sm:$0xff]  ;;  %v6292_v27 = vld [vmem:[#allocation60_spill] sm:$0xff]  ;;  %v6294_v2 = vld [vmem:[#allocation61_spill] sm:$0xff] }
  0xa4   : > { %6277 = vst [vmem:[#allocation63_spill] sm:$0xff] %v3793_v12  ;;  %v3814_v36 = vadd.f32 %v815_v59, %v6290_v35  ;;  %v3817_v33 = vadd.f32 %v817_v52, %v6292_v27  ;;  %v3820_v11 = vadd.f32 %v820_v48, %v6294_v2  ;;  %v6296_v42 = vld [vmem:[#allocation62_spill] sm:$0xff]  ;;  %v6298_v49 = vld [vmem:[#allocation5_spill] sm:$0xff]  ;;  %v6300_v25 = vld [vmem:[#allocation4_spill] sm:$0xff] }
  0xa5   : > { %6279 = vst [vmem:[#allocation3_spill] sm:$0xff] %v3796_v21  ;;  %v3823_v20 = vadd.f32 %v822_v9, %v6296_v42  ;;  %v891_v62 = vmul.f32 %v2672_v39, %v6298_v49  ;;  %v6299_v24 = vld [vmem:[#allocation6_spill] sm:$0xff]  ;;  %v893_v30 = vmul.f32 %v2672_v39, %v6300_v25  ;;  %v6301_v54 = vld [vmem:[#allocation7_spill] sm:$0xff]  ;;  %v6303_v58 = vld [vmem:[#allocation12_spill] sm:$0xff] }
  0xa6   : > { %6283 = vst [vmem:[#allocation28_spill] sm:$0xff] %v3802_v31  ;;  %v892_v44 = vmul.f32 %v2672_v39, %v6299_v24  ;;  %v894_v5 = vmul.f32 %v2672_v39, %v6301_v54  ;;  %v6302_v61 = vld [vmem:[#allocation11_spill] sm:$0xff]  ;;  %v896_v26 = vmul.f32 %v2672_v39, %v6303_v58  ;;  %v6304_v52 = vld [vmem:[#allocation8_spill] sm:$0xff]  ;;  %v6305_v45 = vld [vmem:[#allocation10_spill] sm:$0xff] }
  0xa7   : > { %6285 = vst [vmem:[#allocation29_spill] sm:$0xff] %v3805_v57  ;;  %v895_v59 = vmul.f32 %v2672_v39, %v6302_v61  ;;  %v897_v17 = vmul.f32 %v2672_v39, %v6304_v52  ;;  %v898_v48 = vmul.f32 %v2672_v39, %v6305_v45  ;;  %v6306_v37 = vld [vmem:[#allocation13_spill] sm:$0xff]  ;;  %v6307_v9 = vld [vmem:[#allocation15_spill] sm:$0xff]  ;;  %v6308_v14 = vld [vmem:[#allocation14_spill] sm:$0xff] }
  0xa8   : > { %6287 = vst [vmem:[#allocation36_spill] sm:$0xff] %v3808_v10  ;;  %v899_v13 = vmul.f32 %v2672_v39, %v6306_v37  ;;  %v900_v56 = vmul.f32 %v2672_v39, %v6307_v9  ;;  %v901_v22 = vmul.f32 %v2672_v39, %v6308_v14  ;;  %v6309_v18 = vld [vmem:[#allocation16_spill] sm:$0xff]  ;;  %v6310_v1 = vld [vmem:[#allocation18_spill] sm:$0xff]  ;;  %v6311_v43 = vld [vmem:[#allocation19_spill] sm:$0xff] }
  0xa9   : > { %6289 = vst [vmem:[#allocation37_spill] sm:$0xff] %v3811_v34  ;;  %v902_v4 = vmul.f32 %v2672_v39, %v6309_v18  ;;  %v903_v28 = vmul.f32 %v2672_v39, %v6310_v1  ;;  %v904_v35 = vmul.f32 %v2672_v39, %v6311_v43  ;;  %v6312_v27 = vld [vmem:[#allocation17_spill] sm:$0xff]  ;;  %v6313_v42 = vld [vmem:[#allocation20_spill] sm:$0xff]  ;;  %v6314_v61 = vld [vmem:[#allocation23_spill] sm:$0xff] }
  0xaa   : > { %6291 = vst [vmem:[#allocation41_spill] sm:$0xff] %v3814_v36  ;;  %v905_v2 = vmul.f32 %v2672_v39, %v6312_v27  ;;  %v906_v58 = vmul.f32 %v2672_v39, %v6313_v42  ;;  %v907_v52 = vmul.f32 %v2672_v39, %v6314_v61  ;;  %v6315_v54 = vld [vmem:[#allocation24_spill] sm:$0xff]  ;;  %v6316_v25 = vld [vmem:[#allocation21_spill] sm:$0xff]  ;;  %v6317_v24 = vld [vmem:[#allocation22_spill] sm:$0xff] }
  0xab   : > { %6293 = vst [vmem:[#allocation42_spill] sm:$0xff] %v3817_v33  ;;  %v908_v45 = vmul.f32 %v2672_v39, %v6315_v54  ;;  %v909_v37 = vmul.f32 %v2672_v39, %v6316_v25  ;;  %v910_v9 = vmul.f32 %v2672_v39, %v6317_v24  ;;  %v6318_v49 = vld [vmem:[#allocation25_spill] sm:$0xff]  ;;  %v6321_v33 = vld [vmem:[#allocation30_spill] sm:$0xff]  ;;  %v6322_v36 = vld [vmem:[#allocation32_spill] sm:$0xff] }
  0xac   : > { %6295 = vst [vmem:[#allocation43_spill] sm:$0xff] %v3820_v11  ;;  %v911_v14 = vmul.f32 %v2672_v39, %v6318_v49  ;;  %v6320_v11 = vld [vmem:[#allocation26_spill] sm:$0xff]  ;;  %v914_v43 = vmul.f32 %v2672_v39, %v6321_v33  ;;  %v915_v27 = vmul.f32 %v2672_v39, %v6322_v36  ;;  %v6323_v34 = vld [vmem:[#allocation33_spill] sm:$0xff]  ;;  %v6324_v10 = vld [vmem:[#allocation31_spill] sm:$0xff]  ;;  %v3861_v33 = vadd.f32 %v892_v44, %v3729_v51 }
  0xad   : > { %6297 = vst [vmem:[#allocation44_spill] sm:$0xff] %v3823_v20  ;;  %v6319_v20 = vld [vmem:[#allocation27_spill] sm:$0xff]  ;;  %v913_v1 = vmul.f32 %v2672_v39, %v6320_v11  ;;  %v916_v42 = vmul.f32 %v2672_v39, %v6323_v34  ;;  %v917_v61 = vmul.f32 %v2672_v39, %v6324_v10  ;;  %v6325_v57 = vld [vmem:[#allocation34_spill] sm:$0xff]  ;;  %v6327_v63 = vld [vmem:[#allocation40_spill] sm:$0xff]  ;;  %v3858_v11 = vadd.f32 %v891_v62, %v3725_v46 }
  0xae   : > { %v912_v18 = vmul.f32 %v2672_v39, %v6319_v20  ;;  %v918_v54 = vmul.f32 %v2672_v39, %v6325_v57  ;;  %v6326_v31 = vld [vmem:[#allocation39_spill] sm:$0xff]  ;;  %v920_v24 = vmul.f32 %v2672_v39, %v6327_v63  ;;  %v6329_v12 = vld [vmem:[#allocation38_spill] sm:$0xff]  ;;  %v3864_v34 = vadd.f32 %v893_v30, %v3733_v55 }
  0xaf   : > { %v919_v25 = vmul.f32 %v2672_v39, %v6326_v31  ;;  %v6328_v21 = vld [vmem:[#allocation35_spill] sm:$0xff]  ;;  %v922_v20 = vmul.f32 %v2672_v39, %v6329_v12  ;;  %v3867_v57 = vadd.f32 %v894_v5, %v3736_v38  ;;  %v3870_v31 = vadd.f32 %v895_v59, %v3739_v16  ;;  %v6348_v30 = vld [vmem:[#allocation2_spill] sm:$0xff]  ;;  %v6350_v5 = vld [vmem:[#allocation28_spill] sm:$0xff] }
  0xb0   : > { %v921_v49 = vmul.f32 %v2672_v39, %v6328_v21  ;;  %v3873_v21 = vadd.f32 %v896_v26, %v3742_v19  ;;  %v3876_v39 = vadd.f32 %v897_v17, %v3745_v41  ;;  %v3879_v46 = vadd.f32 %v898_v48, %v3748_v23  ;;  %v6346_v44 = vld [vmem:[#allocation3_spill] sm:$0xff]  ;;  %v6352_v59 = vld [vmem:[#allocation29_spill] sm:$0xff] }
  0xb1   : > { %v3882_v51 = vadd.f32 %v899_v13, %v3751_v32  ;;  %v3885_v55 = vadd.f32 %v900_v56, %v3754_v47  ;;  %v3888_v38 = vadd.f32 %v901_v22, %v3757_v40  ;;  %v3891_v16 = vadd.f32 %v902_v4, %v3760_v50  ;;  %v283_v40 = vld [vmem:[%s2811_s19 + $0xc8] sm:$0x1]  ;;  %v6367_v4 = vld [vmem:[#allocation5_spill] sm:$0xff] }
  0xb2   : > { %6330 = vst [vmem:[#allocation45_spill] sm:$0xff] %v3879_v46  ;;  %v3894_v19 = vadd.f32 %v903_v28, %v3763_v7  ;;  %v3897_v41 = vadd.f32 %v904_v35, %v3766_v8  ;;  %v3900_v23 = vadd.f32 %v905_v2, %v3769_v15  ;;  %v3903_v32 = vadd.f32 %v906_v58, %v3772_v3  ;;  %v3924_v15 = vld [vmem:[%s5921_s1 + $0x4] ss:$0 sm:$0xff]  ;;  %v6344_v3 = vld [vmem:[#allocation63_spill] sm:$0xff]  ;;  %v6354_v58 = vld [vmem:[#allocation36_spill] sm:$0xff] }
  0xb3   : > { %6331 = vst [vmem:[#allocation46_spill] sm:$0xff] %v3882_v51  ;;  %v3906_v47 = vadd.f32 %v907_v52, %v3775_v0  ;;  %v3910_v62 = vadd.f32 %v908_v45, %v3781_v29  ;;  %v3913_v50 = vadd.f32 %v909_v37, %v3784_v53  ;;  %v3916_v7 = vadd.f32 %v910_v9, %v3787_v60  ;;  %v6356_v52 = vld [vmem:[#allocation37_spill] sm:$0xff]  ;;  %v6360_v37 = vld [vmem:[#allocation42_spill] sm:$0xff]  ;;  %v6362_v9 = vld [vmem:[#allocation43_spill] sm:$0xff] }
  0xb4   : > { %6332 = vst [vmem:[#allocation47_spill] sm:$0xff] %v3885_v55  ;;  %v3919_v8 = vadd.f32 %v911_v14, %v3790_v6  ;;  %v3927_v0 = vadd.f32 %v912_v18, %v6344_v3  ;;  %v3930_v29 = vadd.f32 %v913_v1, %v6346_v44  ;;  %v3933_v53 = vadd.f32 %v914_v43, %v6348_v30  ;;  %v6358_v45 = vld [vmem:[#allocation41_spill] sm:$0xff]  ;;  %v6364_v14 = vld [vmem:[#allocation44_spill] sm:$0xff]  ;;  %v6368_v1 = vld [vmem:[#allocation6_spill] sm:$0xff] }
  0xb5   : > { %6333 = vst [vmem:[#allocation48_spill] sm:$0xff] %v3888_v38  ;;  %v3936_v60 = vadd.f32 %v915_v27, %v6350_v5  ;;  %v3939_v6 = vadd.f32 %v916_v42, %v6352_v59  ;;  %v3942_v26 = vadd.f32 %v917_v61, %v6354_v58  ;;  %v3945_v17 = vadd.f32 %v918_v54, %v6356_v52  ;;  %v6369_v28 = vld [vmem:[#allocation9_spill] sm:$0xff]  ;;  %v6370_v43 = vld [vmem:[#allocation4_spill] sm:$0xff]  ;;  %v6371_v35 = vld [vmem:[#allocation7_spill] sm:$0xff] }
  0xb6   : > { %6334 = vst [vmem:[#allocation49_spill] sm:$0xff] %v3891_v16  ;;  %v3948_v48 = vadd.f32 %v919_v25, %v6358_v45  ;;  %v3951_v13 = vadd.f32 %v920_v24, %v6360_v37  ;;  %v3954_v56 = vadd.f32 %v921_v49, %v6362_v9  ;;  %v3957_v22 = vadd.f32 %v922_v20, %v6364_v14  ;;  %v6372_v20 = vld [vmem:[#allocation64_spill] sm:$0xff]  ;;  %v6373_v2 = vld [vmem:[#allocation11_spill] sm:$0xff]  ;;  %v6375_v44 = vld [vmem:[#allocation65_spill] sm:$0xff] }
  0xb7   : > { %6335 = vst [vmem:[#allocation50_spill] sm:$0xff] %v3894_v19  ;;  %v3959_v18 = vunpack.c.l.bf16 %v283_v40  ;;  %v958_v61 = vmul.f32 %v3924_v15, %v6367_v4  ;;  %v959_v54 = vmul.f32 %v3924_v15, %v6368_v1  ;;  %v960_v25 = vmul.f32 %v3924_v15, %v6369_v28  ;;  %v6374_v40 = vld [vmem:[#allocation12_spill] sm:$0xff]  ;;  %v6377_v58 = vld [vmem:[#allocation10_spill] sm:$0xff]  ;;  %v6379_v9 = vld [vmem:[#allocation13_spill] sm:$0xff] }
  0xb8   : > { %6336 = vst [vmem:[#allocation51_spill] sm:$0xff] %v3897_v41  ;;  %v961_v24 = vmul.f32 %v3924_v15, %v6370_v43  ;;  %v3971_v49 = vmul.f32 %v3924_v15, %v6371_v35  ;;  %v3975_v27 = vmul.f32 %v3924_v15, %v6372_v20  ;;  %v3979_v42 = vmul.f32 %v3924_v15, %v6373_v2  ;;  %v6376_v5 = vld [vmem:[#allocation8_spill] sm:$0xff]  ;;  %v6378_v45 = vld [vmem:[#allocation66_spill] sm:$0xff]  ;;  %v6381_v2 = vld [vmem:[#allocation67_spill] sm:$0xff] }
  0xb9   : > { %6337 = vst [vmem:[#allocation52_spill] sm:$0xff] %v3900_v23  ;;  %v3983_v3 = vmul.f32 %v3924_v15, %v6374_v40  ;;  %v3987_v30 = vmul.f32 %v3924_v15, %v6375_v44  ;;  %v3991_v59 = vmul.f32 %v3924_v15, %v6376_v5  ;;  %v3995_v52 = vmul.f32 %v3924_v15, %v6377_v58  ;;  %v6380_v40 = vld [vmem:[#allocation15_spill] sm:$0xff]  ;;  %v6382_v20 = vld [vmem:[#allocation14_spill] sm:$0xff]  ;;  %v6383_v35 = vld [vmem:[#allocation16_spill] sm:$0xff] }
  0xba   : > { %6338 = vst [vmem:[#allocation53_spill] sm:$0xff] %v3903_v32  ;;  %v3999_v37 = vmul.f32 %v3924_v15, %v6378_v45  ;;  %v4003_v14 = vmul.f32 %v3924_v15, %v6379_v9  ;;  %v4007_v44 = vmul.f32 %v3924_v15, %v6380_v40  ;;  %v4011_v5 = vmul.f32 %v3924_v15, %v6381_v2  ;;  %v6384_v43 = vld [vmem:[#allocation68_spill] sm:$0xff]  ;;  %v6385_v28 = vld [vmem:[#allocation18_spill] sm:$0xff]  ;;  %v6386_v1 = vld [vmem:[#allocation19_spill] sm:$0xff] }
  0xbb   : > { %6339 = vst [vmem:[#allocation54_spill] sm:$0xff] %v3906_v47  ;;  %v4015_v58 = vmul.f32 %v3924_v15, %v6382_v20  ;;  %v4019_v45 = vmul.f32 %v3924_v15, %v6383_v35  ;;  %v4023_v9 = vmul.f32 %v3924_v15, %v6384_v43  ;;  %v4027_v40 = vmul.f32 %v3924_v15, %v6385_v28  ;;  %v6387_v4 = vld [vmem:[#allocation69_spill] sm:$0xff] }
  0xbc   : > { %6340 = vst [vmem:[#allocation55_spill] sm:$0xff] %v3910_v62  ;;  %v4031_v2 = vmul.f32 %v3924_v15, %v6386_v1  ;;  %v4035_v20 = vmul.f32 %v3924_v15, %v6387_v4  ;;  %v6402_v62 = vld [vmem:[#allocation74_spill] sm:$0xff]  ;;  %v6403_v47 = vld [vmem:[#allocation33_spill] sm:$0xff]  ;;  %v1054_v32 = vrot.slane %v958_v61, 1  ;;  %v1055_v23 = vrot.slane %v959_v54, 1  ;;  %v6407_v54 = vld [vmem:[#allocation39_spill] sm:$0xff] }
  0xbd   : > { %6341 = vst [vmem:[#allocation56_spill] sm:$0xff] %v3913_v50  ;;  %v6401_v50 = vld [vmem:[#allocation30_spill] sm:$0xff]  ;;  %v1059_v19 = vrot.slane %v961_v24, 1  ;;  %v1060_v16 = vrot.slane %v3971_v49, 1  ;;  %v6408_v24 = vld [vmem:[#allocation77_spill] sm:$0xff]  ;;  %v1067_v46 = vrot.slane %v3987_v30, 1 }
  0xbe   : > { %6342 = vst [vmem:[#allocation57_spill] sm:$0xff] %v3916_v7  ;;  %v6400_v7 = vld [vmem:[#allocation26_spill] sm:$0xff]  ;;  %v4132_v49 = vmul.f32 %v3924_v15, %v6408_v24  ;;  %v4147_v55 = vsel %vm499_vm0, %v1054_v32, %v1055_v23  ;;  %v1064_v24 = vrot.slane %v3979_v42, 1  ;;  %v1072_v32 = vrot.slane %v3999_v37, 1 }
  0xbf   : > { %6343 = vst [vmem:[#allocation58_spill] sm:$0xff] %v3919_v8  ;;  %v6399_v8 = vld [vmem:[#allocation73_spill] sm:$0xff]  ;;  %v1075_v42 = vrot.slane %v4007_v44, 1  ;;  %v1084_v30 = vrot.slane %v4027_v40, 1 }
  0xc0   : > { %6345 = vst [vmem:[#allocation59_spill] sm:$0xff] %v3927_v0  ;;  %v6398_v0 = vld [vmem:[#allocation27_spill] sm:$0xff] }
  0xc1   : > { %6347 = vst [vmem:[#allocation60_spill] sm:$0xff] %v3930_v29  ;;  %v6397_v29 = vld [vmem:[#allocation25_spill] sm:$0xff] }
  0xc2   : > { %6349 = vst [vmem:[#allocation61_spill] sm:$0xff] %v3933_v53  ;;  %v6396_v53 = vld [vmem:[#allocation72_spill] sm:$0xff] }
  0xc3   : > { %6351 = vst [vmem:[#allocation62_spill] sm:$0xff] %v3936_v60  ;;  %v6395_v60 = vld [vmem:[#allocation22_spill] sm:$0xff] }
  0xc4   : > { %6353 = vst [vmem:[#allocation63_spill] sm:$0xff] %v3939_v6  ;;  %v6394_v6 = vld [vmem:[#allocation21_spill] sm:$0xff] }
  0xc5   : > { %6355 = vst [vmem:[#allocation3_spill] sm:$0xff] %v3942_v26  ;;  %v6393_v26 = vld [vmem:[#allocation71_spill] sm:$0xff] }
  0xc6   : > { %6357 = vst [vmem:[#allocation2_spill] sm:$0xff] %v3945_v17  ;;  %v6392_v17 = vld [vmem:[#allocation24_spill] sm:$0xff] }
  0xc7   : > { %6359 = vst [vmem:[#allocation28_spill] sm:$0xff] %v3948_v48  ;;  %v6391_v48 = vld [vmem:[#allocation23_spill] sm:$0xff]  ;;  %v4055_v4 = vmul.f32 %v3924_v15, %v6392_v17  ;;  %v4075_v17 = vmul.f32 %v3924_v15, %v6397_v29  ;;  %v4095_v29 = vmul.f32 %v3924_v15, %v6402_v62  ;;  %v4112_v62 = vmul.f32 %v3924_v15, %v6324_v10 }
  0xc8   : > { %6361 = vst [vmem:[#allocation29_spill] sm:$0xff] %v3951_v13  ;;  %v6390_v13 = vld [vmem:[#allocation70_spill] sm:$0xff]  ;;  %v4051_v1 = vmul.f32 %v3924_v15, %v6391_v48  ;;  %v4071_v48 = vmul.f32 %v3924_v15, %v6396_v53  ;;  %v4091_v53 = vmul.f32 %v3924_v15, %v6401_v50  ;;  %v1057_v50 = vrot.slane %v960_v25, 1  ;;  %v6409_v10 = vld [vmem:[#allocation35_spill] sm:$0xff] }
  0xc9   : > { %6363 = vst [vmem:[#allocation36_spill] sm:$0xff] %v3954_v56  ;;  %v6389_v56 = vld [vmem:[#allocation20_spill] sm:$0xff]  ;;  %v4047_v28 = vmul.f32 %v3924_v15, %v6390_v13  ;;  %v4067_v13 = vmul.f32 %v3924_v15, %v6395_v60  ;;  %v4087_v60 = vmul.f32 %v3924_v15, %v6400_v7  ;;  %v6404_v7 = vld [vmem:[#allocation75_spill] sm:$0xff]  ;;  %v4128_v25 = vmul.f32 %v3924_v15, %v6327_v63 }
  0xca   : > { %6365 = vst [vmem:[#allocation37_spill] sm:$0xff] %v3957_v22  ;;  %v6388_v22 = vld [vmem:[#allocation17_spill] sm:$0xff]  ;;  %v4043_v43 = vmul.f32 %v3924_v15, %v6389_v56  ;;  %v4063_v56 = vmul.f32 %v3924_v15, %v6394_v6  ;;  %v4083_v6 = vmul.f32 %v3924_v15, %v6399_v8  ;;  %v4103_v8 = vmul.f32 %v3924_v15, %v6403_v47  ;;  %v6406_v47 = vld [vmem:[#allocation76_spill] sm:$0xff] }
  0xcb   : > { %6366 = vst [vmem:[#allocation41_spill] sm:$0xff] %v3959_v18  ;;  %v4039_v35 = vmul.f32 %v3924_v15, %v6388_v22  ;;  %v4059_v22 = vmul.f32 %v3924_v15, %v6393_v26  ;;  %v4079_v26 = vmul.f32 %v3924_v15, %v6398_v0  ;;  %v4099_v0 = vmul.f32 %v3924_v15, %v6322_v36  ;;  %v6405_v36 = vld [vmem:[#allocation34_spill] sm:$0xff] }
  0xcc   : > { %v4107_v41 = vmul.f32 %v3924_v15, %v6404_v7  ;;  %v4116_v38 = vmul.f32 %v3924_v15, %v6405_v36  ;;  %v4120_v61 = vmul.f32 %v3924_v15, %v6406_v47  ;;  %v4124_v7 = vmul.f32 %v3924_v15, %v6407_v54 }
  0xcd   : > { %v4136_v36 = vmul.f32 %v3924_v15, %v6409_v10  ;;  %v4140_v47 = vmul.f32 %v3924_v15, %v6329_v12  ;;  %v4144_v54 = vmul.f32 %v3924_v15, %v3959_v18  ;;  %v1062_v63 = vrot.slane %v3975_v27, 1 }
  0xce   : > { %v4152_v51 = vsel %vm499_vm0, %v1055_v23, %v1057_v50  ;;  %v4155_v10 = vsel %vm499_vm0, %v1059_v19, %v1060_v16  ;;  %v1065_v12 = vrot.slane %v3983_v3, 1  ;;  %v1069_v15 = vrot.slane %v3991_v59, 1 }
  0xcf   : > { %v1070_v18 = vrot.slane %v3995_v52, 1  ;;  %v1074_v27 = vrot.slane %v4003_v14, 1  ;;  %v1077_v23 = vrot.slane %v4011_v5, 1  ;;  %v1079_v50 = vrot.slane %v4015_v58, 1 }
  0xd0   : > { %v1080_v19 = vrot.slane %v4019_v45, 1  ;;  %v1082_v3 = vrot.slane %v4023_v9, 1  ;;  %v1085_v59 = vrot.slane %v4031_v2, 1  ;;  %v1087_v52 = vrot.slane %v4035_v20, 1 }
  0xd1   : > { %v1063_v37 = vsel %vm499_vm0, %v1060_v16, %v1062_v63  ;;  %v1089_v14 = vrot.slane %v4039_v35, 1  ;;  %v1090_v44 = vrot.slane %v4043_v43, 1  ;;  %v1092_v5 = vrot.slane %v4047_v28, 1 }
  0xd2   : > { %v1066_v58 = vsel %vm499_vm0, %v1064_v24, %v1065_v12  ;;  %v1068_v45 = vsel %vm499_vm0, %v1065_v12, %v1067_v46  ;;  %v1094_v9 = vrot.slane %v4051_v1, 1  ;;  %v1095_v40 = vrot.slane %v4055_v4, 1 }
  0xd3   : > { %v1071_v2 = vsel %vm499_vm0, %v1069_v15, %v1070_v18  ;;  %v1073_v20 = vsel %vm499_vm0, %v1070_v18, %v1072_v32  ;;  %v1076_v63 = vsel %vm499_vm0, %v1074_v27, %v1075_v42  ;;  %v1078_v16 = vsel %vm499_vm0, %v1075_v42, %v1077_v23 }
  0xd4   : > { %v1081_v43 = vsel %vm499_vm0, %v1079_v50, %v1080_v19  ;;  %v1083_v28 = vsel %vm499_vm0, %v1080_v19, %v1082_v3  ;;  %v1086_v35 = vsel %vm499_vm0, %v1084_v30, %v1085_v59  ;;  %v1088_v12 = vsel %vm499_vm0, %v1085_v59, %v1087_v52 }
  0xd5   : > { %v1091_v46 = vsel %vm499_vm0, %v1089_v14, %v1090_v44  ;;  %v1093_v4 = vsel %vm499_vm0, %v1090_v44, %v1092_v5  ;;  %v1097_v1 = vrot.slane %v4059_v22, 1  ;;  %v1099_v18 = vrot.slane %v4063_v56, 1 }
  0xd6   : > { %v1096_v24 = vsel %vm499_vm0, %v1094_v9, %v1095_v40  ;;  %v1100_v15 = vrot.slane %v4067_v13, 1  ;;  %v1102_v32 = vrot.slane %v4071_v48, 1  ;;  %v1104_v27 = vrot.slane %v4075_v17, 1 }
  0xd7   : > { %v1105_v42 = vrot.slane %v4079_v26, 1  ;;  %v1107_v23 = vrot.slane %v4083_v6, 1  ;;  %v1109_v50 = vrot.slane %v4087_v60, 1  ;;  %v1110_v19 = vrot.slane %v4091_v53, 1 }
  0xd8   : > { %v1112_v22 = vrot.slane %v4095_v29, 1  ;;  %v1114_v56 = vrot.slane %v4099_v0, 1  ;;  %v1115_v3 = vrot.slane %v4103_v8, 1  ;;  %v1117_v13 = vrot.slane %v4107_v41, 1 }
  0xd9   : > { %v1119_v48 = vrot.slane %v4112_v62, 1  ;;  %v1120_v17 = vrot.slane %v4116_v38, 1  ;;  %v1122_v26 = vrot.slane %v4120_v61, 1  ;;  %v1124_v6 = vrot.slane %v4124_v7, 1 }
  0xda   : > { %v1125_v60 = vrot.slane %v4128_v25, 1  ;;  %v1127_v53 = vrot.slane %v4132_v49, 1  ;;  %v1129_v29 = vrot.slane %v4136_v36, 1  ;;  %v1130_v0 = vrot.slane %v4140_v47, 1 }
  0xdb   : > { %v1098_v8 = vsel %vm499_vm0, %v1095_v40, %v1097_v1  ;;  %v1101_v41 = vsel %vm499_vm0, %v1099_v18, %v1100_v15  ;;  %v1103_v62 = vsel %vm499_vm0, %v1100_v15, %v1102_v32  ;;  %v1132_v38 = vrot.slane %v4144_v54, 1 }
  0xdc   : > { %v1106_v61 = vsel %vm499_vm0, %v1104_v27, %v1105_v42  ;;  %v1108_v7 = vsel %vm499_vm0, %v1105_v42, %v1107_v23  ;;  %v1111_v25 = vsel %vm499_vm0, %v1109_v50, %v1110_v19  ;;  %v1113_v49 = vsel %vm499_vm0, %v1110_v19, %v1112_v22 }
  0xdd   : > { %v1116_v36 = vsel %vm499_vm0, %v1114_v56, %v1115_v3  ;;  %v1118_v47 = vsel %vm499_vm0, %v1115_v3, %v1117_v13  ;;  %v1121_v30 = vsel %vm499_vm0, %v1119_v48, %v1120_v17  ;;  %v1123_v59 = vsel %vm499_vm0, %v1120_v17, %v1122_v26  ;;  %v6438_v56 = vld [vmem:[#allocation59_spill] sm:$0xff]  ;;  %v6440_v3 = vld [vmem:[#allocation60_spill] sm:$0xff]  ;;  %v6442_v48 = vld [vmem:[#allocation61_spill] sm:$0xff] }
  0xde   : > { %v1126_v52 = vsel %vm499_vm0, %v1124_v6, %v1125_v60  ;;  %v1128_v54 = vsel %vm499_vm0, %v1125_v60, %v1127_v53  ;;  %v1131_v14 = vsel %vm499_vm0, %v1129_v29, %v1130_v0  ;;  %v4228_v44 = vadd.f32 %v4147_v55, %v3858_v11  ;;  %v6410_v55 = vld [vmem:[#allocation45_spill] sm:$0xff]  ;;  %v6444_v26 = vld [vmem:[#allocation62_spill] sm:$0xff]  ;;  %v6446_v60 = vld [vmem:[#allocation63_spill] sm:$0xff] }
  0xdf   : > { %v1133_v5 = vsel %vm499_vm0, %v1130_v0, %v1132_v38  ;;  %v4233_v9 = vadd.f32 %v4152_v51, %v3861_v33  ;;  %v4237_v40 = vadd.f32 %v4155_v10, %v3864_v34  ;;  %v4240_v1 = vadd.f32 %v1063_v37, %v3867_v57  ;;  %v6412_v33 = vld [vmem:[#allocation46_spill] sm:$0xff]  ;;  %v6414_v10 = vld [vmem:[#allocation47_spill] sm:$0xff]  ;;  %v6416_v57 = vld [vmem:[#allocation48_spill] sm:$0xff] }
  0xe0   : > { %v4243_v18 = vadd.f32 %v1066_v58, %v3870_v31  ;;  %v4246_v15 = vadd.f32 %v1068_v45, %v3873_v21  ;;  %v4249_v11 = vadd.f32 %v1071_v2, %v3876_v39  ;;  %v4252_v32 = vadd.f32 %v1073_v20, %v6410_v55  ;;  %v6418_v31 = vld [vmem:[#allocation49_spill] sm:$0xff]  ;;  %v6420_v21 = vld [vmem:[#allocation50_spill] sm:$0xff]  ;;  %v6422_v39 = vld [vmem:[#allocation51_spill] sm:$0xff] }
  0xe1   : > { %v4255_v51 = vadd.f32 %v1076_v63, %v6412_v33  ;;  %v4258_v34 = vadd.f32 %v1078_v16, %v6414_v10  ;;  %v4261_v37 = vadd.f32 %v1081_v43, %v6416_v57  ;;  %v4264_v58 = vadd.f32 %v1083_v28, %v6418_v31  ;;  %v6424_v20 = vld [vmem:[#allocation52_spill] sm:$0xff]  ;;  %v6426_v63 = vld [vmem:[#allocation53_spill] sm:$0xff]  ;;  %v6428_v16 = vld [vmem:[#allocation54_spill] sm:$0xff] }
  0xe2   : > { %6411 = vst [vmem:[#allocation42_spill] sm:$0xff] %v4252_v32  ;;  %v4267_v45 = vadd.f32 %v1086_v35, %v6420_v21  ;;  %v4270_v2 = vadd.f32 %v1088_v12, %v6422_v39  ;;  %v4273_v27 = vadd.f32 %v1091_v46, %v6424_v20  ;;  %v4276_v42 = vadd.f32 %v1093_v4, %v6426_v63  ;;  %v6430_v43 = vld [vmem:[#allocation55_spill] sm:$0xff]  ;;  %v6432_v28 = vld [vmem:[#allocation56_spill] sm:$0xff]  ;;  %v6434_v35 = vld [vmem:[#allocation57_spill] sm:$0xff] }
  0xe3   : > { %6413 = vst [vmem:[#allocation43_spill] sm:$0xff] %v4255_v51  ;;  %v4279_v23 = vadd.f32 %v1096_v24, %v6428_v16  ;;  %v4282_v50 = vadd.f32 %v1098_v8, %v6430_v43  ;;  %v4285_v19 = vadd.f32 %v1101_v41, %v6432_v28  ;;  %v4288_v22 = vadd.f32 %v1103_v62, %v6434_v35  ;;  %v4293_v12 = vld [vmem:[%s5921_s1 + $0x5] ss:$0 sm:$0xff]  ;;  %v6448_v29 = vld [vmem:[#allocation3_spill] sm:$0xff]  ;;  %v6452_v62 = vld [vmem:[#allocation28_spill] sm:$0xff] }
  0xe4   : > { %6415 = vst [vmem:[#allocation44_spill] sm:$0xff] %v4258_v34  ;;  %v6436_v46 = vld [vmem:[#allocation58_spill] sm:$0xff]  ;;  %v4299_v24 = vadd.f32 %v1108_v7, %v6438_v56  ;;  %v4302_v13 = vadd.f32 %v1111_v25, %v6440_v3  ;;  %v4305_v17 = vadd.f32 %v1113_v49, %v6442_v48  ;;  %v4308_v6 = vadd.f32 %v1116_v36, %v6444_v26  ;;  %v6456_v25 = vld [vmem:[#allocation36_spill] sm:$0xff]  ;;  %v6458_v36 = vld [vmem:[#allocation37_spill] sm:$0xff] }
  0xe5   : > { %6417 = vst [vmem:[#allocation45_spill] sm:$0xff] %v4261_v37  ;;  %v4296_v4 = vadd.f32 %v1106_v61, %v6436_v46  ;;  %v4311_v53 = vadd.f32 %v1118_v47, %v6446_v60  ;;  %v4314_v0 = vadd.f32 %v1121_v30, %v6448_v29  ;;  %v6450_v8 = vld [vmem:[#allocation2_spill] sm:$0xff]  ;;  %v4320_v38 = vadd.f32 %v1126_v52, %v6452_v62  ;;  %v6454_v61 = vld [vmem:[#allocation29_spill] sm:$0xff]  ;;  %v6463_v52 = vld [vmem:[#allocation4_spill] sm:$0xff] }
  0xe6   : > { %6419 = vst [vmem:[#allocation46_spill] sm:$0xff] %v4264_v58  ;;  %v4317_v41 = vadd.f32 %v1123_v59, %v6450_v8  ;;  %v4323_v7 = vadd.f32 %v1128_v54, %v6454_v61  ;;  %v4326_v49 = vadd.f32 %v1131_v14, %v6456_v25  ;;  %v4329_v55 = vadd.f32 %v1133_v5, %v6458_v36  ;;  %v6460_v47 = vld [vmem:[#allocation5_spill] sm:$0xff]  ;;  %v6461_v30 = vld [vmem:[#allocation6_spill] sm:$0xff]  ;;  %v6464_v54 = vld [vmem:[#allocation7_spill] sm:$0xff] }
  0xe7   : > { %6421 = vst [vmem:[#allocation47_spill] sm:$0xff] %v4267_v45  ;;  %v1200_v33 = vmul.f32 %v4293_v12, %v6460_v47  ;;  %v1201_v10 = vmul.f32 %v4293_v12, %v6461_v30  ;;  %v6462_v59 = vld [vmem:[#allocation9_spill] sm:$0xff]  ;;  %v1203_v31 = vmul.f32 %v4293_v12, %v6463_v52  ;;  %v4341_v21 = vmul.f32 %v4293_v12, %v6464_v54  ;;  %v6465_v14 = vld [vmem:[#allocation64_spill] sm:$0xff]  ;;  %v6466_v39 = vld [vmem:[#allocation11_spill] sm:$0xff] }
  0xe8   : > { %6423 = vst [vmem:[#allocation48_spill] sm:$0xff] %v4270_v2  ;;  %v1202_v57 = vmul.f32 %v4293_v12, %v6462_v59  ;;  %v4345_v5 = vmul.f32 %v4293_v12, %v6465_v14  ;;  %v4349_v20 = vmul.f32 %v4293_v12, %v6466_v39  ;;  %v6467_v63 = vld [vmem:[#allocation12_spill] sm:$0xff]  ;;  %v6468_v43 = vld [vmem:[#allocation65_spill] sm:$0xff]  ;;  %v6470_v56 = vld [vmem:[#allocation10_spill] sm:$0xff] }
  0xe9   : > { %6425 = vst [vmem:[#allocation49_spill] sm:$0xff] %v4273_v27  ;;  %v4353_v16 = vmul.f32 %v4293_v12, %v6467_v63  ;;  %v4357_v28 = vmul.f32 %v4293_v12, %v6468_v43  ;;  %v6469_v35 = vld [vmem:[#allocation8_spill] sm:$0xff]  ;;  %v4365_v3 = vmul.f32 %v4293_v12, %v6470_v56  ;;  %v6471_v48 = vld [vmem:[#allocation66_spill] sm:$0xff]  ;;  %v6472_v60 = vld [vmem:[#allocation13_spill] sm:$0xff] }
  0xea   : > { %6427 = vst [vmem:[#allocation50_spill] sm:$0xff] %v4276_v42  ;;  %v4361_v46 = vmul.f32 %v4293_v12, %v6469_v35  ;;  %v4369_v26 = vmul.f32 %v4293_v12, %v6471_v48  ;;  %v4373_v29 = vmul.f32 %v4293_v12, %v6472_v60  ;;  %v6473_v8 = vld [vmem:[#allocation15_spill] sm:$0xff]  ;;  %v6475_v36 = vld [vmem:[#allocation14_spill] sm:$0xff]  ;;  %v6476_v30 = vld [vmem:[#allocation16_spill] sm:$0xff]  ;;  %v1302_v42 = vrot.slane %v4341_v21, 2 }
  0xeb   : > { %6429 = vst [vmem:[#allocation51_spill] sm:$0xff] %v4279_v23  ;;  %v4377_v62 = vmul.f32 %v4293_v12, %v6473_v8  ;;  %v6474_v61 = vld [vmem:[#allocation67_spill] sm:$0xff]  ;;  %v4385_v47 = vmul.f32 %v4293_v12, %v6475_v36  ;;  %v4389_v59 = vmul.f32 %v4293_v12, %v6476_v30  ;;  %v6477_v48 = vld [vmem:[#allocation68_spill] sm:$0xff]  ;;  %v6478_v14 = vld [vmem:[#allocation18_spill] sm:$0xff]  ;;  %v1301_v23 = vrot.slane %v1203_v31, 2 }
  0xec   : > { %6431 = vst [vmem:[#allocation52_spill] sm:$0xff] %v4282_v50  ;;  %v4381_v25 = vmul.f32 %v4293_v12, %v6474_v61  ;;  %v4393_v43 = vmul.f32 %v4293_v12, %v6477_v48  ;;  %v4397_v8 = vmul.f32 %v4293_v12, %v6478_v14  ;;  %v6479_v60 = vld [vmem:[#allocation19_spill] sm:$0xff]  ;;  %v6480_v56 = vld [vmem:[#allocation69_spill] sm:$0xff]  ;;  %v6482_v63 = vld [vmem:[#allocation20_spill] sm:$0xff]  ;;  %v1309_v32 = vrot.slane %v4357_v28, 2 }
  0xed   : > { %6433 = vst [vmem:[#allocation53_spill] sm:$0xff] %v4285_v19  ;;  %v4401_v61 = vmul.f32 %v4293_v12, %v6479_v60  ;;  %v4405_v36 = vmul.f32 %v4293_v12, %v6480_v56  ;;  %v6481_v35 = vld [vmem:[#allocation17_spill] sm:$0xff]  ;;  %v4413_v48 = vmul.f32 %v4293_v12, %v6482_v63  ;;  %v6483_v39 = vld [vmem:[#allocation70_spill] sm:$0xff]  ;;  %v6484_v54 = vld [vmem:[#allocation23_spill] sm:$0xff]  ;;  %v1297_v19 = vrot.slane %v1201_v10, 2 }
  0xee   : > { %6435 = vst [vmem:[#allocation54_spill] sm:$0xff] %v4288_v22  ;;  %v4409_v30 = vmul.f32 %v4293_v12, %v6481_v35  ;;  %v4417_v14 = vmul.f32 %v4293_v12, %v6483_v39  ;;  %v4421_v60 = vmul.f32 %v4293_v12, %v6484_v54  ;;  %v6485_v52 = vld [vmem:[#allocation24_spill] sm:$0xff]  ;;  %v1296_v22 = vrot.slane %v1200_v33, 2  ;;  %v6502_v10 = vld [vmem:[#allocation39_spill] sm:$0xff]  ;;  %v6504_v21 = vld [vmem:[#allocation77_spill] sm:$0xff] }
  0xef   : > { %6437 = vst [vmem:[#allocation55_spill] sm:$0xff] %v4296_v4  ;;  %v4425_v56 = vmul.f32 %v4293_v12, %v6485_v52  ;;  %v6497_v4 = vld [vmem:[#allocation33_spill] sm:$0xff]  ;;  %v6505_v45 = vld [vmem:[#allocation35_spill] sm:$0xff]  ;;  %v6506_v58 = vld [vmem:[#allocation38_spill] sm:$0xff]  ;;  %v1326_v28 = vrot.slane %v4397_v8, 2 }
  0xf0   : > { %6439 = vst [vmem:[#allocation56_spill] sm:$0xff] %v4299_v24  ;;  %v6496_v24 = vld [vmem:[#allocation32_spill] sm:$0xff]  ;;  %v6507_v37 = vld [vmem:[#allocation41_spill] sm:$0xff]  ;;  %v4517_v34 = vsel %vm742_vm1, %v1296_v22, %v1297_v19  ;;  %v1314_v22 = vrot.slane %v4369_v26, 2 }
  0xf1   : > { %6441 = vst [vmem:[#allocation57_spill] sm:$0xff] %v4302_v13  ;;  %v6495_v13 = vld [vmem:[#allocation74_spill] sm:$0xff]  ;;  %v1337_v8 = vrot.slane %v4425_v56, 2 }
  0xf2   : > { %6443 = vst [vmem:[#allocation58_spill] sm:$0xff] %v4305_v17  ;;  %v6494_v17 = vld [vmem:[#allocation30_spill] sm:$0xff] }
  0xf3   : > { %6445 = vst [vmem:[#allocation59_spill] sm:$0xff] %v4308_v6  ;;  %v6493_v6 = vld [vmem:[#allocation26_spill] sm:$0xff] }
  0xf4   : > { %6447 = vst [vmem:[#allocation60_spill] sm:$0xff] %v4311_v53  ;;  %v6492_v53 = vld [vmem:[#allocation73_spill] sm:$0xff] }
  0xf5   : > { %6449 = vst [vmem:[#allocation61_spill] sm:$0xff] %v4314_v0  ;;  %v6491_v0 = vld [vmem:[#allocation27_spill] sm:$0xff] }
  0xf6   : > { %6451 = vst [vmem:[#allocation62_spill] sm:$0xff] %v4317_v41  ;;  %v6490_v41 = vld [vmem:[#allocation25_spill] sm:$0xff] }
  0xf7   : > { %6453 = vst [vmem:[#allocation63_spill] sm:$0xff] %v4320_v38  ;;  %v6489_v38 = vld [vmem:[#allocation72_spill] sm:$0xff]  ;;  %v4445_v52 = vmul.f32 %v4293_v12, %v6490_v41  ;;  %v4465_v41 = vmul.f32 %v4293_v12, %v6495_v13  ;;  %v6499_v13 = vld [vmem:[#allocation31_spill] sm:$0xff] }
  0xf8   : > { %6455 = vst [vmem:[#allocation3_spill] sm:$0xff] %v4323_v7  ;;  %v6488_v7 = vld [vmem:[#allocation22_spill] sm:$0xff]  ;;  %v4441_v54 = vmul.f32 %v4293_v12, %v6489_v38  ;;  %v4461_v38 = vmul.f32 %v4293_v12, %v6494_v17  ;;  %v1299_v17 = vrot.slane %v1202_v57, 2  ;;  %v4482_v27 = vmul.f32 %v4293_v12, %v6499_v13  ;;  %v6503_v57 = vld [vmem:[#allocation40_spill] sm:$0xff] }
  0xf9   : > { %6457 = vst [vmem:[#allocation2_spill] sm:$0xff] %v4326_v49  ;;  %v6487_v49 = vld [vmem:[#allocation21_spill] sm:$0xff]  ;;  %v4437_v39 = vmul.f32 %v4293_v12, %v6488_v7  ;;  %v4457_v7 = vmul.f32 %v4293_v12, %v6493_v6  ;;  %v6498_v6 = vld [vmem:[#allocation75_spill] sm:$0xff]  ;;  %v4498_v31 = vmul.f32 %v4293_v12, %v6503_v57  ;;  %v4502_v13 = vmul.f32 %v4293_v12, %v6504_v21 }
  0xfa   : > { %6459 = vst [vmem:[#allocation28_spill] sm:$0xff] %v4329_v55  ;;  %v6486_v55 = vld [vmem:[#allocation71_spill] sm:$0xff]  ;;  %v4433_v63 = vmul.f32 %v4293_v12, %v6487_v49  ;;  %v4453_v49 = vmul.f32 %v4293_v12, %v6492_v53  ;;  %v4473_v53 = vmul.f32 %v4293_v12, %v6497_v4  ;;  %v4477_v50 = vmul.f32 %v4293_v12, %v6498_v6  ;;  %v6501_v4 = vld [vmem:[#allocation76_spill] sm:$0xff] }
  0xfb   : > { %v4429_v35 = vmul.f32 %v4293_v12, %v6486_v55  ;;  %v4449_v55 = vmul.f32 %v4293_v12, %v6491_v0  ;;  %v4469_v0 = vmul.f32 %v4293_v12, %v6496_v24  ;;  %v6500_v24 = vld [vmem:[#allocation34_spill] sm:$0xff]  ;;  %v4490_v33 = vmul.f32 %v4293_v12, %v6501_v4 }
  0xfc   : > { %v4486_v2 = vmul.f32 %v4293_v12, %v6500_v24  ;;  %v4494_v6 = vmul.f32 %v4293_v12, %v6502_v10  ;;  %v4506_v24 = vmul.f32 %v4293_v12, %v6505_v45  ;;  %v4510_v4 = vmul.f32 %v4293_v12, %v6506_v58 }
  0xfd   : > { %v4514_v10 = vmul.f32 %v4293_v12, %v6507_v37  ;;  %v1304_v57 = vrot.slane %v4345_v5, 2  ;;  %v1306_v21 = vrot.slane %v4349_v20, 2  ;;  %v4522_v51 = vsel %vm742_vm1, %v1297_v19, %v1299_v17 }
  0xfe   : > { %v4525_v45 = vsel %vm742_vm1, %v1301_v23, %v1302_v42  ;;  %v1307_v58 = vrot.slane %v4353_v16, 2  ;;  %v1311_v12 = vrot.slane %v4361_v46, 2  ;;  %v1312_v37 = vrot.slane %v4365_v3, 2 }
  0xff   : > { %v1316_v5 = vrot.slane %v4373_v29, 2  ;;  %v1317_v20 = vrot.slane %v4377_v62, 2  ;;  %v1319_v19 = vrot.slane %v4381_v25, 2  ;;  %v1321_v17 = vrot.slane %v4385_v47, 2 }
 0x100   : > { %v1322_v23 = vrot.slane %v4389_v59, 2  ;;  %v1324_v16 = vrot.slane %v4393_v43, 2  ;;  %v1327_v46 = vrot.slane %v4401_v61, 2  ;;  %v1329_v3 = vrot.slane %v4405_v36, 2 }
 0x101   : > { %v1305_v26 = vsel %vm742_vm1, %v1302_v42, %v1304_v57  ;;  %v1331_v29 = vrot.slane %v4409_v30, 2  ;;  %v1332_v62 = vrot.slane %v4413_v48, 2  ;;  %v1334_v25 = vrot.slane %v4417_v14, 2 }
 0x102   : > { %v1308_v47 = vsel %vm742_vm1, %v1306_v21, %v1307_v58  ;;  %v1310_v59 = vsel %vm742_vm1, %v1307_v58, %v1309_v32  ;;  %v1336_v43 = vrot.slane %v4421_v60, 2  ;;  %v1313_v61 = vsel %vm742_vm1, %v1311_v12, %v1312_v37 }
 0x103   : > { %v1315_v36 = vsel %vm742_vm1, %v1312_v37, %v1314_v22  ;;  %v1318_v42 = vsel %vm742_vm1, %v1316_v5, %v1317_v20  ;;  %v1320_v30 = vsel %vm742_vm1, %v1317_v20, %v1319_v19  ;;  %v1323_v48 = vsel %vm742_vm1, %v1321_v17, %v1322_v23 }
 0x104   : > { %v1325_v14 = vsel %vm742_vm1, %v1322_v23, %v1324_v16  ;;  %v1328_v57 = vsel %vm742_vm1, %v1326_v28, %v1327_v46  ;;  %v1330_v32 = vsel %vm742_vm1, %v1327_v46, %v1329_v3  ;;  %v1333_v58 = vsel %vm742_vm1, %v1331_v29, %v1332_v62 }
 0x105   : > { %v1335_v56 = vsel %vm742_vm1, %v1332_v62, %v1334_v25  ;;  %v1339_v60 = vrot.slane %v4429_v35, 2  ;;  %v1341_v37 = vrot.slane %v4433_v63, 2  ;;  %v1338_v21 = vsel %vm742_vm1, %v1336_v43, %v1337_v8 }
 0x106   : > { %v1342_v12 = vrot.slane %v4437_v39, 2  ;;  %v1344_v22 = vrot.slane %v4441_v54, 2  ;;  %v1346_v5 = vrot.slane %v4445_v52, 2  ;;  %v1347_v20 = vrot.slane %v4449_v55, 2 }
 0x107   : > { %v1349_v19 = vrot.slane %v4453_v49, 2  ;;  %v1351_v17 = vrot.slane %v4457_v7, 2  ;;  %v1352_v23 = vrot.slane %v4461_v38, 2  ;;  %v1354_v35 = vrot.slane %v4465_v41, 2 }
 0x108   : > { %v1356_v63 = vrot.slane %v4469_v0, 2  ;;  %v1357_v16 = vrot.slane %v4473_v53, 2  ;;  %v1359_v39 = vrot.slane %v4477_v50, 2  ;;  %v1361_v54 = vrot.slane %v4482_v27, 2 }
 0x109   : > { %v1362_v52 = vrot.slane %v4486_v2, 2  ;;  %v1364_v55 = vrot.slane %v4490_v33, 2  ;;  %v1366_v49 = vrot.slane %v4494_v6, 2  ;;  %v1367_v7 = vrot.slane %v4498_v31, 2 }
 0x10a   : > { %v1369_v38 = vrot.slane %v4502_v13, 2  ;;  %v1371_v41 = vrot.slane %v4506_v24, 2  ;;  %v1372_v0 = vrot.slane %v4510_v4, 2  ;;  %v1340_v53 = vsel %vm742_vm1, %v1337_v8, %v1339_v60 }
 0x10b   : > { %v1343_v50 = vsel %vm742_vm1, %v1341_v37, %v1342_v12  ;;  %v1345_v27 = vsel %vm742_vm1, %v1342_v12, %v1344_v22  ;;  %v1374_v2 = vrot.slane %v4514_v10, 2  ;;  %v1348_v33 = vsel %vm742_vm1, %v1346_v5, %v1347_v20 }
 0x10c   : > { %v1350_v6 = vsel %vm742_vm1, %v1347_v20, %v1349_v19  ;;  %v1353_v31 = vsel %vm742_vm1, %v1351_v17, %v1352_v23  ;;  %v1355_v13 = vsel %vm742_vm1, %v1352_v23, %v1354_v35  ;;  %v1358_v24 = vsel %vm742_vm1, %v1356_v63, %v1357_v16  ;;  %v6521_v63 = vld [vmem:[#allocation55_spill] sm:$0xff] }
 0x10d   : > { %v1360_v4 = vsel %vm742_vm1, %v1357_v16, %v1359_v39  ;;  %v1363_v28 = vsel %vm742_vm1, %v1361_v54, %v1362_v52  ;;  %v1365_v46 = vsel %vm742_vm1, %v1362_v52, %v1364_v55  ;;  %v1368_v3 = vsel %vm742_vm1, %v1366_v49, %v1367_v7  ;;  %v6522_v16 = vld [vmem:[#allocation56_spill] sm:$0xff]  ;;  %v6524_v39 = vld [vmem:[#allocation57_spill] sm:$0xff]  ;;  %v6526_v52 = vld [vmem:[#allocation58_spill] sm:$0xff] }
 0x10e   : > { %v1370_v10 = vsel %vm742_vm1, %v1367_v7, %v1369_v38  ;;  %v1373_v29 = vsel %vm742_vm1, %v1371_v41, %v1372_v0  ;;  %v4598_v62 = vadd.f32 %v4517_v34, %v4228_v44  ;;  %v1375_v25 = vsel %vm742_vm1, %v1372_v0, %v1374_v2  ;;  %v6508_v34 = vld [vmem:[#allocation42_spill] sm:$0xff]  ;;  %v6528_v49 = vld [vmem:[#allocation59_spill] sm:$0xff]  ;;  %v6530_v38 = vld [vmem:[#allocation60_spill] sm:$0xff] }
 0x10f   : > { %v4603_v43 = vadd.f32 %v4522_v51, %v4233_v9  ;;  %v4607_v8 = vadd.f32 %v4525_v45, %v4237_v40  ;;  %v4610_v60 = vadd.f32 %v1305_v26, %v4240_v1  ;;  %v4613_v37 = vadd.f32 %v1308_v47, %v4243_v18  ;;  %v6509_v51 = vld [vmem:[#allocation43_spill] sm:$0xff]  ;;  %v6510_v40 = vld [vmem:[#allocation44_spill] sm:$0xff]  ;;  %v6511_v1 = vld [vmem:[#allocation45_spill] sm:$0xff] }
 0x110   : > { %v4616_v12 = vadd.f32 %v1310_v59, %v4246_v15  ;;  %v4619_v44 = vadd.f32 %v1313_v61, %v4249_v11  ;;  %v4622_v9 = vadd.f32 %v1315_v36, %v6508_v34  ;;  %v4625_v22 = vadd.f32 %v1318_v42, %v6509_v51  ;;  %v6512_v18 = vld [vmem:[#allocation46_spill] sm:$0xff]  ;;  %v6513_v15 = vld [vmem:[#allocation47_spill] sm:$0xff]  ;;  %v6514_v11 = vld [vmem:[#allocation48_spill] sm:$0xff] }
 0x111   : > { %v4628_v45 = vadd.f32 %v1320_v30, %v6510_v40  ;;  %v4631_v26 = vadd.f32 %v1323_v48, %v6511_v1  ;;  %v4634_v47 = vadd.f32 %v1325_v14, %v6512_v18  ;;  %v4637_v59 = vadd.f32 %v1328_v57, %v6513_v15  ;;  %v6515_v36 = vld [vmem:[#allocation49_spill] sm:$0xff]  ;;  %v6516_v42 = vld [vmem:[#allocation50_spill] sm:$0xff]  ;;  %v6517_v30 = vld [vmem:[#allocation51_spill] sm:$0xff] }
 0x112   : > { %v4640_v61 = vadd.f32 %v1330_v32, %v6514_v11  ;;  %v4643_v5 = vadd.f32 %v1333_v58, %v6515_v36  ;;  %v4646_v20 = vadd.f32 %v1335_v56, %v6516_v42  ;;  %v4649_v19 = vadd.f32 %v1338_v21, %v6517_v30  ;;  %v6518_v48 = vld [vmem:[#allocation52_spill] sm:$0xff]  ;;  %v6519_v14 = vld [vmem:[#allocation53_spill] sm:$0xff]  ;;  %v6520_v57 = vld [vmem:[#allocation54_spill] sm:$0xff] }
 0x113   : > { %v4652_v17 = vadd.f32 %v1340_v53, %v6518_v48  ;;  %v4655_v23 = vadd.f32 %v1343_v50, %v6519_v14  ;;  %v4658_v35 = vadd.f32 %v1345_v27, %v6520_v57  ;;  %v2675_v32 = vld [vmem:[%s5921_s1 + $0x6] ss:$0 sm:$0xff]  ;;  %v284_v58 = vld [vmem:[%s2811_s19 + $0xcc] sm:$0xff]   ;;  %v4665_v56 = vadd.f32 %v1348_v33, %v6521_v63  ;;  %v6532_v0 = vld [vmem:[#allocation61_spill] sm:$0xff] }
 0x114   : > { %v4668_v21 = vadd.f32 %v1350_v6, %v6522_v16  ;;  %v4671_v54 = vadd.f32 %v1353_v31, %v6524_v39  ;;  %v4674_v55 = vadd.f32 %v1355_v13, %v6526_v52  ;;  %v4677_v7 = vadd.f32 %v1358_v24, %v6528_v49  ;;  %v6534_v50 = vld [vmem:[#allocation62_spill] sm:$0xff]  ;;  %v6536_v2 = vld [vmem:[#allocation63_spill] sm:$0xff]  ;;  %v6542_v24 = vld [vmem:[#allocation28_spill] sm:$0xff] }
 0x115   : > { %v4680_v41 = vadd.f32 %v1360_v4, %v6530_v38  ;;  %v4683_v53 = vadd.f32 %v1363_v28, %v6532_v0  ;;  %v4686_v27 = vadd.f32 %v1365_v46, %v6534_v50  ;;  %v4689_v33 = vadd.f32 %v1368_v3, %v6536_v2  ;;  %v6538_v6 = vld [vmem:[#allocation3_spill] sm:$0xff]  ;;  %v6540_v13 = vld [vmem:[#allocation2_spill] sm:$0xff]  ;;  %v6546_v28 = vld [vmem:[#allocation4_spill] sm:$0xff] }
 0x116   : > { %6523 = vst [vmem:[#allocation29_spill] sm:$0xff] %v4668_v21  ;;  %v4692_v31 = vadd.f32 %v1370_v10, %v6538_v6  ;;  %v4695_v34 = vadd.f32 %v1373_v29, %v6540_v13  ;;  %v4698_v51 = vadd.f32 %v1375_v25, %v6542_v24  ;;  %v4700_v4 = vunpack.c.l.bf16 %v284_v58  ;;  %v6547_v46 = vld [vmem:[#allocation7_spill] sm:$0xff]  ;;  %v6549_v11 = vld [vmem:[#allocation12_spill] sm:$0xff]  ;;  %v6551_v30 = vld [vmem:[#allocation10_spill] sm:$0xff] }
 0x117   : > { %6525 = vst [vmem:[#allocation36_spill] sm:$0xff] %v4671_v54  ;;  %v4702_v40 = vunpack.c.h.bf16 %v284_v58  ;;  %v1444_v1 = vmul.f32 %v2675_v32, %v6546_v28  ;;  %v1445_v18 = vmul.f32 %v2675_v32, %v6547_v46  ;;  %v6548_v15 = vld [vmem:[#allocation11_spill] sm:$0xff]  ;;  %v1447_v36 = vmul.f32 %v2675_v32, %v6549_v11  ;;  %v6550_v10 = vld [vmem:[#allocation8_spill] sm:$0xff]  ;;  %v6552_v48 = vld [vmem:[#allocation13_spill] sm:$0xff] }
 0x118   : > { %6527 = vst [vmem:[#allocation37_spill] sm:$0xff] %v4674_v55  ;;  %v1446_v3 = vmul.f32 %v2675_v32, %v6548_v15  ;;  %v1448_v42 = vmul.f32 %v2675_v32, %v6550_v10  ;;  %v1449_v29 = vmul.f32 %v2675_v32, %v6551_v30  ;;  %v1450_v14 = vmul.f32 %v2675_v32, %v6552_v48  ;;  %v6553_v25 = vld [vmem:[#allocation15_spill] sm:$0xff]  ;;  %v6554_v63 = vld [vmem:[#allocation14_spill] sm:$0xff]  ;;  %v6555_v58 = vld [vmem:[#allocation16_spill] sm:$0xff] }
 0x119   : > { %6529 = vst [vmem:[#allocation5_spill] sm:$0xff] %v4677_v7  ;;  %v1451_v57 = vmul.f32 %v2675_v32, %v6553_v25  ;;  %v1452_v16 = vmul.f32 %v2675_v32, %v6554_v63  ;;  %v1453_v39 = vmul.f32 %v2675_v32, %v6555_v58  ;;  %v6556_v52 = vld [vmem:[#allocation18_spill] sm:$0xff]  ;;  %v6557_v38 = vld [vmem:[#allocation19_spill] sm:$0xff]  ;;  %v6558_v50 = vld [vmem:[#allocation17_spill] sm:$0xff] }
 0x11a   : > { %6531 = vst [vmem:[#allocation6_spill] sm:$0xff] %v4680_v41  ;;  %v1454_v49 = vmul.f32 %v2675_v32, %v6556_v52  ;;  %v1455_v0 = vmul.f32 %v2675_v32, %v6557_v38  ;;  %v1456_v2 = vmul.f32 %v2675_v32, %v6558_v50  ;;  %v6559_v6 = vld [vmem:[#allocation20_spill] sm:$0xff]  ;;  %v6560_v24 = vld [vmem:[#allocation23_spill] sm:$0xff]  ;;  %v6562_v15 = vld [vmem:[#allocation21_spill] sm:$0xff] }
 0x11b   : > { %6533 = vst [vmem:[#allocation9_spill] sm:$0xff] %v4683_v53  ;;  %v1457_v13 = vmul.f32 %v2675_v32, %v6559_v6  ;;  %v1458_v10 = vmul.f32 %v2675_v32, %v6560_v24  ;;  %v6561_v11 = vld [vmem:[#allocation24_spill] sm:$0xff]  ;;  %v1460_v48 = vmul.f32 %v2675_v32, %v6562_v15  ;;  %v6563_v46 = vld [vmem:[#allocation22_spill] sm:$0xff]  ;;  %v6564_v28 = vld [vmem:[#allocation25_spill] sm:$0xff] }
 0x11c   : > { %6535 = vst [vmem:[#allocation42_spill] sm:$0xff] %v4686_v27  ;;  %v1459_v30 = vmul.f32 %v2675_v32, %v6561_v11  ;;  %v1461_v25 = vmul.f32 %v2675_v32, %v6563_v46  ;;  %v1462_v63 = vmul.f32 %v2675_v32, %v6564_v28  ;;  %v6569_v27 = vld [vmem:[#allocation33_spill] sm:$0xff]  ;;  %v6570_v53 = vld [vmem:[#allocation31_spill] sm:$0xff]  ;;  %v6571_v41 = vld [vmem:[#allocation34_spill] sm:$0xff] }
 0x11d   : > { %6537 = vst [vmem:[#allocation43_spill] sm:$0xff] %v4689_v33  ;;  %v6568_v33 = vld [vmem:[#allocation32_spill] sm:$0xff]  ;;  %v1467_v6 = vmul.f32 %v2675_v32, %v6569_v27  ;;  %v1468_v24 = vmul.f32 %v2675_v32, %v6570_v53  ;;  %v1469_v11 = vmul.f32 %v2675_v32, %v6571_v41  ;;  %v6572_v7 = vld [vmem:[#allocation39_spill] sm:$0xff]  ;;  %v6575_v21 = vld [vmem:[#allocation38_spill] sm:$0xff]  ;;  %v4740_v27 = vadd.f32 %v1445_v18, %v4603_v43 }
 0x11e   : > { %6539 = vst [vmem:[#allocation44_spill] sm:$0xff] %v4692_v31  ;;  %v6567_v31 = vld [vmem:[#allocation30_spill] sm:$0xff]  ;;  %v1466_v50 = vmul.f32 %v2675_v32, %v6568_v33  ;;  %v1470_v15 = vmul.f32 %v2675_v32, %v6572_v7  ;;  %v6573_v55 = vld [vmem:[#allocation40_spill] sm:$0xff]  ;;  %v6574_v54 = vld [vmem:[#allocation35_spill] sm:$0xff]  ;;  %v4737_v33 = vadd.f32 %v1444_v1, %v4598_v62  ;;  %v4743_v41 = vadd.f32 %v1446_v3, %v4607_v8 }
 0x11f   : > { %6541 = vst [vmem:[#allocation45_spill] sm:$0xff] %v4695_v34  ;;  %v6566_v34 = vld [vmem:[#allocation26_spill] sm:$0xff]  ;;  %v1465_v38 = vmul.f32 %v2675_v32, %v6567_v31  ;;  %v1471_v46 = vmul.f32 %v2675_v32, %v6573_v55  ;;  %v1472_v28 = vmul.f32 %v2675_v32, %v6574_v54  ;;  %v1475_v31 = vmul.f32 %v2675_v32, %v4702_v40  ;;  %v6596_v3 = vld [vmem:[#allocation37_spill] sm:$0xff] }
 0x120   : > { %6543 = vst [vmem:[#allocation46_spill] sm:$0xff] %v4698_v51  ;;  %v6565_v51 = vld [vmem:[#allocation27_spill] sm:$0xff]  ;;  %v1464_v52 = vmul.f32 %v2675_v32, %v6566_v34  ;;  %v1474_v34 = vmul.f32 %v2675_v32, %v4700_v4  ;;  %v4746_v7 = vadd.f32 %v1447_v36, %v4610_v60  ;;  %v4749_v54 = vadd.f32 %v1448_v42, %v4613_v37 }
 0x121   : > { %6544 = vst [vmem:[#allocation47_spill] sm:$0xff] %v4700_v4  ;;  %v1463_v58 = vmul.f32 %v2675_v32, %v6565_v51  ;;  %v1473_v51 = vmul.f32 %v2675_v32, %v6575_v21  ;;  %v4752_v4 = vadd.f32 %v1449_v29, %v4616_v12  ;;  %v4755_v32 = vadd.f32 %v1450_v14, %v4619_v44 }
 0x122   : > { %6545 = vst [vmem:[#allocation48_spill] sm:$0xff] %v4702_v40  ;;  %v4758_v62 = vadd.f32 %v1451_v57, %v4622_v9  ;;  %v4761_v43 = vadd.f32 %v1452_v16, %v4625_v22  ;;  %v4764_v8 = vadd.f32 %v1453_v39, %v4628_v45  ;;  %v4767_v60 = vadd.f32 %v1454_v49, %v4631_v26  ;;  %v6614_v49 = vld [vmem:[#allocation4_spill] sm:$0xff] }
 0x123   : > { %6576 = vst [vmem:[#allocation49_spill] sm:$0xff] %v4755_v32  ;;  %v4770_v37 = vadd.f32 %v1455_v0, %v4634_v47  ;;  %v4773_v12 = vadd.f32 %v1456_v2, %v4637_v59  ;;  %v4776_v44 = vadd.f32 %v1457_v13, %v4640_v61  ;;  %v4779_v9 = vadd.f32 %v1458_v10, %v4643_v5  ;;  %v4793_v47 = vld [vmem:[%s5921_s1 + $0x7] ss:$0 sm:$0xff]  ;;  %v4796_v59 = vld [vmem:[%s2811_s19 + $0xd4] sm:$0x1]  ;;  %v6598_v10 = vld [vmem:[#allocation5_spill] sm:$0xff]  ;;  %s5850_s19 = scalar_lea.vmem %s5923_s3, %s2504_s17 }
 0x124   : > { %6577 = vst [vmem:[#allocation50_spill] sm:$0xff] %v4758_v62  ;;  %v4782_v22 = vadd.f32 %v1459_v30, %v4646_v20  ;;  %v4785_v45 = vadd.f32 %v1460_v48, %v4649_v19  ;;  %v4788_v26 = vadd.f32 %v1461_v25, %v4652_v17  ;;  %v4799_v61 = vadd.f32 %v1462_v63, %v4655_v23  ;;  %v6592_v19 = vld [vmem:[#allocation29_spill] sm:$0xff]  ;;  %v6594_v17 = vld [vmem:[#allocation36_spill] sm:$0xff]  ;;  %v6600_v23 = vld [vmem:[#allocation6_spill] sm:$0xff] }
 0x125   : > { %6578 = vst [vmem:[#allocation51_spill] sm:$0xff] %v4761_v43  ;;  %v4802_v5 = vadd.f32 %v1463_v58, %v4658_v35  ;;  %v4805_v20 = vadd.f32 %v1464_v52, %v4665_v56  ;;  %v4808_v1 = vadd.f32 %v1465_v38, %v6592_v19  ;;  %v4811_v18 = vadd.f32 %v1466_v50, %v6594_v17  ;;  %v6602_v35 = vld [vmem:[#allocation9_spill] sm:$0xff]  ;;  %v6604_v56 = vld [vmem:[#allocation42_spill] sm:$0xff]  ;;  %v6606_v14 = vld [vmem:[#allocation43_spill] sm:$0xff] }
 0x126   : > { %6579 = vst [vmem:[#allocation52_spill] sm:$0xff] %v4764_v8  ;;  %v4814_v36 = vadd.f32 %v1467_v6, %v6596_v3  ;;  %v4817_v42 = vadd.f32 %v1468_v24, %v6598_v10  ;;  %v4820_v30 = vadd.f32 %v1469_v11, %v6600_v23  ;;  %v4823_v29 = vadd.f32 %v1470_v15, %v6602_v35  ;;  %v6608_v57 = vld [vmem:[#allocation44_spill] sm:$0xff]  ;;  %v6610_v16 = vld [vmem:[#allocation45_spill] sm:$0xff]  ;;  %v6615_v38 = vld [vmem:[#allocation7_spill] sm:$0xff] }
 0x127   : > { %6580 = vst [vmem:[#allocation53_spill] sm:$0xff] %v4767_v60  ;;  %v4826_v48 = vadd.f32 %v1471_v46, %v6604_v56  ;;  %v4829_v25 = vadd.f32 %v1472_v28, %v6606_v14  ;;  %v4832_v63 = vadd.f32 %v1473_v51, %v6608_v57  ;;  %v4835_v58 = vadd.f32 %v1474_v34, %v6610_v16  ;;  %v6612_v39 = vld [vmem:[#allocation46_spill] sm:$0xff]  ;;  %v6616_v0 = vld [vmem:[#allocation64_spill] sm:$0xff]  ;;  %v6617_v50 = vld [vmem:[#allocation11_spill] sm:$0xff] }
 0x128   : > { %6581 = vst [vmem:[#allocation54_spill] sm:$0xff] %v4770_v37  ;;  %v4838_v52 = vadd.f32 %v1475_v31, %v6612_v39  ;;  %v1511_v15 = vmul.f32 %v4793_v47, %v6614_v49  ;;  %v1512_v46 = vmul.f32 %v4793_v47, %v6615_v38  ;;  %v1513_v28 = vmul.f32 %v4793_v47, %v6616_v0  ;;  %v6618_v34 = vld [vmem:[#allocation12_spill] sm:$0xff]  ;;  %v6619_v31 = vld [vmem:[#allocation65_spill] sm:$0xff]  ;;  %v6621_v19 = vld [vmem:[#allocation10_spill] sm:$0xff] }
 0x129   : > { %6582 = vst [vmem:[#allocation55_spill] sm:$0xff] %v4773_v12  ;;  %v4849_v51 = vmul.f32 %v4793_v47, %v6617_v50  ;;  %v4853_v2 = vmul.f32 %v4793_v47, %v6618_v34  ;;  %v4857_v6 = vmul.f32 %v4793_v47, %v6619_v31  ;;  %v6620_v13 = vld [vmem:[#allocation8_spill] sm:$0xff]  ;;  %v4865_v17 = vmul.f32 %v4793_v47, %v6621_v19  ;;  %v6622_v3 = vld [vmem:[#allocation66_spill] sm:$0xff]  ;;  %v6623_v23 = vld [vmem:[#allocation13_spill] sm:$0xff] }
 0x12a   : > { %6583 = vst [vmem:[#allocation56_spill] sm:$0xff] %v4776_v44  ;;  %v4861_v24 = vmul.f32 %v4793_v47, %v6620_v13  ;;  %v4869_v10 = vmul.f32 %v4793_v47, %v6622_v3  ;;  %v4873_v35 = vmul.f32 %v4793_v47, %v6623_v23  ;;  %v6624_v56 = vld [vmem:[#allocation15_spill] sm:$0xff]  ;;  %v6626_v39 = vld [vmem:[#allocation14_spill] sm:$0xff]  ;;  %v6627_v19 = vld [vmem:[#allocation16_spill] sm:$0xff]  ;;  %v1608_v44 = vrot.slane %v1512_v46, 1 }
 0x12b   : > { %6584 = vst [vmem:[#allocation57_spill] sm:$0xff] %v4779_v9  ;;  %v4877_v14 = vmul.f32 %v4793_v47, %v6624_v56  ;;  %v6625_v57 = vld [vmem:[#allocation67_spill] sm:$0xff]  ;;  %v4885_v11 = vmul.f32 %v4793_v47, %v6626_v39  ;;  %v4889_v3 = vmul.f32 %v4793_v47, %v6627_v19  ;;  %v6628_v13 = vld [vmem:[#allocation68_spill] sm:$0xff]  ;;  %v6629_v31 = vld [vmem:[#allocation18_spill] sm:$0xff]  ;;  %v1607_v9 = vrot.slane %v1511_v15, 1 }
 0x12c   : > { %6585 = vst [vmem:[#allocation58_spill] sm:$0xff] %v4782_v22  ;;  %v4881_v16 = vmul.f32 %v4793_v47, %v6625_v57  ;;  %v4893_v23 = vmul.f32 %v4793_v47, %v6628_v13  ;;  %v4897_v56 = vmul.f32 %v4793_v47, %v6629_v31  ;;  %v6630_v34 = vld [vmem:[#allocation19_spill] sm:$0xff]  ;;  %v6631_v50 = vld [vmem:[#allocation69_spill] sm:$0xff]  ;;  %v6633_v38 = vld [vmem:[#allocation20_spill] sm:$0xff]  ;;  %v5009_v15 = vmul.f32 %v4793_v47, %v6575_v21 }
 0x12d   : > { %6586 = vst [vmem:[#allocation59_spill] sm:$0xff] %v4785_v45  ;;  %v4901_v57 = vmul.f32 %v4793_v47, %v6630_v34  ;;  %v4905_v39 = vmul.f32 %v4793_v47, %v6631_v50  ;;  %v6632_v0 = vld [vmem:[#allocation17_spill] sm:$0xff]  ;;  %v4913_v13 = vmul.f32 %v4793_v47, %v6633_v38  ;;  %v6634_v49 = vld [vmem:[#allocation70_spill] sm:$0xff]  ;;  %v6651_v22 = vld [vmem:[#allocation76_spill] sm:$0xff]  ;;  %v1612_v21 = vrot.slane %v4849_v51, 1 }
 0x12e   : > { %6587 = vst [vmem:[#allocation60_spill] sm:$0xff] %v4788_v26  ;;  %v4909_v19 = vmul.f32 %v4793_v47, %v6632_v0  ;;  %v4917_v31 = vmul.f32 %v4793_v47, %v6634_v49  ;;  %v6649_v26 = vld [vmem:[#allocation75_spill] sm:$0xff]  ;;  %v6650_v45 = vld [vmem:[#allocation34_spill] sm:$0xff]  ;;  %v6655_v46 = vld [vmem:[#allocation41_spill] sm:$0xff]  ;;  %v1613_v43 = vrot.slane %v4853_v2, 1  ;;  %v1615_v62 = vrot.slane %v4857_v6, 1 }
 0x12f   : > { %6588 = vst [vmem:[#allocation61_spill] sm:$0xff] %v4796_v59  ;;  %v6654_v60 = vld [vmem:[#allocation35_spill] sm:$0xff]  ;;  %v1618_v32 = vrot.slane %v4865_v17, 1  ;;  %v1623_v51 = vrot.slane %v4877_v14, 1  ;;  %v1625_v2 = vrot.slane %v4881_v16, 1  ;;  %v1630_v6 = vrot.slane %v4893_v23, 1 }
 0x130   : > { %6589 = vst [vmem:[#allocation62_spill] sm:$0xff] %v4799_v61  ;;  %v6648_v61 = vld [vmem:[#allocation33_spill] sm:$0xff]  ;;  %v5005_v8 = vmul.f32 %v4793_v47, %v6654_v60  ;;  %v1633_v17 = vrot.slane %v4901_v57, 1  ;;  %v1616_v16 = vsel %vm499_vm0, %v1613_v43, %v1615_v62 }
 0x131   : > { %6590 = vst [vmem:[#allocation63_spill] sm:$0xff] %v4802_v5  ;;  %v6647_v5 = vld [vmem:[#allocation32_spill] sm:$0xff] }
 0x132   : > { %6591 = vst [vmem:[#allocation3_spill] sm:$0xff] %v4805_v20  ;;  %v6646_v20 = vld [vmem:[#allocation74_spill] sm:$0xff] }
 0x133   : > { %6593 = vst [vmem:[#allocation2_spill] sm:$0xff] %v4808_v1  ;;  %v6645_v1 = vld [vmem:[#allocation30_spill] sm:$0xff] }
 0x134   : > { %6595 = vst [vmem:[#allocation28_spill] sm:$0xff] %v4811_v18  ;;  %v6644_v18 = vld [vmem:[#allocation26_spill] sm:$0xff] }
 0x135   : > { %6597 = vst [vmem:[#allocation29_spill] sm:$0xff] %v4814_v36  ;;  %v6643_v36 = vld [vmem:[#allocation73_spill] sm:$0xff] }
 0x136   : > { %6599 = vst [vmem:[#allocation36_spill] sm:$0xff] %v4817_v42  ;;  %v6642_v42 = vld [vmem:[#allocation27_spill] sm:$0xff] }
 0x137   : > { %6601 = vst [vmem:[#allocation37_spill] sm:$0xff] %v4820_v30  ;;  %v6641_v30 = vld [vmem:[#allocation25_spill] sm:$0xff] }
 0x138   : > { %6603 = vst [vmem:[#allocation5_spill] sm:$0xff] %v4823_v29  ;;  %v6640_v29 = vld [vmem:[#allocation72_spill] sm:$0xff] }
 0x139   : > { %6605 = vst [vmem:[#allocation6_spill] sm:$0xff] %v4826_v48  ;;  %v6639_v48 = vld [vmem:[#allocation22_spill] sm:$0xff] }
 0x13a   : > { %6607 = vst [vmem:[#allocation9_spill] sm:$0xff] %v4829_v25  ;;  %v6638_v25 = vld [vmem:[#allocation21_spill] sm:$0xff]  ;;  %v4937_v49 = vmul.f32 %v4793_v47, %v6639_v48  ;;  %v4957_v48 = vmul.f32 %v4793_v47, %v6644_v18  ;;  %v4977_v18 = vmul.f32 %v4793_v47, %v6649_v26  ;;  %v4997_v26 = vmul.f32 %v4793_v47, %v6573_v55 }
 0x13b   : > { %6609 = vst [vmem:[#allocation42_spill] sm:$0xff] %v4832_v63  ;;  %v6637_v63 = vld [vmem:[#allocation71_spill] sm:$0xff]  ;;  %v4933_v38 = vmul.f32 %v4793_v47, %v6638_v25  ;;  %v4953_v25 = vmul.f32 %v4793_v47, %v6643_v36  ;;  %v4973_v36 = vmul.f32 %v4793_v47, %v6648_v61 }
 0x13c   : > { %6611 = vst [vmem:[#allocation43_spill] sm:$0xff] %v4835_v58  ;;  %v6636_v58 = vld [vmem:[#allocation24_spill] sm:$0xff]  ;;  %v4929_v0 = vmul.f32 %v4793_v47, %v6637_v63  ;;  %v4949_v63 = vmul.f32 %v4793_v47, %v6642_v42  ;;  %v4969_v42 = vmul.f32 %v4793_v47, %v6647_v5  ;;  %v4989_v5 = vmul.f32 %v4793_v47, %v6651_v22  ;;  %v6652_v61 = vld [vmem:[#allocation39_spill] sm:$0xff] }
 0x13d   : > { %6613 = vst [vmem:[#allocation44_spill] sm:$0xff] %v4838_v52  ;;  %v6635_v52 = vld [vmem:[#allocation23_spill] sm:$0xff]  ;;  %v4925_v50 = vmul.f32 %v4793_v47, %v6636_v58  ;;  %v4945_v58 = vmul.f32 %v4793_v47, %v6641_v30  ;;  %v4965_v30 = vmul.f32 %v4793_v47, %v6646_v20  ;;  %v4985_v20 = vmul.f32 %v4793_v47, %v6650_v45 }
 0x13e   : > { %v4921_v34 = vmul.f32 %v4793_v47, %v6635_v52  ;;  %v4941_v52 = vmul.f32 %v4793_v47, %v6640_v29  ;;  %v4961_v29 = vmul.f32 %v4793_v47, %v6645_v1  ;;  %v4981_v1 = vmul.f32 %v4793_v47, %v6570_v53  ;;  %v6653_v53 = vld [vmem:[#allocation77_spill] sm:$0xff]  ;;  %v6656_v22 = vld [vmem:[#allocation47_spill] sm:$0xff] }
 0x13f   : > { %v4993_v12 = vmul.f32 %v4793_v47, %v6652_v61  ;;  %v5001_v37 = vmul.f32 %v4793_v47, %v6653_v53  ;;  %v1610_v45 = vrot.slane %v1513_v28, 1  ;;  %v5013_v61 = vmul.f32 %v4793_v47, %v6655_v46 }
 0x140   : > { %v5017_v55 = vmul.f32 %v4793_v47, %v6656_v22  ;;  %v5021_v53 = vmul.f32 %v4793_v47, %v4702_v40  ;;  %v6657_v28 = vunpack.c.l.bf16 %v4796_v59  ;;  %v5031_v46 = vsel %vm499_vm0, %v1607_v9, %v1608_v44 }
 0x141   : > { %v1617_v22 = vrot.slane %v4861_v24, 1  ;;  %v5037_v40 = vsel %vm499_vm0, %v1608_v44, %v1610_v45  ;;  %v1620_v59 = vrot.slane %v4869_v10, 1  ;;  %v1627_v9 = vrot.slane %v4885_v11, 1 }
 0x142   : > { %v5026_v60 = vmul.f32 %v4793_v47, %v6657_v28  ;;  %v1622_v47 = vrot.slane %v4873_v35, 1  ;;  %v1628_v28 = vrot.slane %v4889_v3, 1  ;;  %v1632_v24 = vrot.slane %v4897_v56, 1 }
 0x143   : > { %v1635_v44 = vrot.slane %v4905_v39, 1  ;;  %v1637_v45 = vrot.slane %v4909_v19, 1  ;;  %v1638_v10 = vrot.slane %v4913_v13, 1  ;;  %v1640_v35 = vrot.slane %v4917_v31, 1 }
 0x144   : > { %v1642_v14 = vrot.slane %v4921_v34, 1  ;;  %v1643_v11 = vrot.slane %v4925_v50, 1  ;;  %v1614_v3 = vsel %vm499_vm0, %v1612_v21, %v1613_v43  ;;  %v1645_v23 = vrot.slane %v4929_v0, 1 }
 0x145   : > { %v1647_v56 = vrot.slane %v4933_v38, 1  ;;  %v1648_v57 = vrot.slane %v4937_v49, 1  ;;  %v1619_v19 = vsel %vm499_vm0, %v1617_v22, %v1618_v32  ;;  %v1621_v13 = vsel %vm499_vm0, %v1618_v32, %v1620_v59 }
 0x146   : > { %v1624_v31 = vsel %vm499_vm0, %v1622_v47, %v1623_v51  ;;  %v1626_v34 = vsel %vm499_vm0, %v1623_v51, %v1625_v2  ;;  %v1629_v50 = vsel %vm499_vm0, %v1627_v9, %v1628_v28  ;;  %v1631_v21 = vsel %vm499_vm0, %v1628_v28, %v1630_v6 }
 0x147   : > { %v1634_v0 = vsel %vm499_vm0, %v1632_v24, %v1633_v17  ;;  %v1636_v38 = vsel %vm499_vm0, %v1633_v17, %v1635_v44  ;;  %v1639_v49 = vsel %vm499_vm0, %v1637_v45, %v1638_v10  ;;  %v1641_v62 = vsel %vm499_vm0, %v1638_v10, %v1640_v35 }
 0x148   : > { %v1644_v43 = vsel %vm499_vm0, %v1642_v14, %v1643_v11  ;;  %v1646_v32 = vsel %vm499_vm0, %v1643_v11, %v1645_v23  ;;  %v1649_v22 = vsel %vm499_vm0, %v1647_v56, %v1648_v57  ;;  %v1650_v59 = vrot.slane %v4941_v52, 1 }
 0x149   : > { %v1652_v39 = vrot.slane %v4945_v58, 1  ;;  %v1653_v47 = vrot.slane %v4949_v63, 1  ;;  %v1655_v51 = vrot.slane %v4953_v25, 1  ;;  %v1657_v2 = vrot.slane %v4957_v48, 1 }
 0x14a   : > { %v1658_v9 = vrot.slane %v4961_v29, 1  ;;  %v1660_v28 = vrot.slane %v4965_v30, 1  ;;  %v1662_v6 = vrot.slane %v4969_v42, 1  ;;  %v1663_v24 = vrot.slane %v4973_v36, 1 }
 0x14b   : > { %v1665_v17 = vrot.slane %v4977_v18, 1  ;;  %v1667_v52 = vrot.slane %v4981_v1, 1  ;;  %v1668_v58 = vrot.slane %v4985_v20, 1  ;;  %v1670_v63 = vrot.slane %v4989_v5, 1 }
 0x14c   : > { %v1672_v25 = vrot.slane %v4993_v12, 1  ;;  %v1673_v48 = vrot.slane %v4997_v26, 1  ;;  %v1675_v29 = vrot.slane %v5001_v37, 1  ;;  %v1677_v30 = vrot.slane %v5005_v8, 1 }
 0x14d   : > { %v1678_v42 = vrot.slane %v5009_v15, 1  ;;  %v1651_v36 = vsel %vm499_vm0, %v1648_v57, %v1650_v59  ;;  %v1680_v18 = vrot.slane %v5013_v61, 1  ;;  %v1682_v1 = vrot.slane %v5017_v55, 1 }
 0x14e   : > { %v1683_v20 = vrot.slane %v5021_v53, 1  ;;  %v1654_v5 = vsel %vm499_vm0, %v1652_v39, %v1653_v47  ;;  %v1656_v12 = vsel %vm499_vm0, %v1653_v47, %v1655_v51  ;;  %v1659_v26 = vsel %vm499_vm0, %v1657_v2, %v1658_v9  ;;  %v6660_v47 = vld [vmem:[#allocation50_spill] sm:$0xff] }
 0x14f   : > { %v1685_v37 = vrot.slane %v5026_v60, 1  ;;  %v1661_v8 = vsel %vm499_vm0, %v1658_v9, %v1660_v28  ;;  %v1664_v15 = vsel %vm499_vm0, %v1662_v6, %v1663_v24  ;;  %v1666_v44 = vsel %vm499_vm0, %v1663_v24, %v1665_v17  ;;  %v6682_v24 = vld [vmem:[#allocation62_spill] sm:$0xff]  ;;  %v6684_v17 = vld [vmem:[#allocation63_spill] sm:$0xff] }
 0x150   : > { %v1669_v61 = vsel %vm499_vm0, %v1667_v52, %v1668_v58  ;;  %v1671_v55 = vsel %vm499_vm0, %v1668_v58, %v1670_v63  ;;  %v1674_v53 = vsel %vm499_vm0, %v1672_v25, %v1673_v48  ;;  %v1676_v45 = vsel %vm499_vm0, %v1673_v48, %v1675_v29  ;;  %v6686_v52 = vld [vmem:[#allocation3_spill] sm:$0xff]  ;;  %v6688_v58 = vld [vmem:[#allocation2_spill] sm:$0xff]  ;;  %v6690_v63 = vld [vmem:[#allocation28_spill] sm:$0xff] }
 0x151   : > { %v1679_v10 = vsel %vm499_vm0, %v1677_v30, %v1678_v42  ;;  %v1681_v35 = vsel %vm499_vm0, %v1678_v42, %v1680_v18  ;;  %v1684_v60 = vsel %vm499_vm0, %v1682_v1, %v1683_v20  ;;  %v5110_v14 = vadd.f32 %v5031_v46, %v4737_v33  ;;  %v6658_v33 = vld [vmem:[#allocation49_spill] sm:$0xff]  ;;  %v6694_v30 = vld [vmem:[#allocation36_spill] sm:$0xff] }
 0x152   : > { %v5114_v11 = vadd.f32 %v5037_v40, %v4740_v27  ;;  %v1686_v23 = vsel %vm499_vm0, %v1683_v20, %v1685_v37  ;;  %v5118_v56 = vadd.f32 %v1614_v3, %v4743_v41  ;;  %v5121_v57 = vadd.f32 %v1616_v16, %v4746_v7  ;;  %v6662_v40 = vld [vmem:[#allocation51_spill] sm:$0xff]  ;;  %v6664_v41 = vld [vmem:[#allocation52_spill] sm:$0xff]  ;;  %v6666_v7 = vld [vmem:[#allocation53_spill] sm:$0xff] }
 0x153   : > { %v5124_v59 = vadd.f32 %v1619_v19, %v4749_v54  ;;  %v5127_v39 = vadd.f32 %v1621_v13, %v4752_v4  ;;  %v5130_v46 = vadd.f32 %v1624_v31, %v6658_v33  ;;  %v5133_v27 = vadd.f32 %v1626_v34, %v6660_v47  ;;  %v6668_v54 = vld [vmem:[#allocation54_spill] sm:$0xff]  ;;  %v6670_v4 = vld [vmem:[#allocation55_spill] sm:$0xff]  ;;  %v6672_v31 = vld [vmem:[#allocation56_spill] sm:$0xff] }
 0x154   : > { %v5136_v51 = vadd.f32 %v1629_v50, %v6662_v40  ;;  %v5139_v3 = vadd.f32 %v1631_v21, %v6664_v41  ;;  %v5142_v16 = vadd.f32 %v1634_v0, %v6666_v7  ;;  %v5145_v19 = vadd.f32 %v1636_v38, %v6668_v54  ;;  %v6674_v34 = vld [vmem:[#allocation57_spill] sm:$0xff]  ;;  %v6676_v50 = vld [vmem:[#allocation58_spill] sm:$0xff]  ;;  %v6678_v21 = vld [vmem:[#allocation59_spill] sm:$0xff] }
 0x155   : > { %6659 = vst [vmem:[#allocation45_spill] sm:$0xff] %v5130_v46  ;;  %v5148_v13 = vadd.f32 %v1639_v49, %v6670_v4  ;;  %v5151_v2 = vadd.f32 %v1641_v62, %v6672_v31  ;;  %v5154_v9 = vadd.f32 %v1644_v43, %v6674_v34  ;;  %v5157_v28 = vadd.f32 %v1646_v32, %v6676_v50  ;;  %v5165_v0 = vld [vmem:[%s5921_s1 + $0x8] ss:$0 sm:$0xff]  ;;  %v6680_v38 = vld [vmem:[#allocation60_spill] sm:$0xff]  ;;  %v6692_v48 = vld [vmem:[#allocation29_spill] sm:$0xff] }
 0x156   : > { %6661 = vst [vmem:[#allocation46_spill] sm:$0xff] %v5133_v27  ;;  %v5160_v6 = vadd.f32 %v1649_v22, %v6678_v21  ;;  %v5168_v49 = vadd.f32 %v1651_v36, %v6680_v38  ;;  %v5171_v62 = vadd.f32 %v1654_v5, %v6682_v24  ;;  %v5174_v43 = vadd.f32 %v1656_v12, %v6684_v17  ;;  %v6696_v36 = vld [vmem:[#allocation37_spill] sm:$0xff]  ;;  %v6700_v5 = vld [vmem:[#allocation6_spill] sm:$0xff]  ;;  %v6716_v31 = vld [vmem:[#allocation8_spill] sm:$0xff] }
 0x157   : > { %6663 = vst [vmem:[#allocation49_spill] sm:$0xff] %v5136_v51  ;;  %v5177_v32 = vadd.f32 %v1659_v26, %v6686_v52  ;;  %v5180_v22 = vadd.f32 %v1661_v8, %v6688_v58  ;;  %v5183_v25 = vadd.f32 %v1664_v15, %v6690_v63  ;;  %v5186_v29 = vadd.f32 %v1666_v44, %v6692_v48  ;;  %v6698_v1 = vld [vmem:[#allocation5_spill] sm:$0xff]  ;;  %v6704_v8 = vld [vmem:[#allocation42_spill] sm:$0xff]  ;;  %v6706_v44 = vld [vmem:[#allocation43_spill] sm:$0xff] }
 0x158   : > { %6665 = vst [vmem:[#allocation50_spill] sm:$0xff] %v5139_v3  ;;  %v5189_v42 = vadd.f32 %v1669_v61, %v6694_v30  ;;  %v5192_v18 = vadd.f32 %v1671_v55, %v6696_v36  ;;  %v5195_v20 = vadd.f32 %v1674_v53, %v6698_v1  ;;  %v5198_v12 = vadd.f32 %v1676_v45, %v6700_v5  ;;  %v6702_v26 = vld [vmem:[#allocation9_spill] sm:$0xff]  ;;  %v6708_v61 = vld [vmem:[#allocation44_spill] sm:$0xff]  ;;  %v6711_v53 = vld [vmem:[#allocation7_spill] sm:$0xff] }
 0x159   : > { %6667 = vst [vmem:[#allocation51_spill] sm:$0xff] %v5142_v16  ;;  %v5201_v37 = vadd.f32 %v1679_v10, %v6702_v26  ;;  %v5204_v15 = vadd.f32 %v1681_v35, %v6704_v8  ;;  %v5207_v33 = vadd.f32 %v1684_v60, %v6706_v44  ;;  %v5210_v47 = vadd.f32 %v1686_v23, %v6708_v61  ;;  %v6710_v55 = vld [vmem:[#allocation4_spill] sm:$0xff]  ;;  %v6713_v10 = vld [vmem:[#allocation11_spill] sm:$0xff]  ;;  %v6715_v4 = vld [vmem:[#allocation65_spill] sm:$0xff] }
 0x15a   : > { %6669 = vst [vmem:[#allocation52_spill] sm:$0xff] %v5145_v19  ;;  %v1753_v40 = vmul.f32 %v5165_v0, %v6710_v55  ;;  %v1754_v41 = vmul.f32 %v5165_v0, %v6711_v53  ;;  %v6712_v45 = vld [vmem:[#allocation64_spill] sm:$0xff]  ;;  %v5220_v54 = vmul.f32 %v5165_v0, %v6713_v10  ;;  %v5228_v23 = vmul.f32 %v5165_v0, %v6715_v4  ;;  %v6717_v50 = vld [vmem:[#allocation10_spill] sm:$0xff]  ;;  %v6719_v17 = vld [vmem:[#allocation13_spill] sm:$0xff] }
 0x15b   : > { %6671 = vst [vmem:[#allocation53_spill] sm:$0xff] %v5148_v13  ;;  %v1755_v7 = vmul.f32 %v5165_v0, %v6712_v45  ;;  %v6714_v35 = vld [vmem:[#allocation12_spill] sm:$0xff]  ;;  %v5232_v34 = vmul.f32 %v5165_v0, %v6716_v31  ;;  %v5236_v21 = vmul.f32 %v5165_v0, %v6717_v50  ;;  %v6718_v38 = vld [vmem:[#allocation66_spill] sm:$0xff]  ;;  %v5244_v52 = vmul.f32 %v5165_v0, %v6719_v17  ;;  %v6720_v58 = vld [vmem:[#allocation15_spill] sm:$0xff] }
 0x15c   : > { %6673 = vst [vmem:[#allocation54_spill] sm:$0xff] %v5151_v2  ;;  %v5224_v60 = vmul.f32 %v5165_v0, %v6714_v35  ;;  %v5240_v24 = vmul.f32 %v5165_v0, %v6718_v38  ;;  %v5248_v63 = vmul.f32 %v5165_v0, %v6720_v58  ;;  %v6721_v48 = vld [vmem:[#allocation67_spill] sm:$0xff]  ;;  %v6722_v36 = vld [vmem:[#allocation14_spill] sm:$0xff]  ;;  %v6723_v5 = vld [vmem:[#allocation16_spill] sm:$0xff]  ;;  %v1857_v27 = vrot.slane %v5228_v23, 2 }
 0x15d   : > { %6675 = vst [vmem:[#allocation55_spill] sm:$0xff] %v5154_v9  ;;  %v5252_v30 = vmul.f32 %v5165_v0, %v6721_v48  ;;  %v5256_v1 = vmul.f32 %v5165_v0, %v6722_v36  ;;  %v5260_v26 = vmul.f32 %v5165_v0, %v6723_v5  ;;  %v6724_v8 = vld [vmem:[#allocation68_spill] sm:$0xff]  ;;  %v6725_v61 = vld [vmem:[#allocation18_spill] sm:$0xff]  ;;  %v6726_v53 = vld [vmem:[#allocation19_spill] sm:$0xff]  ;;  %v1860_v46 = vrot.slane %v5236_v21, 2 }
 0x15e   : > { %6677 = vst [vmem:[#allocation56_spill] sm:$0xff] %v5157_v28  ;;  %v5264_v44 = vmul.f32 %v5165_v0, %v6724_v8  ;;  %v5268_v55 = vmul.f32 %v5165_v0, %v6725_v61  ;;  %v5272_v45 = vmul.f32 %v5165_v0, %v6726_v53  ;;  %v6727_v10 = vld [vmem:[#allocation69_spill] sm:$0xff]  ;;  %v6729_v50 = vld [vmem:[#allocation20_spill] sm:$0xff]  ;;  %v6730_v17 = vld [vmem:[#allocation70_spill] sm:$0xff]  ;;  %v1855_v51 = vrot.slane %v5224_v60, 2 }
 0x15f   : > { %6679 = vst [vmem:[#allocation57_spill] sm:$0xff] %v5160_v6  ;;  %v5276_v35 = vmul.f32 %v5165_v0, %v6727_v10  ;;  %v6728_v4 = vld [vmem:[#allocation17_spill] sm:$0xff]  ;;  %v5284_v38 = vmul.f32 %v5165_v0, %v6729_v50  ;;  %v5288_v58 = vmul.f32 %v5165_v0, %v6730_v17  ;;  %v6731_v48 = vld [vmem:[#allocation23_spill] sm:$0xff]  ;;  %v6732_v5 = vld [vmem:[#allocation24_spill] sm:$0xff]  ;;  %v1870_v60 = vrot.slane %v5260_v26, 2 }
 0x160   : > { %6681 = vst [vmem:[#allocation58_spill] sm:$0xff] %v5168_v49  ;;  %v5280_v31 = vmul.f32 %v5165_v0, %v6728_v4  ;;  %v5292_v36 = vmul.f32 %v5165_v0, %v6731_v48  ;;  %v5296_v8 = vmul.f32 %v5165_v0, %v6732_v5  ;;  %v6733_v61 = vld [vmem:[#allocation71_spill] sm:$0xff]  ;;  %v6734_v10 = vld [vmem:[#allocation21_spill] sm:$0xff]  ;;  %v6735_v50 = vld [vmem:[#allocation22_spill] sm:$0xff]  ;;  %v1850_v49 = vrot.slane %v1754_v41, 2 }
 0x161   : > { %6683 = vst [vmem:[#allocation59_spill] sm:$0xff] %v5171_v62  ;;  %v5300_v53 = vmul.f32 %v5165_v0, %v6733_v61  ;;  %v5304_v4 = vmul.f32 %v5165_v0, %v6734_v10  ;;  %v5308_v17 = vmul.f32 %v5165_v0, %v6735_v50  ;;  %v1849_v62 = vrot.slane %v1753_v40, 2  ;;  %v6752_v2 = vld [vmem:[#allocation35_spill] sm:$0xff]  ;;  %v6754_v41 = vld [vmem:[#allocation41_spill] sm:$0xff]  ;;  %v6756_v16 = vld [vmem:[#allocation48_spill] sm:$0xff] }
 0x162   : > { %6685 = vst [vmem:[#allocation60_spill] sm:$0xff] %v5174_v43  ;;  %v6748_v43 = vld [vmem:[#allocation76_spill] sm:$0xff]  ;;  %v5376_v13 = vmul.f32 %v5165_v0, %v6752_v2  ;;  %v6755_v19 = vld [vmem:[#allocation47_spill] sm:$0xff]  ;;  %v1872_v23 = vrot.slane %v5264_v44, 2  ;;  %v1875_v21 = vrot.slane %v5272_v45, 2 }
 0x163   : > { %6687 = vst [vmem:[#allocation62_spill] sm:$0xff] %v5177_v32  ;;  %v6747_v32 = vld [vmem:[#allocation34_spill] sm:$0xff]  ;;  %v1887_v44 = vrot.slane %v5300_v53, 2  ;;  %v1890_v45 = vrot.slane %v5308_v17, 2 }
 0x164   : > { %6689 = vst [vmem:[#allocation63_spill] sm:$0xff] %v5180_v22  ;;  %v6746_v22 = vld [vmem:[#allocation31_spill] sm:$0xff] }
 0x165   : > { %6691 = vst [vmem:[#allocation3_spill] sm:$0xff] %v5183_v25  ;;  %v6745_v25 = vld [vmem:[#allocation75_spill] sm:$0xff] }
 0x166   : > { %6693 = vst [vmem:[#allocation2_spill] sm:$0xff] %v5186_v29  ;;  %v6744_v29 = vld [vmem:[#allocation33_spill] sm:$0xff] }
 0x167   : > { %6695 = vst [vmem:[#allocation28_spill] sm:$0xff] %v5189_v42  ;;  %v6743_v42 = vld [vmem:[#allocation32_spill] sm:$0xff] }
 0x168   : > { %6697 = vst [vmem:[#allocation29_spill] sm:$0xff] %v5192_v18  ;;  %v6742_v18 = vld [vmem:[#allocation74_spill] sm:$0xff] }
 0x169   : > { %6699 = vst [vmem:[#allocation36_spill] sm:$0xff] %v5195_v20  ;;  %v6741_v20 = vld [vmem:[#allocation30_spill] sm:$0xff] }
 0x16a   : > { %6701 = vst [vmem:[#allocation37_spill] sm:$0xff] %v5198_v12  ;;  %v6740_v12 = vld [vmem:[#allocation26_spill] sm:$0xff] }
 0x16b   : > { %6703 = vst [vmem:[#allocation5_spill] sm:$0xff] %v5201_v37  ;;  %v6739_v37 = vld [vmem:[#allocation73_spill] sm:$0xff]  ;;  %v5328_v50 = vmul.f32 %v5165_v0, %v6740_v12  ;;  %v5348_v12 = vmul.f32 %v5165_v0, %v6745_v25  ;;  %v6750_v25 = vld [vmem:[#allocation40_spill] sm:$0xff] }
 0x16c   : > { %6705 = vst [vmem:[#allocation6_spill] sm:$0xff] %v5204_v15  ;;  %v6738_v15 = vld [vmem:[#allocation27_spill] sm:$0xff]  ;;  %v5324_v10 = vmul.f32 %v5165_v0, %v6739_v37  ;;  %v5344_v37 = vmul.f32 %v5165_v0, %v6744_v29  ;;  %v5368_v28 = vmul.f32 %v5165_v0, %v6750_v25  ;;  %v5388_v25 = vmul.f32 %v5165_v0, %v6755_v19 }
 0x16d   : > { %6707 = vst [vmem:[#allocation9_spill] sm:$0xff] %v5207_v33  ;;  %v6737_v33 = vld [vmem:[#allocation25_spill] sm:$0xff]  ;;  %v5320_v61 = vmul.f32 %v5165_v0, %v6738_v15  ;;  %v5340_v15 = vmul.f32 %v5165_v0, %v6743_v42  ;;  %v5360_v42 = vmul.f32 %v5165_v0, %v6748_v43  ;;  %v6749_v29 = vld [vmem:[#allocation39_spill] sm:$0xff]  ;;  %v6753_v43 = vld [vmem:[#allocation38_spill] sm:$0xff]  ;;  %v1859_v19 = vrot.slane %v5232_v34, 2 }
 0x16e   : > { %6709 = vst [vmem:[#allocation42_spill] sm:$0xff] %v5210_v47  ;;  %v6736_v47 = vld [vmem:[#allocation72_spill] sm:$0xff]  ;;  %v5316_v5 = vmul.f32 %v5165_v0, %v6737_v33  ;;  %v5336_v33 = vmul.f32 %v5165_v0, %v6742_v18  ;;  %v5356_v18 = vmul.f32 %v5165_v0, %v6747_v32  ;;  %v5364_v6 = vmul.f32 %v5165_v0, %v6749_v29 }
 0x16f   : > { %v5312_v48 = vmul.f32 %v5165_v0, %v6736_v47  ;;  %v5332_v47 = vmul.f32 %v5165_v0, %v6741_v20  ;;  %v5352_v20 = vmul.f32 %v5165_v0, %v6746_v22  ;;  %v6751_v22 = vld [vmem:[#allocation77_spill] sm:$0xff]  ;;  %v1852_v32 = vrot.slane %v1755_v7, 2 }
 0x170   : > { %v5372_v9 = vmul.f32 %v5165_v0, %v6751_v22  ;;  %v5380_v40 = vmul.f32 %v5165_v0, %v6753_v43  ;;  %v5384_v29 = vmul.f32 %v5165_v0, %v6754_v41  ;;  %v5392_v22 = vmul.f32 %v5165_v0, %v6756_v16  ;;  %v6757_v7 = vld [vmem:[#allocation61_spill] sm:$0xff] }
 0x171   : > { %v6758_v3 = vunpack.c.l.bf16 %v6757_v7  ;;  %v1854_v43 = vrot.slane %v5220_v54, 2  ;;  %v5402_v41 = vsel %vm742_vm1, %v1849_v62, %v1850_v49  ;;  %v5408_v16 = vsel %vm742_vm1, %v1850_v49, %v1852_v32 }
 0x172   : > { %v1862_v7 = vrot.slane %v5240_v24, 2  ;;  %v1867_v54 = vrot.slane %v5252_v30, 2  ;;  %v1869_v62 = vrot.slane %v5256_v1, 2  ;;  %v1874_v34 = vrot.slane %v5268_v55, 2 }
 0x173   : > { %v5397_v2 = vmul.f32 %v5165_v0, %v6758_v3  ;;  %v1864_v3 = vrot.slane %v5244_v52, 2  ;;  %v1865_v0 = vrot.slane %v5248_v63, 2  ;;  %v1877_v49 = vrot.slane %v5276_v35, 2 }
 0x174   : > { %v1879_v24 = vrot.slane %v5280_v31, 2  ;;  %v1880_v52 = vrot.slane %v5284_v38, 2  ;;  %v1882_v63 = vrot.slane %v5288_v58, 2  ;;  %v1884_v30 = vrot.slane %v5292_v36, 2 }
 0x175   : > { %v1885_v1 = vrot.slane %v5296_v8, 2  ;;  %v1856_v26 = vsel %vm742_vm1, %v1854_v43, %v1855_v51  ;;  %v1889_v55 = vrot.slane %v5304_v4, 2  ;;  %v1858_v35 = vsel %vm742_vm1, %v1855_v51, %v1857_v27 }
 0x176   : > { %v1861_v31 = vsel %vm742_vm1, %v1859_v19, %v1860_v46  ;;  %v1863_v38 = vsel %vm742_vm1, %v1860_v46, %v1862_v7  ;;  %v1866_v58 = vsel %vm742_vm1, %v1864_v3, %v1865_v0  ;;  %v1868_v36 = vsel %vm742_vm1, %v1865_v0, %v1867_v54 }
 0x177   : > { %v1871_v8 = vsel %vm742_vm1, %v1869_v62, %v1870_v60  ;;  %v1873_v32 = vsel %vm742_vm1, %v1870_v60, %v1872_v23  ;;  %v1876_v53 = vsel %vm742_vm1, %v1874_v34, %v1875_v21  ;;  %v1878_v4 = vsel %vm742_vm1, %v1875_v21, %v1877_v49 }
 0x178   : > { %v1881_v17 = vsel %vm742_vm1, %v1879_v24, %v1880_v52  ;;  %v1883_v27 = vsel %vm742_vm1, %v1880_v52, %v1882_v63  ;;  %v1886_v51 = vsel %vm742_vm1, %v1884_v30, %v1885_v1  ;;  %v1888_v46 = vsel %vm742_vm1, %v1885_v1, %v1887_v44 }
 0x179   : > { %v1891_v43 = vsel %vm742_vm1, %v1889_v55, %v1890_v45  ;;  %v1892_v19 = vrot.slane %v5312_v48, 2  ;;  %v1894_v7 = vrot.slane %v5316_v5, 2  ;;  %v1895_v3 = vrot.slane %v5320_v61, 2 }
 0x17a   : > { %v1897_v0 = vrot.slane %v5324_v10, 2  ;;  %v1899_v54 = vrot.slane %v5328_v50, 2  ;;  %v1900_v62 = vrot.slane %v5332_v47, 2  ;;  %v1902_v60 = vrot.slane %v5336_v33, 2 }
 0x17b   : > { %v1904_v23 = vrot.slane %v5340_v15, 2  ;;  %v1905_v34 = vrot.slane %v5344_v37, 2  ;;  %v1907_v21 = vrot.slane %v5348_v12, 2  ;;  %v1909_v48 = vrot.slane %v5352_v20, 2 }
 0x17c   : > { %v1910_v5 = vrot.slane %v5356_v18, 2  ;;  %v1912_v61 = vrot.slane %v5360_v42, 2  ;;  %v1914_v10 = vrot.slane %v5364_v6, 2  ;;  %v1915_v50 = vrot.slane %v5368_v28, 2 }
 0x17d   : > { %v1917_v47 = vrot.slane %v5372_v9, 2  ;;  %v1919_v33 = vrot.slane %v5376_v13, 2  ;;  %v1920_v15 = vrot.slane %v5380_v40, 2  ;;  %v1893_v37 = vsel %vm742_vm1, %v1890_v45, %v1892_v19 }
 0x17e   : > { %v1922_v12 = vrot.slane %v5384_v29, 2  ;;  %v1924_v20 = vrot.slane %v5388_v25, 2  ;;  %v1925_v18 = vrot.slane %v5392_v22, 2  ;;  %v1896_v42 = vsel %vm742_vm1, %v1894_v7, %v1895_v3 }
 0x17f   : > { %v1898_v6 = vsel %vm742_vm1, %v1895_v3, %v1897_v0  ;;  %v1901_v28 = vsel %vm742_vm1, %v1899_v54, %v1900_v62  ;;  %v1927_v9 = vrot.slane %v5397_v2, 2  ;;  %v1903_v13 = vsel %vm742_vm1, %v1900_v62, %v1902_v60  ;;  %v6759_v3 = vld [vmem:[#allocation45_spill] sm:$0xff]  ;;  %v6760_v54 = vld [vmem:[#allocation46_spill] sm:$0xff] }
 0x180   : > { %v1906_v40 = vsel %vm742_vm1, %v1904_v23, %v1905_v34  ;;  %v1908_v49 = vsel %vm742_vm1, %v1905_v34, %v1907_v21  ;;  %v1911_v29 = vsel %vm742_vm1, %v1909_v48, %v1910_v5  ;;  %v1913_v25 = vsel %vm742_vm1, %v1910_v5, %v1912_v61  ;;  %v6761_v60 = vld [vmem:[#allocation49_spill] sm:$0xff]  ;;  %v6763_v34 = vld [vmem:[#allocation51_spill] sm:$0xff] }
 0x181   : > { %v1916_v22 = vsel %vm742_vm1, %v1914_v10, %v1915_v50  ;;  %v1918_v24 = vsel %vm742_vm1, %v1915_v50, %v1917_v47  ;;  %v1921_v52 = vsel %vm742_vm1, %v1919_v33, %v1920_v15  ;;  %v1923_v63 = vsel %vm742_vm1, %v1920_v15, %v1922_v12  ;;  %v6765_v48 = vld [vmem:[#allocation53_spill] sm:$0xff] }
 0x182   : > { %v1926_v2 = vsel %vm742_vm1, %v1924_v20, %v1925_v18  ;;  %v1961_v30 = vadd.f32 %v5402_v41, %v5110_v14  ;;  %v1962_v1 = vadd.f32 %v5408_v16, %v5114_v11  ;;  %v1928_v44 = vsel %vm742_vm1, %v1925_v18, %v1927_v9  ;;  %v6762_v14 = vld [vmem:[#allocation50_spill] sm:$0xff]  ;;  %v6764_v16 = vld [vmem:[#allocation52_spill] sm:$0xff]  ;;  %v6778_v12 = vld [vmem:[#allocation29_spill] sm:$0xff] }
 0x183   : > { %v1963_v55 = vadd.f32 %v1856_v26, %v5118_v56  ;;  %v1964_v45 = vadd.f32 %v1858_v35, %v5121_v57  ;;  %v1965_v19 = vadd.f32 %v1861_v31, %v5124_v59  ;;  %v1966_v7 = vadd.f32 %v1863_v38, %v5127_v39  ;;  %v6766_v26 = vld [vmem:[#allocation54_spill] sm:$0xff]  ;;  %v6767_v35 = vld [vmem:[#allocation55_spill] sm:$0xff]  ;;  %v6768_v31 = vld [vmem:[#allocation56_spill] sm:$0xff] }
 0x184   : > { %v1967_v0 = vadd.f32 %v1866_v58, %v6759_v3  ;;  %v1968_v62 = vadd.f32 %v1868_v36, %v6760_v54  ;;  %v1969_v23 = vadd.f32 %v1871_v8, %v6761_v60  ;;  %v1970_v41 = vadd.f32 %v1873_v32, %v6762_v14  ;;  %v6769_v38 = vld [vmem:[#allocation57_spill] sm:$0xff]  ;;  %v5502_v36 = vld [vmem:[%s5922_s2] ss:$0 sm:$0xff]  ;;  %v6779_v18 = vld [vmem:[#allocation36_spill] sm:$0xff] }
 0x185   : > { %v1971_v11 = vadd.f32 %v1876_v53, %v6763_v34  ;;  %v1972_v21 = vadd.f32 %v1878_v4, %v6764_v16  ;;  %v1973_v56 = vadd.f32 %v1881_v17, %v6765_v48  ;;  %v1974_v57 = vadd.f32 %v1883_v27, %v6766_v26  ;;  %v6770_v8 = vld [vmem:[#allocation58_spill] sm:$0xff]  ;;  %v6771_v53 = vld [vmem:[#allocation59_spill] sm:$0xff]  ;;  %v6772_v4 = vld [vmem:[#allocation60_spill] sm:$0xff] }
 0x186   : > { %v1975_v59 = vadd.f32 %v1886_v51, %v6767_v35  ;;  %v1976_v39 = vadd.f32 %v1888_v46, %v6768_v31  ;;  %v1977_v58 = vadd.f32 %v1891_v43, %v6769_v38  ;;  %v1978_v32 = vadd.f32 %v1893_v37, %v6770_v8  ;;  %v6773_v17 = vld [vmem:[#allocation62_spill] sm:$0xff]  ;;  %v6774_v27 = vld [vmem:[#allocation63_spill] sm:$0xff]  ;;  %v6777_v43 = vld [vmem:[#allocation28_spill] sm:$0xff] }
 0x187   : > { %v1979_v5 = vadd.f32 %v1896_v42, %v6771_v53  ;;  %v1980_v61 = vadd.f32 %v1898_v6, %v6772_v4  ;;  %v1981_v10 = vadd.f32 %v1901_v28, %v6773_v17  ;;  %v1982_v50 = vadd.f32 %v1903_v13, %v6774_v27  ;;  %v6775_v51 = vld [vmem:[#allocation3_spill] sm:$0xff]  ;;  %v6776_v46 = vld [vmem:[#allocation2_spill] sm:$0xff]  ;;  %v6780_v3 = vld [vmem:[#allocation37_spill] sm:$0xff] }
 0x188   : > { %v1983_v47 = vadd.f32 %v1906_v40, %v6775_v51  ;;  %v1984_v33 = vadd.f32 %v1908_v49, %v6776_v46  ;;  %v1985_v15 = vadd.f32 %v1911_v29, %v6777_v43  ;;  %v1986_v20 = vadd.f32 %v1913_v25, %v6778_v12  ;;  %v6781_v54 = vld [vmem:[#allocation5_spill] sm:$0xff]  ;;  %v6782_v60 = vld [vmem:[#allocation6_spill] sm:$0xff] }
 0x189   : > { %v1987_v9 = vadd.f32 %v1916_v22, %v6779_v18  ;;  %v1988_v37 = vadd.f32 %v1918_v24, %v6780_v3  ;;  %v1989_v42 = vadd.f32 %v1921_v52, %v6781_v54  ;;  %v1990_v6 = vadd.f32 %v1923_v63, %v6782_v60  ;;  %v6783_v14 = vld [vmem:[#allocation9_spill] sm:$0xff]  ;;  %v6784_v34 = vld [vmem:[#allocation42_spill] sm:$0xff] }
 0x18a   : > { %v1991_v28 = vadd.f32 %v1926_v2, %v6783_v14  ;;  %v1992_v13 = vadd.f32 %v1928_v44, %v6784_v34  ;;  %v5520_v40 = vadd.f32 %v5502_v36, %v1961_v30  ;;  %v5523_v49 = vadd.f32 %v5502_v36, %v1962_v1 }
 0x18b   : > { %v5526_v29 = vadd.f32 %v5502_v36, %v1963_v55  ;;  %v5529_v25 = vadd.f32 %v5502_v36, %v1964_v45  ;;  %v5532_v22 = vadd.f32 %v5502_v36, %v1965_v19  ;;  %v5535_v24 = vadd.f32 %v5502_v36, %v1966_v7 }
 0x18c   : > { %6785 = vst [vmem:[#allocation43_spill] sm:$0xff] %v5520_v40  ;;  %v5538_v52 = vadd.f32 %v5502_v36, %v1967_v0  ;;  %v5541_v63 = vadd.f32 %v5502_v36, %v1968_v62  ;;  %v5544_v2 = vadd.f32 %v5502_v36, %v1969_v23  ;;  %v5547_v30 = vadd.f32 %v5502_v36, %v1970_v41 }
 0x18d   : > { %6786 = vst [vmem:[#allocation44_spill] sm:$0xff] %v5523_v49  ;;  %v5550_v1 = vadd.f32 %v5502_v36, %v1971_v11  ;;  %v5553_v44 = vadd.f32 %v5502_v36, %v1972_v21  ;;  %v5556_v55 = vadd.f32 %v5502_v36, %v1973_v56  ;;  %v5559_v45 = vadd.f32 %v5502_v36, %v1974_v57 }
 0x18e   : > { %6787 = vst [vmem:[#allocation4_spill] sm:$0xff] %v5526_v29  ;;  %v5562_v19 = vadd.f32 %v5502_v36, %v1975_v59  ;;  %v5565_v7 = vadd.f32 %v5502_v36, %v1976_v39  ;;  %v5568_v0 = vadd.f32 %v5502_v36, %v1977_v58  ;;  %v5571_v62 = vadd.f32 %v5502_v36, %v1978_v32 }
 0x18f   : > { %6788 = vst [vmem:[#allocation7_spill] sm:$0xff] %v5529_v25  ;;  %v5574_v23 = vadd.f32 %v5502_v36, %v1979_v5  ;;  %v5577_v41 = vadd.f32 %v5502_v36, %v1980_v61  ;;  %v5580_v11 = vadd.f32 %v5502_v36, %v1981_v10  ;;  %v5583_v16 = vadd.f32 %v5502_v36, %v1982_v50 }
 0x190   : > { %6789 = vst [vmem:[#allocation64_spill] sm:$0xff] %v5532_v22  ;;  %v5586_v21 = vadd.f32 %v5502_v36, %v1983_v47  ;;  %v5589_v48 = vadd.f32 %v5502_v36, %v1984_v33  ;;  %v5592_v56 = vadd.f32 %v5502_v36, %v1985_v15  ;;  %v5595_v26 = vadd.f32 %v5502_v36, %v1986_v20 }
 0x191   : > { %6790 = vst [vmem:[#allocation11_spill] sm:$0xff] %v5535_v24  ;;  %v5598_v57 = vadd.f32 %v5502_v36, %v1987_v9  ;;  %v5601_v35 = vadd.f32 %v5502_v36, %v1988_v37  ;;  %v5604_v59 = vadd.f32 %v5502_v36, %v1989_v42  ;;  %v5607_v31 = vadd.f32 %v5502_v36, %v1990_v6 }
 0x192   : > { %6791 = vst [vmem:[#allocation12_spill] sm:$0xff] %v5538_v52  ;;  %v5610_v39 = vmul.f32 0.5, %v5520_v40  ;;  %v5613_v38 = vmul.f32 0.5, %v5523_v49  ;;  %v5616_v58 = vmul.f32 0.5, %v5526_v29  ;;  %v5619_v8 = vmul.f32 0.5, %v5529_v25 }
 0x193   : > { %6792 = vst [vmem:[#allocation65_spill] sm:$0xff] %v5544_v2  ;;  %v5622_v32 = vmul.f32 0.5, %v5532_v22  ;;  %v5625_v53 = vmul.f32 0.5, %v5535_v24  ;;  %v5628_v5 = vmul.f32 0.5, %v5538_v52  ;;  %v5631_v4 = vmul.f32 0.5, %v5541_v63 }
 0x194   : > { %6793 = vst [vmem:[#allocation8_spill] sm:$0xff] %v5547_v30  ;;  %v5634_v61 = vmul.f32 0.5, %v5544_v2  ;;  %v5637_v17 = vmul.f32 0.5, %v5547_v30  ;;  %v5640_v10 = vmul.f32 0.5, %v5550_v1  ;;  %v5643_v27 = vmul.f32 0.5, %v5553_v44 }
 0x195   : > { %6794 = vst [vmem:[#allocation10_spill] sm:$0xff] %v5550_v1  ;;  %v5646_v50 = vmul.f32 0.5, %v5556_v55  ;;  %v5649_v51 = vmul.f32 0.5, %v5559_v45  ;;  %v5652_v47 = vmul.f32 0.5, %v5562_v19  ;;  %v5655_v46 = vmul.f32 0.5, %v5565_v7 }
 0x196   : > { %6795 = vst [vmem:[#allocation66_spill] sm:$0xff] %v5553_v44  ;;  %v5658_v33 = vmul.f32 0.5, %v5568_v0  ;;  %v5661_v43 = vmul.f32 0.5, %v5571_v62  ;;  %v5664_v15 = vmul.f32 0.5, %v5574_v23  ;;  %v5667_v12 = vmul.f32 0.5, %v5577_v41 }
 0x197   : > { %6796 = vst [vmem:[#allocation13_spill] sm:$0xff] %v5556_v55  ;;  %v5670_v20 = vmul.f32 0.5, %v5580_v11  ;;  %v5673_v18 = vmul.f32 0.5, %v5583_v16  ;;  %v2061_v9 = vmul.f32 0.044715, %v5520_v40  ;;  %v5677_v3 = vmul.f32 0.5, %v5586_v21 }
 0x198   : > { %6797 = vst [vmem:[#allocation15_spill] sm:$0xff] %v5559_v45  ;;  %v5680_v37 = vmul.f32 0.5, %v5589_v48  ;;  %v5683_v54 = vmul.f32 0.5, %v5592_v56  ;;  %v2062_v42 = vmul.f32 0.044715, %v5523_v49  ;;  %v5687_v60 = vadd.f32 %v5502_v36, %v1991_v28 }
 0x199   : > { %6798 = vst [vmem:[#allocation67_spill] sm:$0xff] %v5562_v19  ;;  %v2063_v6 = vmul.f32 0.044715, %v5526_v29  ;;  %v2064_v14 = vmul.f32 0.044715, %v5529_v25 }
 0x19a   : > { %6799 = vst [vmem:[#allocation14_spill] sm:$0xff] %v5565_v7  ;;  %v2065_v34 = vmul.f32 0.044715, %v5532_v22  ;;  %v2070_v28 = vmul.f32 0.044715, %v5547_v30 }
 0x19b   : > { %6800 = vst [vmem:[#allocation16_spill] sm:$0xff] %v5568_v0 }
 0x19c   : > { %6801 = vst [vmem:[#allocation68_spill] sm:$0xff] %v5571_v62 }
 0x19d   : > { %6802 = vst [vmem:[#allocation18_spill] sm:$0xff] %v5577_v41 }
 0x19e   : > { %6803 = vst [vmem:[#allocation19_spill] sm:$0xff] %v5580_v11 }
 0x19f   : > { %6804 = vst [vmem:[#allocation69_spill] sm:$0xff] %v5583_v16 }
 0x1a0   : > { %6805 = vst [vmem:[#allocation17_spill] sm:$0xff] %v5586_v21 }
 0x1a1   : > { %6806 = vst [vmem:[#allocation20_spill] sm:$0xff] %v5589_v48 }
 0x1a2   : > { %6807 = vst [vmem:[#allocation70_spill] sm:$0xff] %v5592_v56 }
 0x1a3   : > { %6808 = vst [vmem:[#allocation23_spill] sm:$0xff] %v5595_v26 }
 0x1a4   : > { %6809 = vst [vmem:[#allocation24_spill] sm:$0xff] %v5598_v57 }
 0x1a5   : > { %6810 = vst [vmem:[#allocation71_spill] sm:$0xff] %v5601_v35 }
 0x1a6   : > { %6811 = vst [vmem:[#allocation21_spill] sm:$0xff] %v5604_v59 }
 0x1a7   : > { %6812 = vst [vmem:[#allocation22_spill] sm:$0xff] %v5607_v31 }
 0x1a8   : > { %6813 = vst [vmem:[#allocation72_spill] sm:$0xff] %v5610_v39 }
 0x1a9   : > { %6814 = vst [vmem:[#allocation25_spill] sm:$0xff] %v5613_v38  ;;  %v2089_v38 = vmul.f32 0.044715, %v5604_v59 }
 0x1aa   : > { %6815 = vst [vmem:[#allocation27_spill] sm:$0xff] %v5616_v58  ;;  %v2087_v58 = vmul.f32 0.044715, %v5598_v57 }
 0x1ab   : > { %6816 = vst [vmem:[#allocation73_spill] sm:$0xff] %v5619_v8 }
 0x1ac   : > { %6817 = vst [vmem:[#allocation26_spill] sm:$0xff] %v5622_v32  ;;  %v2086_v32 = vmul.f32 0.044715, %v5595_v26 }
 0x1ad   : > { %6818 = vst [vmem:[#allocation30_spill] sm:$0xff] %v5625_v53  ;;  %v2084_v53 = vmul.f32 0.044715, %v5589_v48 }
 0x1ae   : > { %6819 = vst [vmem:[#allocation74_spill] sm:$0xff] %v5628_v5  ;;  %v2097_v5 = vmul.f32 %v2065_v34, %v5532_v22  ;;  %v2091_v34 = vmul.f32 0.044715, %v5687_v60 }
 0x1af   : > { %6820 = vst [vmem:[#allocation32_spill] sm:$0xff] %v5631_v4  ;;  %v2083_v4 = vmul.f32 0.044715, %v5586_v21 }
 0x1b0   : > { %6821 = vst [vmem:[#allocation33_spill] sm:$0xff] %v5634_v61  ;;  %v2081_v61 = vmul.f32 0.044715, %v5580_v11 }
 0x1b1   : > { %6822 = vst [vmem:[#allocation75_spill] sm:$0xff] %v5637_v17  ;;  %v2096_v17 = vmul.f32 %v2064_v14, %v5529_v25  ;;  %v2088_v14 = vmul.f32 0.044715, %v5601_v35  ;;  %v2090_v25 = vmul.f32 0.044715, %v5607_v31 }
 0x1b2   : > { %6823 = vst [vmem:[#allocation31_spill] sm:$0xff] %v5640_v10  ;;  %v2080_v10 = vmul.f32 0.044715, %v5577_v41 }
 0x1b3   : > { %6824 = vst [vmem:[#allocation34_spill] sm:$0xff] %v5643_v27  ;;  %v2078_v27 = vmul.f32 0.044715, %v5571_v62 }
 0x1b4   : > { %6825 = vst [vmem:[#allocation76_spill] sm:$0xff] %v5646_v50  ;;  %v2095_v50 = vmul.f32 %v2063_v6, %v5526_v29  ;;  %v2085_v6 = vmul.f32 0.044715, %v5592_v56 }
 0x1b5   : > { %6826 = vst [vmem:[#allocation39_spill] sm:$0xff] %v5649_v51  ;;  %v2077_v51 = vmul.f32 0.044715, %v5568_v0 }
 0x1b6   : > { %6827 = vst [vmem:[#allocation40_spill] sm:$0xff] %v5652_v47  ;;  %v2076_v47 = vmul.f32 0.044715, %v5565_v7 }
 0x1b7   : > { %6828 = vst [vmem:[#allocation77_spill] sm:$0xff] %v5655_v46  ;;  %v2075_v46 = vmul.f32 0.044715, %v5562_v19 }
 0x1b8   : > { %6829 = vst [vmem:[#allocation35_spill] sm:$0xff] %v5658_v33  ;;  %v2073_v33 = vmul.f32 0.044715, %v5556_v55 }
 0x1b9   : > { %6830 = vst [vmem:[#allocation38_spill] sm:$0xff] %v5661_v43  ;;  %v2072_v43 = vmul.f32 0.044715, %v5553_v44 }
 0x1ba   : > { %6831 = vst [vmem:[#allocation41_spill] sm:$0xff] %v5664_v15  ;;  %v2093_v15 = vmul.f32 %v2061_v9, %v5520_v40  ;;  %v2079_v9 = vmul.f32 0.044715, %v5574_v23  ;;  %v2105_v59 = vmul.f32 %v2073_v33, %v5556_v55  ;;  %v2115_v33 = vmul.f32 %v2083_v4, %v5586_v21  ;;  %v6844_v21 = vld [vmem:[#allocation44_spill] sm:$0xff] }
 0x1bb   : > { %6832 = vst [vmem:[#allocation47_spill] sm:$0xff] %v5667_v12  ;;  %v2071_v12 = vmul.f32 0.044715, %v5550_v1  ;;  %v2104_v40 = vmul.f32 %v2072_v43, %v5553_v44 }
 0x1bc   : > { %6833 = vst [vmem:[#allocation48_spill] sm:$0xff] %v5670_v20  ;;  %v2069_v20 = vmul.f32 0.044715, %v5544_v2 }
 0x1bd   : > { %6834 = vst [vmem:[#allocation61_spill] sm:$0xff] %v5673_v18  ;;  %v5693_v18 = vadd.f32 %v5502_v36, %v1992_v13  ;;  %v2074_v36 = vmul.f32 0.044715, %v5559_v45  ;;  %v2094_v13 = vmul.f32 %v2062_v42, %v5523_v49  ;;  %v2082_v42 = vmul.f32 0.044715, %v5583_v16 }
 0x1be   : > { %6835 = vst [vmem:[#allocation45_spill] sm:$0xff] %v5677_v3  ;;  %v2066_v3 = vmul.f32 0.044715, %v5535_v24  ;;  %v2101_v49 = vmul.f32 %v2069_v20, %v5544_v2  ;;  %v2111_v20 = vmul.f32 %v2079_v9, %v5574_v23 }
 0x1bf   : > { %6836 = vst [vmem:[#allocation46_spill] sm:$0xff] %v5680_v37  ;;  %v2067_v37 = vmul.f32 0.044715, %v5538_v52  ;;  %v2092_v22 = vmul.f32 0.044715, %v5693_v18  ;;  %v2114_v43 = vmul.f32 %v2082_v42, %v5583_v16  ;;  %v6843_v16 = vld [vmem:[#allocation43_spill] sm:$0xff] }
 0x1c0   : > { %6837 = vst [vmem:[#allocation49_spill] sm:$0xff] %v5683_v54  ;;  %v2068_v54 = vmul.f32 0.044715, %v5541_v63  ;;  %v2098_v8 = vmul.f32 %v2066_v3, %v5535_v24  ;;  %v2102_v3 = vmul.f32 %v2070_v28, %v5547_v30  ;;  %v2103_v24 = vmul.f32 %v2071_v12, %v5550_v1 }
 0x1c1   : > { %6838 = vst [vmem:[#allocation50_spill] sm:$0xff] %v5687_v60  ;;  %v2099_v39 = vmul.f32 %v2067_v37, %v5538_v52  ;;  %v2106_v37 = vmul.f32 %v2074_v36, %v5559_v45  ;;  %v2107_v52 = vmul.f32 %v2075_v46, %v5562_v19  ;;  %v2108_v60 = vmul.f32 %v2076_v47, %v5565_v7 }
 0x1c2   : > { %6839 = vst [vmem:[#allocation51_spill] sm:$0xff] %v5693_v18  ;;  %v2100_v29 = vmul.f32 %v2068_v54, %v5541_v63  ;;  %v2109_v18 = vmul.f32 %v2077_v51, %v5568_v0  ;;  %v2110_v54 = vmul.f32 %v2078_v27, %v5571_v62  ;;  %v2112_v28 = vmul.f32 %v2080_v10, %v5577_v41  ;;  %v6840_v62 = vld [vmem:[#allocation21_spill] sm:$0xff] }
 0x1c3   : > { %v2113_v12 = vmul.f32 %v2081_v61, %v5580_v11  ;;  %v2116_v36 = vmul.f32 %v2084_v53, %v5589_v48  ;;  %v2117_v46 = vmul.f32 %v2085_v6, %v5592_v56  ;;  %v2118_v47 = vmul.f32 %v2086_v32, %v5595_v26  ;;  %v6845_v48 = vld [vmem:[#allocation4_spill] sm:$0xff]  ;;  %v6846_v56 = vld [vmem:[#allocation7_spill] sm:$0xff] }
 0x1c4   : > { %v2119_v51 = vmul.f32 %v2087_v58, %v5598_v57  ;;  %v2120_v27 = vmul.f32 %v2088_v14, %v5601_v35  ;;  %v2121_v9 = vmul.f32 %v2089_v38, %v6840_v62  ;;  %v2122_v10 = vmul.f32 %v2090_v25, %v5607_v31  ;;  %v6847_v26 = vld [vmem:[#allocation64_spill] sm:$0xff]  ;;  %v6848_v57 = vld [vmem:[#allocation11_spill] sm:$0xff] }
 0x1c5   : > { %v2125_v4 = vmul.f32 %v2093_v15, %v6843_v16  ;;  %v2126_v53 = vmul.f32 %v2094_v13, %v6844_v21  ;;  %v2127_v6 = vmul.f32 %v2095_v50, %v6845_v48  ;;  %v2128_v32 = vmul.f32 %v2096_v17, %v6846_v56  ;;  %v6849_v35 = vld [vmem:[#allocation12_spill] sm:$0xff] }
 0x1c6   : > { %v2129_v58 = vmul.f32 %v2097_v5, %v6847_v26  ;;  %v2130_v14 = vmul.f32 %v2098_v8, %v6848_v57  ;;  %v2131_v38 = vmul.f32 %v2099_v39, %v6849_v35  ;;  %v2132_v25 = vmul.f32 %v2100_v29, %v5541_v63  ;;  %v6850_v35 = vld [vmem:[#allocation68_spill] sm:$0xff] }
 0x1c7   : > { %v2135_v15 = vmul.f32 %v2103_v24, %v5550_v1  ;;  %v2136_v13 = vmul.f32 %v2104_v40, %v5553_v44  ;;  %v2137_v50 = vmul.f32 %v2105_v59, %v5556_v55  ;;  %v2138_v17 = vmul.f32 %v2106_v37, %v5559_v45  ;;  %v6853_v1 = vld [vmem:[#allocation69_spill] sm:$0xff]  ;;  %v6855_v55 = vld [vmem:[#allocation20_spill] sm:$0xff]  ;;  %v6856_v45 = vld [vmem:[#allocation70_spill] sm:$0xff] }
 0x1c8   : > { %v6841_v41 = vld [vmem:[#allocation50_spill] sm:$0xff]  ;;  %v2139_v5 = vmul.f32 %v2107_v52, %v5562_v19  ;;  %v2140_v8 = vmul.f32 %v2108_v60, %v5565_v7  ;;  %v2141_v39 = vmul.f32 %v2109_v18, %v5568_v0  ;;  %v2142_v29 = vmul.f32 %v2110_v54, %v6850_v35  ;;  %v6854_v44 = vld [vmem:[#allocation17_spill] sm:$0xff]  ;;  %v6857_v19 = vld [vmem:[#allocation23_spill] sm:$0xff] }
 0x1c9   : > { %v2123_v61 = vmul.f32 %v2091_v34, %v6841_v41  ;;  %v6842_v11 = vld [vmem:[#allocation51_spill] sm:$0xff]  ;;  %v2133_v34 = vmul.f32 %v2101_v49, %v5544_v2  ;;  %v2143_v49 = vmul.f32 %v2111_v20, %v5574_v23  ;;  %v6851_v2 = vld [vmem:[#allocation18_spill] sm:$0xff]  ;;  %v2146_v40 = vmul.f32 %v2114_v43, %v6853_v1  ;;  %v6858_v7 = vld [vmem:[#allocation24_spill] sm:$0xff] }
 0x1ca   : > { %v2124_v42 = vmul.f32 %v2092_v22, %v6842_v11  ;;  %v2134_v22 = vmul.f32 %v2102_v3, %v5547_v30  ;;  %v2144_v3 = vmul.f32 %v2112_v28, %v6851_v2  ;;  %v6852_v30 = vld [vmem:[#allocation19_spill] sm:$0xff]  ;;  %v2147_v59 = vmul.f32 %v2115_v33, %v6854_v44 }
 0x1cb   : > { %v2145_v24 = vmul.f32 %v2113_v12, %v6852_v30  ;;  %v2148_v37 = vmul.f32 %v2116_v36, %v6855_v55  ;;  %v2149_v52 = vmul.f32 %v2117_v46, %v6856_v45  ;;  %v2150_v60 = vmul.f32 %v2118_v47, %v6857_v19  ;;  %v6859_v0 = vld [vmem:[#allocation71_spill] sm:$0xff] }
 0x1cc   : > { %v2151_v18 = vmul.f32 %v2119_v51, %v6858_v7  ;;  %v2152_v54 = vmul.f32 %v2120_v27, %v6859_v0  ;;  %v2153_v20 = vmul.f32 %v2121_v9, %v6840_v62  ;;  %v2154_v28 = vmul.f32 %v2122_v10, %v5607_v31  ;;  %v6860_v0 = vld [vmem:[#allocation12_spill] sm:$0xff]  ;;  %v6861_v31 = vld [vmem:[#allocation65_spill] sm:$0xff] }
 0x1cd   : > { %v2155_v12 = vmul.f32 %v2123_v61, %v6841_v41  ;;  %v2156_v43 = vmul.f32 %v2124_v42, %v6842_v11  ;;  %v2157_v33 = vadd.f32 %v2125_v4, %v6843_v16  ;;  %v2158_v36 = vadd.f32 %v2126_v53, %v6844_v21  ;;  %v6862_v41 = vld [vmem:[#allocation8_spill] sm:$0xff]  ;;  %v6863_v11 = vld [vmem:[#allocation10_spill] sm:$0xff]  ;;  %v6865_v53 = vld [vmem:[#allocation13_spill] sm:$0xff] }
 0x1ce   : > { %v2159_v46 = vadd.f32 %v2127_v6, %v6845_v48  ;;  %v2160_v47 = vadd.f32 %v2128_v32, %v6846_v56  ;;  %v2161_v51 = vadd.f32 %v2129_v58, %v6847_v26  ;;  %v2162_v27 = vadd.f32 %v2130_v14, %v6848_v57  ;;  %v6864_v4 = vld [vmem:[#allocation66_spill] sm:$0xff]  ;;  %v6866_v6 = vld [vmem:[#allocation15_spill] sm:$0xff]  ;;  %v6869_v14 = vld [vmem:[#allocation16_spill] sm:$0xff] }
 0x1cf   : > { %v2163_v9 = vadd.f32 %v2131_v38, %v6860_v0  ;;  %v2164_v10 = vadd.f32 %v2132_v25, %v5541_v63  ;;  %v2165_v61 = vadd.f32 %v2133_v34, %v6861_v31  ;;  %v2166_v42 = vadd.f32 %v2134_v22, %v6862_v41  ;;  %v6867_v32 = vld [vmem:[#allocation67_spill] sm:$0xff]  ;;  %v6868_v58 = vld [vmem:[#allocation14_spill] sm:$0xff] }
 0x1d0   : > { %v2167_v16 = vadd.f32 %v2135_v15, %v6863_v11  ;;  %v2168_v21 = vadd.f32 %v2136_v13, %v6864_v4  ;;  %v2169_v48 = vadd.f32 %v2137_v50, %v6865_v53  ;;  %v2170_v56 = vadd.f32 %v2138_v17, %v6866_v6 }
 0x1d1   : > { %v2171_v26 = vadd.f32 %v2139_v5, %v6867_v32  ;;  %v2172_v57 = vadd.f32 %v2140_v8, %v6868_v58  ;;  %v2173_v0 = vadd.f32 %v2141_v39, %v6869_v14  ;;  %v2174_v63 = vadd.f32 %v2142_v29, %v6850_v35  ;;  %v6872_v39 = vld [vmem:[#allocation50_spill] sm:$0xff]  ;;  %v6874_v32 = vld [vmem:[#allocation72_spill] sm:$0xff]  ;;  %v6875_v58 = vld [vmem:[#allocation25_spill] sm:$0xff] }
 0x1d2   : > { %v2175_v31 = vadd.f32 %v2143_v49, %v5574_v23  ;;  %v2176_v41 = vadd.f32 %v2144_v3, %v6851_v2  ;;  %v2177_v11 = vadd.f32 %v2145_v24, %v6852_v30  ;;  %v2178_v38 = vadd.f32 %v2146_v40, %v6853_v1  ;;  %v6870_v30 = vld [vmem:[#allocation71_spill] sm:$0xff] }
 0x1d3   : > { %v2189_v25 = vmul.f32 0.7978846, %v2157_v33  ;;  %v2190_v34 = vmul.f32 0.7978846, %v2158_v36  ;;  %v2179_v22 = vadd.f32 %v2147_v59, %v6854_v44  ;;  %v2180_v15 = vadd.f32 %v2148_v37, %v6855_v55  ;;  %v6871_v55 = vld [vmem:[#allocation22_spill] sm:$0xff]  ;;  %v6873_v49 = vld [vmem:[#allocation51_spill] sm:$0xff] }
 0x1d4   : > { %v2191_v13 = vmul.f32 0.7978846, %v2159_v46  ;;  %v2192_v50 = vmul.f32 0.7978846, %v2160_v47  ;;  %v2181_v17 = vadd.f32 %v2149_v52, %v6856_v45  ;;  %v5812_v35 = vadd.f32 %v2150_v60, %v6857_v19 }
 0x1d5   : > { %v2193_v23 = vmul.f32 0.7978846, %v2161_v51  ;;  %2679 = vtanh.f32 %v2189_v25  ;;  %v5815_v2 = vadd.f32 %v2151_v18, %v6858_v7  ;;  %v5818_v1 = vadd.f32 %v2152_v54, %v6870_v30 }
 0x1d6   : > { %v2194_v5 = vmul.f32 0.7978846, %v2162_v27  ;;  %2681 = vtanh.f32 %v2190_v34  ;;  %v5821_v44 = vadd.f32 %v2153_v20, %v6840_v62  ;;  %v5824_v8 = vadd.f32 %v2154_v28, %v6871_v55  ;;  %v6878_v34 = vld [vmem:[#allocation26_spill] sm:$0xff] }
 0x1d7   : > { %v2195_v45 = vmul.f32 0.7978846, %v2163_v9  ;;  %2683 = vtanh.f32 %v2191_v13  ;;  %v5827_v29 = vadd.f32 %v2155_v12, %v6872_v39  ;;  %v5830_v3 = vadd.f32 %v2156_v43, %v6873_v49 }
 0x1d8   : > { %v2196_v24 = vmul.f32 0.7978846, %v2164_v10  ;;  %2685 = vtanh.f32 %v2192_v50  ;;  %v2197_v40 = vmul.f32 0.7978846, %v2165_v61  ;;  %v2198_v59 = vmul.f32 0.7978846, %v2166_v42 }
 0x1d9   : > { %v2199_v37 = vmul.f32 0.7978846, %v2167_v16  ;;  %2687 = vtanh.f32 %v2193_v23  ;;  %v2200_v52 = vmul.f32 0.7978846, %v2168_v21  ;;  %v2201_v60 = vmul.f32 0.7978846, %v2169_v48 }
 0x1da   : > { %v2202_v18 = vmul.f32 0.7978846, %v2170_v56  ;;  %2689 = vtanh.f32 %v2194_v5  ;;  %v2203_v20 = vmul.f32 0.7978846, %v2171_v26  ;;  %v2204_v28 = vmul.f32 0.7978846, %v2172_v57 }
 0x1db   : > { %v2680_v54 = vpop.eup %2679  ;;  %v2205_v33 = vmul.f32 0.7978846, %v2173_v0  ;;  %2691 = vtanh.f32 %v2195_v45  ;;  %v2206_v36 = vmul.f32 0.7978846, %v2174_v63  ;;  %v2207_v43 = vmul.f32 0.7978846, %v2175_v31 }
 0x1dc   : > { %v2682_v12 = vpop.eup %2681  ;;  %v5832_v46 = vmul.f32 0.7978846, %v2176_v41  ;;  %2693 = vtanh.f32 %v2196_v24  ;;  %v5834_v51 = vmul.f32 0.7978846, %v2177_v11  ;;  %v5836_v27 = vmul.f32 0.7978846, %v2178_v38 }
 0x1dd   : > { %v2684_v47 = vpop.eup %2683  ;;  %v5838_v9 = vmul.f32 0.7978846, %v2179_v22  ;;  %2695 = vtanh.f32 %v2197_v40  ;;  %v2253_v61 = vadd.f32 1.0, %v2680_v54  ;;  %v2254_v42 = vadd.f32 1.0, %v2682_v12  ;;  %v6876_v63 = vld [vmem:[#allocation27_spill] sm:$0xff]  ;;  %v6877_v41 = vld [vmem:[#allocation73_spill] sm:$0xff] }
 0x1de   : > { %v2686_v10 = vpop.eup %2685  ;;  %2697 = vtanh.f32 %v2198_v59  ;;  %v2255_v16 = vadd.f32 1.0, %v2684_v47  ;;  %v5841_v21 = vmul.f32 0.7978846, %v2180_v15  ;;  %v5843_v53 = vmul.f32 0.7978846, %v2181_v17  ;;  %v6879_v17 = vld [vmem:[#allocation30_spill] sm:$0xff] }
 0x1df   : > { %v2688_v4 = vpop.eup %2687  ;;  %2699 = vtanh.f32 %v2199_v37  ;;  %v2256_v48 = vadd.f32 1.0, %v2686_v10  ;;  %v2285_v26 = vmul.f32 %v2253_v61, %v6874_v32  ;;  %v2286_v57 = vmul.f32 %v2254_v42, %v6875_v58  ;;  %v6880_v59 = vld [vmem:[#allocation74_spill] sm:$0xff]  ;;  %v6882_v61 = vld [vmem:[#allocation33_spill] sm:$0xff]  ;;  %v6884_v32 = vld [vmem:[#allocation31_spill] sm:$0xff] }
 0x1e0   : > { %v2690_v6 = vpop.eup %2689  ;;  %2701 = vtanh.f32 %v2200_v52  ;;  %v2257_v56 = vadd.f32 1.0, %v2688_v4  ;;  %v2287_v31 = vmul.f32 %v2255_v16, %v6876_v63  ;;  %v2214_v24 = vmul.f32 0.7978846, %v5812_v35  ;;  %v6883_v16 = vld [vmem:[#allocation75_spill] sm:$0xff]  ;;  %v6885_v58 = vld [vmem:[#allocation34_spill] sm:$0xff]  ;;  %v6886_v63 = vld [vmem:[#allocation76_spill] sm:$0xff] }
 0x1e1   : > { %v2692_v14 = vpop.eup %2691  ;;  %2703 = vtanh.f32 %v2201_v60  ;;  %v2258_v0 = vadd.f32 1.0, %v2690_v6  ;;  %v2288_v11 = vmul.f32 %v2256_v48, %v6877_v41  ;;  %v2544_v15 = vpack.c.bf16 %v2286_v57, %v2285_v26 }
 0x1e2   : > { %v2694_v38 = vpop.eup %2693  ;;  %2705 = vtanh.f32 %v2202_v18  ;;  %v2259_v25 = vadd.f32 1.0, %v2692_v14  ;;  %v2289_v22 = vmul.f32 %v2257_v56, %v6878_v34  ;;  %v6881_v18 = vld [vmem:[#allocation32_spill] sm:$0xff]  ;;  %v2215_v47 = vmul.f32 0.7978846, %v5815_v2 }
 0x1e3   : > { %v2696_v13 = vpop.eup %2695  ;;  %2707 = vtanh.f32 %v2203_v20  ;;  %v2260_v50 = vadd.f32 1.0, %v2694_v38  ;;  %v2290_v23 = vmul.f32 %v2258_v0, %v6879_v17  ;;  %v2549_v5 = vpack.c.bf16 %v2288_v11, %v2287_v31  ;;  %2545 = vst [vmem:[%s5850_s19] sm:$0xff] %v2544_v15   ;;  %v6887_v11 = vld [vmem:[#allocation39_spill] sm:$0xff] }
 0x1e4   : > { %v2698_v45 = vpop.eup %2697  ;;  %2709 = vtanh.f32 %v2204_v28  ;;  %v2261_v40 = vadd.f32 1.0, %v2696_v13  ;;  %v2291_v37 = vmul.f32 %v2259_v25, %v6880_v59  ;;  %v2216_v6 = vmul.f32 0.7978846, %v5818_v1 }
 0x1e5   : > { %v2700_v52 = vpop.eup %2699  ;;  %2711 = vtanh.f32 %v2205_v33  ;;  %v2262_v60 = vadd.f32 1.0, %v2698_v45  ;;  %v2292_v54 = vmul.f32 %v2260_v50, %v6881_v18  ;;  %2629 = vst [vmem:[%s5850_s19 + $0x8] sm:$0xff] %v2549_v5   ;;  %v2554_v20 = vpack.c.bf16 %v2290_v23, %v2289_v22  ;;  %v6888_v22 = vld [vmem:[#allocation40_spill] sm:$0xff]  ;;  %v6889_v50 = vld [vmem:[#allocation77_spill] sm:$0xff] }
 0x1e6   : > { %v2702_v12 = vpop.eup %2701  ;;  %2713 = vtanh.f32 %v2206_v36  ;;  %v2263_v10 = vadd.f32 1.0, %v2700_v52  ;;  %v2293_v35 = vmul.f32 %v2261_v40, %v6882_v61  ;;  %v2217_v0 = vmul.f32 0.7978846, %v5821_v44 }
 0x1e7   : > { %v2704_v28 = vpop.eup %2703  ;;  %2715 = vtanh.f32 %v2207_v43  ;;  %v2264_v42 = vadd.f32 1.0, %v2702_v12  ;;  %v2294_v4 = vmul.f32 %v2262_v60, %v6883_v16  ;;  %2630 = vst [vmem:[%s5850_s19 + $0x10] sm:$0xff] %v2554_v20   ;;  %v2559_v33 = vpack.c.bf16 %v2292_v54, %v2291_v37  ;;  %v6891_v37 = vld [vmem:[#allocation38_spill] sm:$0xff]  ;;  %v6892_v20 = vld [vmem:[#allocation41_spill] sm:$0xff]  ;;  %v6894_v16 = vld [vmem:[#allocation48_spill] sm:$0xff] }
 0x1e8   : > { %v2706_v48 = vpop.eup %2705  ;;  %2717 = vtanh.f32 %v5832_v46  ;;  %v2265_v56 = vadd.f32 1.0, %v2704_v28  ;;  %v2295_v2 = vmul.f32 %v2263_v10, %v6884_v32  ;;  %v2218_v34 = vmul.f32 0.7978846, %v5824_v8  ;;  %v6890_v8 = vld [vmem:[#allocation35_spill] sm:$0xff] }
 0x1e9   : > { %v2708_v36 = vpop.eup %2707  ;;  %2719 = vtanh.f32 %v5834_v51  ;;  %v2266_v26 = vadd.f32 1.0, %v2706_v48  ;;  %v2296_v43 = vmul.f32 %v2264_v42, %v6885_v58  ;;  %2631 = vst [vmem:[%s5850_s19 + $0x18] sm:$0xff] %v2559_v33   ;;  %v2564_v57 = vpack.c.bf16 %v2294_v4, %v2293_v35  ;;  %v6893_v10 = vld [vmem:[#allocation47_spill] sm:$0xff]  ;;  %v6895_v48 = vld [vmem:[#allocation61_spill] sm:$0xff] }
 0x1ea   : > { %v2710_v14 = vpop.eup %2709  ;;  %2721 = vtanh.f32 %v5836_v27  ;;  %v2267_v1 = vadd.f32 1.0, %v2708_v36  ;;  %v2297_v46 = vmul.f32 %v2265_v56, %v6886_v63  ;;  %v2219_v5 = vmul.f32 0.7978846, %v5827_v29 }
 0x1eb   : > { %v2712_v31 = vpop.eup %2711  ;;  %2723 = vtanh.f32 %v5838_v9  ;;  %v2268_v41 = vadd.f32 1.0, %v2710_v14  ;;  %v2298_v51 = vmul.f32 %v2266_v26, %v6887_v11  ;;  %2632 = vst [vmem:[%s5850_s19 + $0x20] sm:$0xff] %v2564_v57   ;;  %v2569_v38 = vpack.c.bf16 %v2296_v43, %v2295_v2  ;;  %v6896_v26 = vld [vmem:[#allocation45_spill] sm:$0xff]  ;;  %v6897_v14 = vld [vmem:[#allocation46_spill] sm:$0xff] }
 0x1ec   : > { %v2714_v25 = vpop.eup %2713  ;;  %2725 = vtanh.f32 %v5841_v21  ;;  %v2269_v44 = vadd.f32 1.0, %v2712_v31  ;;  %v2299_v27 = vmul.f32 %v2267_v1, %v6888_v22  ;;  %v2220_v18 = vmul.f32 0.7978846, %v5830_v3 }
 0x1ed   : > { %v2716_v15 = vpop.eup %2715  ;;  %2727 = vtanh.f32 %v5843_v53  ;;  %v2270_v13 = vadd.f32 1.0, %v2714_v25  ;;  %v2300_v9 = vmul.f32 %v2268_v41, %v6889_v50  ;;  %2633 = vst [vmem:[%s5850_s19 + $0x28] sm:$0xff] %v2569_v38   ;;  %v2574_v17 = vpack.c.bf16 %v2298_v51, %v2297_v46  ;;  %v6898_v41 = vld [vmem:[#allocation49_spill] sm:$0xff] }
 0x1ee   : > { %v2718_v23 = vpop.eup %2717  ;;  %2729 = vtanh.f32 %v2214_v24  ;;  %v2271_v45 = vadd.f32 1.0, %v2716_v15  ;;  %v2301_v40 = vmul.f32 %v2269_v44, %v6890_v8  ;;  %v2054_v28 = vmul.f32 0.5, %v6857_v19 }
 0x1ef   : > { %v2720_v21 = vpop.eup %2719  ;;  %2731 = vtanh.f32 %v2215_v47  ;;  %v2272_v59 = vadd.f32 1.0, %v2718_v23  ;;  %v2302_v52 = vmul.f32 %v2270_v13, %v6891_v37  ;;  %2634 = vst [vmem:[%s5850_s19 + $0x30] sm:$0xff] %v2574_v17   ;;  %v2579_v53 = vpack.c.bf16 %v2300_v9, %v2299_v27 }
 0x1f0   : > { %v2722_v60 = vpop.eup %2721  ;;  %2733 = vtanh.f32 %v2216_v6  ;;  %v2273_v54 = vadd.f32 1.0, %v2720_v21  ;;  %v2303_v12 = vmul.f32 %v2271_v45, %v6892_v20  ;;  %v2055_v2 = vmul.f32 0.5, %v6858_v7 }
 0x1f1   : > { %v2724_v29 = vpop.eup %2723  ;;  %2735 = vtanh.f32 %v2217_v0  ;;  %v2274_v24 = vadd.f32 1.0, %v2722_v60  ;;  %v2304_v61 = vmul.f32 %v2272_v59, %v6893_v10  ;;  %2635 = vst [vmem:[%s5850_s19 + $0x38] sm:$0xff] %v2579_v53   ;;  %v2584_v47 = vpack.c.bf16 %v2302_v52, %v2301_v40 }
 0x1f2   : > { %v2726_v35 = vpop.eup %2725  ;;  %2737 = vtanh.f32 %v2218_v34  ;;  %v2275_v42 = vadd.f32 1.0, %v2724_v29  ;;  %v2305_v4 = vmul.f32 %v2273_v54, %v6894_v16  ;;  %v2056_v43 = vmul.f32 0.5, %v6870_v30 }
 0x1f3   : > { %v2728_v3 = vpop.eup %2727  ;;  %2739 = vtanh.f32 %v2219_v5  ;;  %v2276_v33 = vadd.f32 1.0, %v2726_v35  ;;  %v2306_v6 = vmul.f32 %v2274_v24, %v6895_v48  ;;  %2636 = vst [vmem:[%s5850_s19 + $0x40] sm:$0xff] %v2584_v47   ;;  %v2589_v56 = vpack.c.bf16 %v2304_v61, %v2303_v12 }
 0x1f4   : > { %v2730_v32 = vpop.eup %2729  ;;  %2741 = vtanh.f32 %v2220_v18  ;;  %v2277_v36 = vadd.f32 1.0, %v2728_v3  ;;  %v2307_v19 = vmul.f32 %v2275_v42, %v6896_v26  ;;  %v2057_v46 = vmul.f32 0.5, %v6840_v62 }
 0x1f5   : > { %v2732_v58 = vpop.eup %2731  ;;  %v2278_v57 = vadd.f32 1.0, %v2730_v32  ;;  %v2308_v0 = vmul.f32 %v2276_v33, %v6897_v14  ;;  %2637 = vst [vmem:[%s5850_s19 + $0x48] sm:$0xff] %v2589_v56   ;;  %v2594_v1 = vpack.c.bf16 %v2306_v6, %v2305_v4  ;;  %v2058_v51 = vmul.f32 0.5, %v6871_v55 }
 0x1f6   : > { %v2734_v63 = vpop.eup %2733  ;;  %v2279_v31 = vadd.f32 1.0, %v2732_v58  ;;  %v2309_v7 = vmul.f32 %v2277_v36, %v6898_v41  ;;  %v2059_v44 = vmul.f32 0.5, %v6872_v39  ;;  %v2060_v62 = vmul.f32 0.5, %v6873_v49 }
 0x1f7   : > { %v2736_v11 = vpop.eup %2735  ;;  %v2280_v38 = vadd.f32 1.0, %v2734_v63  ;;  %v2310_v25 = vmul.f32 %v2278_v57, %v2054_v28  ;;  %2638 = vst [vmem:[%s5850_s19 + $0x50] sm:$0xff] %v2594_v1   ;;  %v2599_v34 = vpack.c.bf16 %v2308_v0, %v2307_v19 }
 0x1f8   : > { %v2738_v30 = vpop.eup %2737  ;;  %v2281_v22 = vadd.f32 1.0, %v2736_v11  ;;  %v2311_v27 = vmul.f32 %v2279_v31, %v2055_v2 }
 0x1f9   : > { %v2740_v15 = vpop.eup %2739  ;;  %v2282_v13 = vadd.f32 1.0, %v2738_v30  ;;  %v2312_v50 = vmul.f32 %v2280_v38, %v2056_v43  ;;  %2639 = vst [vmem:[%s5850_s19 + $0x58] sm:$0xff] %v2599_v34   ;;  %v2604_v55 = vpack.c.bf16 %v2310_v25, %v2309_v7 }
 0x1fa   : > { %v2742_v9 = vpop.eup %2741  ;;  %v2283_v17 = vadd.f32 1.0, %v2740_v15  ;;  %v2313_v23 = vmul.f32 %v2281_v22, %v2057_v46 }
 0x1fb   : > { %v2284_v5 = vadd.f32 1.0, %v2742_v9  ;;  %v2314_v45 = vmul.f32 %v2282_v13, %v2058_v51  ;;  %2640 = vst [vmem:[%s5850_s19 + $0x60] sm:$0xff] %v2604_v55   ;;  %v2609_v8 = vpack.c.bf16 %v2312_v50, %v2311_v27 }
 0x1fc   : > { %v2315_v39 = vmul.f32 %v2283_v17, %v2059_v44 }
 0x1fd   : > { %v2316_v40 = vmul.f32 %v2284_v5, %v2060_v62  ;;  %2641 = vst [vmem:[%s5850_s19 + $0x68] sm:$0xff] %v2609_v8   ;;  %v2614_v21 = vpack.c.bf16 %v2314_v45, %v2313_v23 }
 0x1ff   : > { %2642 = vst [vmem:[%s5850_s19 + $0x70] sm:$0xff] %v2614_v21   ;;  %v2619_v59 = vpack.c.bf16 %v2316_v40, %v2315_v39 }
 0x201   : > { %2643 = vst [vmem:[%s5850_s19 + $0x78] sm:$0xff] %v2619_v59  }
 0x202 PF: > { %s13_s14 = sadd.s32 1, %s2765_s14   ;;  %s6899_s12 = smov %s2761_s13 }
 0x203   : > { %p10_p5 = scmp.ge.s32.totalorder %s13_s14, 4   ;;  %s6900_s13 = smov %s6902_s15 }
 0x205   :  { %12 = sbr.rel (!%p10_p5) target bundleno = 2 (0x2), region = 68 }

</bundles_post_ra>
